<compile_context>
chip_gen: v7x
topology: tpu7x:2x2x1
jax: 0.10.0
libtpu: 0.0.40
codegen_flags: <defaults>
</compile_context>

<pallas_src>
import functools

import jax
import jax.numpy as jnp
from jax.experimental import pallas as pl
from jax.experimental.pallas import tpu as pltpu


# ----------------------------------------------------------------------------
# In-kernel math helpers
# ----------------------------------------------------------------------------
def _fast_recip(x):
    # EUP approximate reciprocal + one Newton-Raphson step: keeps the divide
    # off the VALU while restoring ~f32 accuracy.
    r = pl.reciprocal(x, approx=True)
    return r * (2.0 - x * r)


def _erf(x):
    # Abramowitz & Stegun 7.1.26 polynomial approximation, |err| < 1.5e-7.
    # TODO(synk): exact nn.GELU uses erf; lax.erf lowering on Mosaic is not
    # guaranteed, so we use this fp32-accurate polynomial instead.
    a1, a2, a3, a4, a5 = (0.254829592, -0.284496736, 1.421413741,
                          -1.453152027, 1.061405429)
    p = 0.3275911
    s = jnp.where(x < 0.0, -1.0, 1.0)
    ax = jnp.abs(x)
    t = _fast_recip(1.0 + p * ax)
    poly = ((((a5 * t + a4) * t + a3) * t + a2) * t + a1) * t
    return s * (1.0 - poly * jnp.exp(-ax * ax))


def _gelu(x):
    return 0.5 * x * (1.0 + _erf(x * 0.7071067811865476))


def _layernorm(v, g, b, eps=1e-5):
    mu = jnp.mean(v, axis=-1, keepdims=True)
    c = v - mu
    var = jnp.mean(c * c, axis=-1, keepdims=True)
    return c * jax.lax.rsqrt(var + eps) * g + b


# ----------------------------------------------------------------------------
# The fused kernel: patch-embed -> depth x shared encoder -> final LN -> head
# ----------------------------------------------------------------------------
def vit_kernel(patches_ref, w_patch_ref, emb_bias_ref,
               ln1g_ref, ln1b_ref, w_qkv_h_ref, w_proj_h_ref, bproj_ref,
               ln2g_ref, ln2b_ref, wfc1_ref, bfc1_ref, wfc2_ref, bfc2_ref,
               lnfg_ref, lnfb_ref, whead_ref, bhead_ref,
               o_ref, *, batch, seq, num_heads, head_dim, depth):
    f32 = jnp.float32
    T = batch * seq
    scale = float(head_dim) ** -0.5

    # ---- patch embedding -----------------------------------------------------
    # cls-token rows of `patches` are zeros, so the matmul contributes nothing
    # there; emb_bias already holds cls_token+pos[0] on cls rows and
    # conv_bias+pos[1:] on patch rows.
    z0 = jnp.dot(patches_ref[...], w_patch_ref[...],
                 preferred_element_type=f32) + emb_bias_ref[...]         # (T, D)

    # ---- block-diagonal attention mask, generated in-kernel -------------------
    # same-image test via exact float floor-division (0.5/seq margin >> f32
    # rounding error), no HBM (T, T) array is ever built or DMA'd.
    rowi = jax.lax.broadcasted_iota(jnp.int32, (T, T), 0).astype(f32)
    coli = jax.lax.broadcasted_iota(jnp.int32, (T, T), 1).astype(f32)
    inv_n = 1.0 / float(seq)
    same_img = (jnp.floor((rowi + 0.5) * inv_n) ==
                jnp.floor((coli + 0.5) * inv_n))
    attn_bias = jnp.where(same_img, 0.0, -1e9)                           # (T, T)

    ln1g, ln1b = ln1g_ref[...], ln1b_ref[...]
    ln2g, ln2b = ln2g_ref[...], ln2b_ref[...]
    bproj = bproj_ref[...]
    bfc1, bfc2 = bfc1_ref[...], bfc2_ref[...]

    # ---- the single shared encoder block applied `depth` times (fori_loop) ----
    def encoder_block(_, z):
        # multi-head self attention (pre-LN)
        h = _layernorm(z, ln1g, ln1b)
        ctx = jnp.zeros_like(z)
        for hh in range(num_heads):
            # Per-head q/k/v straight from h with head-indexed weights: no
            # lane-granular slicing of a wide qkv tensor, no relayouts.
            q = jnp.dot(h, w_qkv_h_ref[hh], preferred_element_type=f32)             # (T, hd)
            k = jnp.dot(h, w_qkv_h_ref[num_heads + hh], preferred_element_type=f32)
            v = jnp.dot(h, w_qkv_h_ref[2 * num_heads + hh], preferred_element_type=f32)
            # TODO(synk): the scores contraction is an NT dot_general (Mosaic
            # orients k itself); pre-transposing K would need an activation
            # transpose per layer instead — not worth it at this size.
            s = jax.lax.dot_general(q, k, (((1,), (1,)), ((), ())),
                                    preferred_element_type=f32) * scale  # (T, T)
            s = s + attn_bias            # block-diagonal: keeps images separate
            s = s - jnp.max(s, axis=-1, keepdims=True)
            p = jnp.exp(s)
            p = p * _fast_recip(jnp.sum(p, axis=-1, keepdims=True))      # softmax
            ho = jnp.dot(p, v, preferred_element_type=f32)               # (T, hd)
            # accumulate this head's slice of the output projection
            # (== concat(heads) @ W_proj, without any lane-axis concat)
            ctx = ctx + jnp.dot(ho, w_proj_h_ref[hh], preferred_element_type=f32)
        z = z + ctx + bproj                                              # residual 1

        # MLP (pre-LN)
        h2 = _layernorm(z, ln2g, ln2b)
        m = jnp.dot(h2, wfc1_ref[...], preferred_element_type=f32) + bfc1
        m = _gelu(m)
        m = jnp.dot(m, wfc2_ref[...], preferred_element_type=f32) + bfc2
        return z + m                                                     # residual 2

    z = jax.lax.fori_loop(0, depth, encoder_block, z0)

    # ---- one-hot cls-token gather (one MXU push instead of B row slices) ------
    bi = jax.lax.broadcasted_iota(jnp.int32, (batch, T), 0).astype(f32)
    ti = jax.lax.broadcasted_iota(jnp.int32, (batch, T), 1).astype(f32)
    sel = jnp.where(ti == bi * float(seq), 1.0, 0.0)                     # (B, T)
    x0 = jnp.dot(sel, z, preferred_element_type=f32)                     # (B, D)

    # ---- final LayerNorm + classification head (lane-dense, padded to 128) ----
    hf = _layernorm(x0, lnfg_ref[...], lnfb_ref[...])
    logits = jnp.dot(hf, whead_ref[...], preferred_element_type=f32) + bhead_ref[...]
    o_ref[...] = logits.astype(o_ref.dtype)                              # (B, 128)


# ----------------------------------------------------------------------------
# Wrapper: patch extraction + parameter plumbing + single pallas_call
# ----------------------------------------------------------------------------
def vit_forward(params, x, *, patch_size, num_heads, num_classes, depth=4):
    B, C, Himg, Wimg = x.shape
    P = patch_size
    D = params['w_patch_t'].shape[1]
    K = C * P * P
    Np = (Himg // P) * (Wimg // P)
    N = Np + 1
    T = B * N

    # glue: non-overlapping patches flattened in (C, ph, pw) order to match
    # Conv2d weight.reshape(D, C*P*P); prepend one zero row per image for the
    # cls token so the whole embedding is a single in-kernel matmul.
    patches = x.reshape(B, C, Himg // P, P, Wimg // P, P)
    patches = patches.transpose(0, 2, 4, 1, 3, 5).reshape(B, Np, K)
    patches_aug = jnp.concatenate(
        [jnp.zeros((B, 1, K), patches.dtype), patches], axis=1).reshape(T, K)

    # per-token additive embedding table: row0 = cls_token + pos[0];
    # rows 1.. = conv_bias + pos[1:]; tiled across the batch.
    tok_bias = jnp.concatenate(
        [params['cls_token'][0] + params['pos_embed'][0, 0:1, :],
         params['b_patch'] + params['pos_embed'][0, 1:, :]], axis=0)      # (N, D)
    emb_bias = jnp.tile(tok_bias, (B, 1))                                 # (T, D)

    c_pad = params['w_head_pad'].shape[1]
    head_dim = D // num_heads
    kernel = functools.partial(vit_kernel, batch=B, seq=N,
                               num_heads=num_heads, head_dim=head_dim,
                               depth=depth)

    # One fused pallas_call: no grid, whole batch + weights resident in VMEM.
    # TODO(synk): on v7x a ("parallel",) grid over images would use both
    # TensorCores; single launch kept here (optimal on v5e/v6e, latency-bound).
    vmem_spec = lambda: pl.BlockSpec(memory_space=pltpu.MemorySpace.VMEM)
    logits_pad = pl.pallas_call(
        kernel,
        out_shape=jax.ShapeDtypeStruct((B, c_pad), jnp.float32),
        in_specs=[vmem_spec() for _ in range(18)],
        out_specs=vmem_spec(),
    )(patches_aug, params['w_patch_t'], emb_bias,
      params['ln1_g'], params['ln1_b'],
      params['w_qkv_h'], params['w_proj_h'], params['b_proj'],
      params['ln2_g'], params['ln2_b'],
      params['w_fc1_t'], params['b_fc1'], params['w_fc2_t'], params['b_fc2'],
      params['lnf_g'], params['lnf_b'],
      params['w_head_pad'], params['b_head_pad'])
    return logits_pad[:, :num_classes]


# ----------------------------------------------------------------------------
# Parameter init (deterministic; shapes follow the PyTorch module, scaled down:
# embed_dim=64, heads=4, img=16, patch=4, mlp_ratio=2, classes=10)
# ----------------------------------------------------------------------------
def init_params(key, *, img_size, patch_size, in_chans, num_classes,
                embed_dim, num_heads, mlp_ratio):
    D = embed_dim
    P = patch_size
    K = in_chans * P * P
    Np = (img_size // patch_size) ** 2
    N = Np + 1
    Hm = int(D * mlp_ratio)
    hd = D // num_heads
    c_pad = max(128, -(-num_classes // 128) * 128)   # lane-dense padded classes
    ks = jax.random.split(key, 12)
    nrm = lambda k, s: 0.02 * jax.random.normal(k, s, jnp.float32)

    p = {}
    # patch embed: Conv2d(in_chans, D, kernel=P, stride=P) -> weight (D, C, P, P)
    w_patch = nrm(ks[0], (D, in_chans, P, P))
    p['w_patch_t'] = w_patch.reshape(D, K).T                     # (K, D)
    p['b_patch'] = nrm(ks[1], (1, D))
    p['cls_token'] = jnp.zeros((1, 1, D), jnp.float32)
    p['pos_embed'] = nrm(ks[2], (1, N, D))
    # single shared encoder block (the nn.Sequential holds exactly one)
    p['ln1_g'] = jnp.ones((1, D), jnp.float32)
    p['ln1_b'] = jnp.zeros((1, D), jnp.float32)
    # qkv Linear(D, 3D, bias=False): PyTorch weight (3D, D); rows are grouped
    # (q/k/v, head, hd) -> reorganize into head-indexed (3H, D, hd) blocks so
    # the kernel needs no lane slicing of a wide qkv tensor.
    w_qkv = nrm(ks[3], (3 * D, D))
    p['w_qkv_h'] = w_qkv.reshape(3 * num_heads, hd, D).transpose(0, 2, 1)  # (3H, D, hd)
    # proj Linear(D, D): y = concat(heads) @ W.T; split W.T rows per head.
    w_proj = nrm(ks[4], (D, D))
    p['w_proj_h'] = w_proj.T.reshape(num_heads, hd, D)           # (H, hd, D)
    p['b_proj'] = nrm(ks[5], (1, D))
    p['ln2_g'] = jnp.ones((1, D), jnp.float32)
    p['ln2_b'] = jnp.zeros((1, D), jnp.float32)
    p['w_fc1_t'] = nrm(ks[6], (Hm, D)).T                         # (D, Hm)
    p['b_fc1'] = nrm(ks[7], (1, Hm))
    p['w_fc2_t'] = nrm(ks[8], (D, Hm)).T                         # (Hm, D)
    p['b_fc2'] = nrm(ks[9], (1, D))
    # final norm + classification head, zero-padded to a lane-dense width
    p['lnf_g'] = jnp.ones((1, D), jnp.float32)
    p['lnf_b'] = jnp.zeros((1, D), jnp.float32)
    w_head = nrm(ks[10], (num_classes, D))                       # nn.Linear weight
    b_head = nrm(ks[11], (num_classes,))
    p['w_head_pad'] = jnp.zeros((D, c_pad), jnp.float32).at[:, :num_classes].set(w_head.T)
    p['b_head_pad'] = jnp.zeros((1, c_pad), jnp.float32).at[:, :num_classes].set(b_head)
    return p


if __name__ == "__main__":
    cfg = dict(img_size=16, patch_size=4, in_chans=3, num_classes=10,
               embed_dim=64, num_heads=4, mlp_ratio=2.0)
    B = 2

    base_key = jax.random.PRNGKey(0)
    pkey, xkey = jax.random.split(base_key)
    params = init_params(pkey, img_size=cfg['img_size'],
                         patch_size=cfg['patch_size'], in_chans=cfg['in_chans'],
                         num_classes=cfg['num_classes'],
                         embed_dim=cfg['embed_dim'], num_heads=cfg['num_heads'],
                         mlp_ratio=cfg['mlp_ratio'])
    x = jax.random.normal(xkey, (B, cfg['in_chans'], cfg['img_size'],
                                 cfg['img_size']), jnp.float32)

    fwd = jax.jit(functools.partial(vit_forward,
                                    patch_size=cfg['patch_size'],
                                    num_heads=cfg['num_heads'],
                                    num_classes=cfg['num_classes'],
                                    depth=4))
    out = jax.block_until_ready(fwd(params, x))
    assert out.shape == (B, cfg['num_classes'])
    assert bool(jnp.all(jnp.isfinite(out)))
    print("KERNEL_OK")
</pallas_src>

<mosaic_0001>
module attributes {stable_mosaic.version = 11 : i64} {
  func.func @vit_kernel(%arg0: memref<34x48xf32, #tpu.memory_space<vmem>>, %arg1: memref<48x64xf32, #tpu.memory_space<vmem>>, %arg2: memref<34x64xf32, #tpu.memory_space<vmem>>, %arg3: memref<1x64xf32, #tpu.memory_space<vmem>>, %arg4: memref<1x64xf32, #tpu.memory_space<vmem>>, %arg5: memref<12x64x16xf32, #tpu.memory_space<vmem>>, %arg6: memref<4x16x64xf32, #tpu.memory_space<vmem>>, %arg7: memref<1x64xf32, #tpu.memory_space<vmem>>, %arg8: memref<1x64xf32, #tpu.memory_space<vmem>>, %arg9: memref<1x64xf32, #tpu.memory_space<vmem>>, %arg10: memref<64x128xf32, #tpu.memory_space<vmem>>, %arg11: memref<1x128xf32, #tpu.memory_space<vmem>>, %arg12: memref<128x64xf32, #tpu.memory_space<vmem>>, %arg13: memref<1x64xf32, #tpu.memory_space<vmem>>, %arg14: memref<1x64xf32, #tpu.memory_space<vmem>>, %arg15: memref<1x64xf32, #tpu.memory_space<vmem>>, %arg16: memref<64x128xf32, #tpu.memory_space<vmem>>, %arg17: memref<1x128xf32, #tpu.memory_space<vmem>>, %arg18: memref<2x128xf32, #tpu.memory_space<vmem>>) attributes {dimension_semantics = [], scalar_prefetch = 0 : i64, scratch_operands = 0 : i64, tpu.core_type = #tpu.core_type<tc>} {
    %c0 = arith.constant 0 : index
    %c0_0 = arith.constant 0 : index
    %0 = vector.load %arg0[%c0, %c0_0] : memref<34x48xf32, #tpu.memory_space<vmem>>, vector<34x48xf32>
    %c0_1 = arith.constant 0 : index
    %c0_2 = arith.constant 0 : index
    %1 = vector.load %arg1[%c0_1, %c0_2] : memref<48x64xf32, #tpu.memory_space<vmem>>, vector<48x64xf32>
    %cst = arith.constant dense<0.000000e+00> : vector<34x64xf32>
    %2 = tpu.matmul %0, %1, %cst {dimension_numbers = #tpu.dot_dimension_numbers<[1], [0], [0], [1], [0, 0, 1, 1], [], []>} : vector<34x48xf32>, vector<48x64xf32>, vector<34x64xf32> -> vector<34x64xf32>
    %c0_3 = arith.constant 0 : index
    %c0_4 = arith.constant 0 : index
    %3 = vector.load %arg2[%c0_3, %c0_4] : memref<34x64xf32, #tpu.memory_space<vmem>>, vector<34x64xf32>
    %4 = arith.addf %2, %3 : vector<34x64xf32>
    %5 = tpu.iota {dimensions = array<i32: 0>} : vector<34x34xi32>
    %6 = arith.sitofp %5 : vector<34x34xi32> to vector<34x34xf32>
    %7 = tpu.iota {dimensions = array<i32: 1>} : vector<34x34xi32>
    %8 = arith.sitofp %7 : vector<34x34xi32> to vector<34x34xf32>
    %cst_5 = arith.constant 5.000000e-01 : f32
    %9 = vector.broadcast %cst_5 : f32 to vector<34x34xf32>
    %10 = arith.addf %6, %9 : vector<34x34xf32>
    %cst_6 = arith.constant 0.0588235296 : f32
    %11 = vector.broadcast %cst_6 : f32 to vector<34x34xf32>
    %12 = arith.mulf %10, %11 : vector<34x34xf32>
    %13 = math.floor %12 : vector<34x34xf32>
    %cst_7 = arith.constant 5.000000e-01 : f32
    %14 = vector.broadcast %cst_7 : f32 to vector<34x34xf32>
    %15 = arith.addf %8, %14 : vector<34x34xf32>
    %cst_8 = arith.constant 0.0588235296 : f32
    %16 = vector.broadcast %cst_8 : f32 to vector<34x34xf32>
    %17 = arith.mulf %15, %16 : vector<34x34xf32>
    %18 = math.floor %17 : vector<34x34xf32>
    %19 = arith.cmpf oeq, %13, %18 : vector<34x34xf32>
    %cst_9 = arith.constant 0.000000e+00 : f32
    %cst_10 = arith.constant -1.000000e+09 : f32
    %20 = vector.broadcast %cst_9 : f32 to vector<34x34xf32>
    %21 = vector.broadcast %cst_10 : f32 to vector<34x34xf32>
    %22 = arith.select %19, %20, %21 : vector<34x34xi1>, vector<34x34xf32>
    %c0_11 = arith.constant 0 : index
    %c0_12 = arith.constant 0 : index
    %23 = vector.load %arg3[%c0_11, %c0_12] : memref<1x64xf32, #tpu.memory_space<vmem>>, vector<1x64xf32>
    %c0_13 = arith.constant 0 : index
    %c0_14 = arith.constant 0 : index
    %24 = vector.load %arg4[%c0_13, %c0_14] : memref<1x64xf32, #tpu.memory_space<vmem>>, vector<1x64xf32>
    %c0_15 = arith.constant 0 : index
    %c0_16 = arith.constant 0 : index
    %25 = vector.load %arg8[%c0_15, %c0_16] : memref<1x64xf32, #tpu.memory_space<vmem>>, vector<1x64xf32>
    %c0_17 = arith.constant 0 : index
    %c0_18 = arith.constant 0 : index
    %26 = vector.load %arg9[%c0_17, %c0_18] : memref<1x64xf32, #tpu.memory_space<vmem>>, vector<1x64xf32>
    %c0_19 = arith.constant 0 : index
    %c0_20 = arith.constant 0 : index
    %27 = vector.load %arg7[%c0_19, %c0_20] : memref<1x64xf32, #tpu.memory_space<vmem>>, vector<1x64xf32>
    %c0_21 = arith.constant 0 : index
    %c0_22 = arith.constant 0 : index
    %28 = vector.load %arg11[%c0_21, %c0_22] : memref<1x128xf32, #tpu.memory_space<vmem>>, vector<1x128xf32>
    %c0_23 = arith.constant 0 : index
    %c0_24 = arith.constant 0 : index
    %29 = vector.load %arg13[%c0_23, %c0_24] : memref<1x64xf32, #tpu.memory_space<vmem>>, vector<1x64xf32>
    %c0_i32 = arith.constant 0 : i32
    %c4_i32 = arith.constant 4 : i32
    %30 = arith.addi %c0_i32, %c4_i32 : i32
    %c1_i32 = arith.constant 1 : i32
    %31 = scf.for %arg19 = %c0_i32 to %30 step %c1_i32 iter_args(%arg20 = %4) -> (vector<34x64xf32>)  : i32 {
      %cst_45 = arith.constant dense<0.000000e+00> : vector<34xf32>
      %71 = vector.multi_reduction <add>, %arg20, %cst_45 [1] : vector<34x64xf32> to vector<34xf32>
      %72 = vector.shape_cast %71 : vector<34xf32> to vector<34x1xf32>
      %cst_46 = arith.constant 6.400000e+01 : f32
      %73 = vector.broadcast %cst_46 : f32 to vector<34x1xf32>
      %74 = arith.divf %72, %73 : vector<34x1xf32>
      %75 = vector.broadcast %74 : vector<34x1xf32> to vector<34x64xf32>
      %76 = arith.subf %arg20, %75 : vector<34x64xf32>
      %77 = arith.mulf %76, %76 : vector<34x64xf32>
      %cst_47 = arith.constant dense<0.000000e+00> : vector<34xf32>
      %78 = vector.multi_reduction <add>, %77, %cst_47 [1] : vector<34x64xf32> to vector<34xf32>
      %79 = vector.shape_cast %78 : vector<34xf32> to vector<34x1xf32>
      %cst_48 = arith.constant 6.400000e+01 : f32
      %80 = vector.broadcast %cst_48 : f32 to vector<34x1xf32>
      %81 = arith.divf %79, %80 : vector<34x1xf32>
      %cst_49 = arith.constant 9.99999974E-6 : f32
      %82 = vector.broadcast %cst_49 : f32 to vector<34x1xf32>
      %83 = arith.addf %81, %82 : vector<34x1xf32>
      %84 = math.rsqrt %83 : vector<34x1xf32>
      %85 = vector.broadcast %84 : vector<34x1xf32> to vector<34x64xf32>
      %86 = arith.mulf %76, %85 : vector<34x64xf32>
      %87 = vector.broadcast %23 : vector<1x64xf32> to vector<34x64xf32>
      %88 = arith.mulf %86, %87 : vector<34x64xf32>
      %89 = vector.broadcast %24 : vector<1x64xf32> to vector<34x64xf32>
      %90 = arith.addf %88, %89 : vector<34x64xf32>
      %cst_50 = arith.constant 0.000000e+00 : f32
      %91 = vector.broadcast %cst_50 : f32 to vector<34x64xf32>
      %c0_51 = arith.constant 0 : index
      %c0_52 = arith.constant 0 : index
      %c0_53 = arith.constant 0 : index
      %92 = vector.load %arg5[%c0_51, %c0_52, %c0_53] : memref<12x64x16xf32, #tpu.memory_space<vmem>>, vector<1x64x16xf32>
      %93 = vector.shape_cast %92 : vector<1x64x16xf32> to vector<64x16xf32>
      %cst_54 = arith.constant dense<0.000000e+00> : vector<34x16xf32>
      %94 = tpu.matmul %90, %93, %cst_54 {dimension_numbers = #tpu.dot_dimension_numbers<[1], [0], [0], [1], [0, 0, 1, 1], [], []>} : vector<34x64xf32>, vector<64x16xf32>, vector<34x16xf32> -> vector<34x16xf32>
      %c4 = arith.constant 4 : index
      %c0_55 = arith.constant 0 : index
      %c0_56 = arith.constant 0 : index
      %95 = vector.load %arg5[%c4, %c0_55, %c0_56] : memref<12x64x16xf32, #tpu.memory_space<vmem>>, vector<1x64x16xf32>
      %96 = vector.shape_cast %95 : vector<1x64x16xf32> to vector<64x16xf32>
      %cst_57 = arith.constant dense<0.000000e+00> : vector<34x16xf32>
      %97 = tpu.matmul %90, %96, %cst_57 {dimension_numbers = #tpu.dot_dimension_numbers<[1], [0], [0], [1], [0, 0, 1, 1], [], []>} : vector<34x64xf32>, vector<64x16xf32>, vector<34x16xf32> -> vector<34x16xf32>
      %c8 = arith.constant 8 : index
      %c0_58 = arith.constant 0 : index
      %c0_59 = arith.constant 0 : index
      %98 = vector.load %arg5[%c8, %c0_58, %c0_59] : memref<12x64x16xf32, #tpu.memory_space<vmem>>, vector<1x64x16xf32>
      %99 = vector.shape_cast %98 : vector<1x64x16xf32> to vector<64x16xf32>
      %cst_60 = arith.constant dense<0.000000e+00> : vector<34x16xf32>
      %100 = tpu.matmul %90, %99, %cst_60 {dimension_numbers = #tpu.dot_dimension_numbers<[1], [0], [0], [1], [0, 0, 1, 1], [], []>} : vector<34x64xf32>, vector<64x16xf32>, vector<34x16xf32> -> vector<34x16xf32>
      %cst_61 = arith.constant dense<0.000000e+00> : vector<34x34xf32>
      %101 = tpu.matmul %94, %97, %cst_61 {dimension_numbers = #tpu.dot_dimension_numbers<[1], [1], [0], [0], [0, 0, 1, 0], [], []>} : vector<34x16xf32>, vector<34x16xf32>, vector<34x34xf32> -> vector<34x34xf32>
      %cst_62 = arith.constant 2.500000e-01 : f32
      %102 = vector.broadcast %cst_62 : f32 to vector<34x34xf32>
      %103 = arith.mulf %101, %102 : vector<34x34xf32>
      %104 = arith.addf %103, %22 : vector<34x34xf32>
      %cst_63 = arith.constant dense<0xFF800000> : vector<34xf32>
      %105 = vector.multi_reduction <maximumf>, %104, %cst_63 [1] : vector<34x34xf32> to vector<34xf32>
      %106 = vector.shape_cast %105 : vector<34xf32> to vector<34x1xf32>
      %107 = vector.broadcast %106 : vector<34x1xf32> to vector<34x34xf32>
      %108 = arith.subf %104, %107 : vector<34x34xf32>
      %109 = math.exp %108 : vector<34x34xf32>
      %cst_64 = arith.constant dense<0.000000e+00> : vector<34xf32>
      %110 = vector.multi_reduction <add>, %109, %cst_64 [1] : vector<34x34xf32> to vector<34xf32>
      %111 = vector.shape_cast %110 : vector<34xf32> to vector<34x1xf32>
      %112 = tpu.reciprocal %111 {approx = true} : vector<34x1xf32> -> vector<34x1xf32>
      %113 = arith.mulf %111, %112 : vector<34x1xf32>
      %cst_65 = arith.constant 2.000000e+00 : f32
      %114 = vector.broadcast %cst_65 : f32 to vector<34x1xf32>
      %115 = arith.subf %114, %113 : vector<34x1xf32>
      %116 = arith.mulf %112, %115 : vector<34x1xf32>
      %117 = vector.broadcast %116 : vector<34x1xf32> to vector<34x34xf32>
      %118 = arith.mulf %109, %117 : vector<34x34xf32>
      %cst_66 = arith.constant dense<0.000000e+00> : vector<34x16xf32>
      %119 = tpu.matmul %118, %100, %cst_66 {dimension_numbers = #tpu.dot_dimension_numbers<[1], [0], [0], [1], [0, 0, 1, 1], [], []>} : vector<34x34xf32>, vector<34x16xf32>, vector<34x16xf32> -> vector<34x16xf32>
      %c0_67 = arith.constant 0 : index
      %c0_68 = arith.constant 0 : index
      %c0_69 = arith.constant 0 : index
      %120 = vector.load %arg6[%c0_67, %c0_68, %c0_69] : memref<4x16x64xf32, #tpu.memory_space<vmem>>, vector<1x16x64xf32>
      %121 = vector.shape_cast %120 : vector<1x16x64xf32> to vector<16x64xf32>
      %cst_70 = arith.constant dense<0.000000e+00> : vector<34x64xf32>
      %122 = tpu.matmul %119, %121, %cst_70 {dimension_numbers = #tpu.dot_dimension_numbers<[1], [0], [0], [1], [0, 0, 1, 1], [], []>} : vector<34x16xf32>, vector<16x64xf32>, vector<34x64xf32> -> vector<34x64xf32>
      %123 = arith.addf %91, %122 : vector<34x64xf32>
      %c1 = arith.constant 1 : index
      %c0_71 = arith.constant 0 : index
      %c0_72 = arith.constant 0 : index
      %124 = vector.load %arg5[%c1, %c0_71, %c0_72] : memref<12x64x16xf32, #tpu.memory_space<vmem>>, vector<1x64x16xf32>
      %125 = vector.shape_cast %124 : vector<1x64x16xf32> to vector<64x16xf32>
      %cst_73 = arith.constant dense<0.000000e+00> : vector<34x16xf32>
      %126 = tpu.matmul %90, %125, %cst_73 {dimension_numbers = #tpu.dot_dimension_numbers<[1], [0], [0], [1], [0, 0, 1, 1], [], []>} : vector<34x64xf32>, vector<64x16xf32>, vector<34x16xf32> -> vector<34x16xf32>
      %c5 = arith.constant 5 : index
      %c0_74 = arith.constant 0 : index
      %c0_75 = arith.constant 0 : index
      %127 = vector.load %arg5[%c5, %c0_74, %c0_75] : memref<12x64x16xf32, #tpu.memory_space<vmem>>, vector<1x64x16xf32>
      %128 = vector.shape_cast %127 : vector<1x64x16xf32> to vector<64x16xf32>
      %cst_76 = arith.constant dense<0.000000e+00> : vector<34x16xf32>
      %129 = tpu.matmul %90, %128, %cst_76 {dimension_numbers = #tpu.dot_dimension_numbers<[1], [0], [0], [1], [0, 0, 1, 1], [], []>} : vector<34x64xf32>, vector<64x16xf32>, vector<34x16xf32> -> vector<34x16xf32>
      %c9 = arith.constant 9 : index
      %c0_77 = arith.constant 0 : index
      %c0_78 = arith.constant 0 : index
      %130 = vector.load %arg5[%c9, %c0_77, %c0_78] : memref<12x64x16xf32, #tpu.memory_space<vmem>>, vector<1x64x16xf32>
      %131 = vector.shape_cast %130 : vector<1x64x16xf32> to vector<64x16xf32>
      %cst_79 = arith.constant dense<0.000000e+00> : vector<34x16xf32>
      %132 = tpu.matmul %90, %131, %cst_79 {dimension_numbers = #tpu.dot_dimension_numbers<[1], [0], [0], [1], [0, 0, 1, 1], [], []>} : vector<34x64xf32>, vector<64x16xf32>, vector<34x16xf32> -> vector<34x16xf32>
      %cst_80 = arith.constant dense<0.000000e+00> : vector<34x34xf32>
      %133 = tpu.matmul %126, %129, %cst_80 {dimension_numbers = #tpu.dot_dimension_numbers<[1], [1], [0], [0], [0, 0, 1, 0], [], []>} : vector<34x16xf32>, vector<34x16xf32>, vector<34x34xf32> -> vector<34x34xf32>
      %cst_81 = arith.constant 2.500000e-01 : f32
      %134 = vector.broadcast %cst_81 : f32 to vector<34x34xf32>
      %135 = arith.mulf %133, %134 : vector<34x34xf32>
      %136 = arith.addf %135, %22 : vector<34x34xf32>
      %cst_82 = arith.constant dense<0xFF800000> : vector<34xf32>
      %137 = vector.multi_reduction <maximumf>, %136, %cst_82 [1] : vector<34x34xf32> to vector<34xf32>
      %138 = vector.shape_cast %137 : vector<34xf32> to vector<34x1xf32>
      %139 = vector.broadcast %138 : vector<34x1xf32> to vector<34x34xf32>
      %140 = arith.subf %136, %139 : vector<34x34xf32>
      %141 = math.exp %140 : vector<34x34xf32>
      %cst_83 = arith.constant dense<0.000000e+00> : vector<34xf32>
      %142 = vector.multi_reduction <add>, %141, %cst_83 [1] : vector<34x34xf32> to vector<34xf32>
      %143 = vector.shape_cast %142 : vector<34xf32> to vector<34x1xf32>
      %144 = tpu.reciprocal %143 {approx = true} : vector<34x1xf32> -> vector<34x1xf32>
      %145 = arith.mulf %143, %144 : vector<34x1xf32>
      %cst_84 = arith.constant 2.000000e+00 : f32
      %146 = vector.broadcast %cst_84 : f32 to vector<34x1xf32>
      %147 = arith.subf %146, %145 : vector<34x1xf32>
      %148 = arith.mulf %144, %147 : vector<34x1xf32>
      %149 = vector.broadcast %148 : vector<34x1xf32> to vector<34x34xf32>
      %150 = arith.mulf %141, %149 : vector<34x34xf32>
      %cst_85 = arith.constant dense<0.000000e+00> : vector<34x16xf32>
      %151 = tpu.matmul %150, %132, %cst_85 {dimension_numbers = #tpu.dot_dimension_numbers<[1], [0], [0], [1], [0, 0, 1, 1], [], []>} : vector<34x34xf32>, vector<34x16xf32>, vector<34x16xf32> -> vector<34x16xf32>
      %c1_86 = arith.constant 1 : index
      %c0_87 = arith.constant 0 : index
      %c0_88 = arith.constant 0 : index
      %152 = vector.load %arg6[%c1_86, %c0_87, %c0_88] : memref<4x16x64xf32, #tpu.memory_space<vmem>>, vector<1x16x64xf32>
      %153 = vector.shape_cast %152 : vector<1x16x64xf32> to vector<16x64xf32>
      %cst_89 = arith.constant dense<0.000000e+00> : vector<34x64xf32>
      %154 = tpu.matmul %151, %153, %cst_89 {dimension_numbers = #tpu.dot_dimension_numbers<[1], [0], [0], [1], [0, 0, 1, 1], [], []>} : vector<34x16xf32>, vector<16x64xf32>, vector<34x64xf32> -> vector<34x64xf32>
      %155 = arith.addf %123, %154 : vector<34x64xf32>
      %c2 = arith.constant 2 : index
      %c0_90 = arith.constant 0 : index
      %c0_91 = arith.constant 0 : index
      %156 = vector.load %arg5[%c2, %c0_90, %c0_91] : memref<12x64x16xf32, #tpu.memory_space<vmem>>, vector<1x64x16xf32>
      %157 = vector.shape_cast %156 : vector<1x64x16xf32> to vector<64x16xf32>
      %cst_92 = arith.constant dense<0.000000e+00> : vector<34x16xf32>
      %158 = tpu.matmul %90, %157, %cst_92 {dimension_numbers = #tpu.dot_dimension_numbers<[1], [0], [0], [1], [0, 0, 1, 1], [], []>} : vector<34x64xf32>, vector<64x16xf32>, vector<34x16xf32> -> vector<34x16xf32>
      %c6 = arith.constant 6 : index
      %c0_93 = arith.constant 0 : index
      %c0_94 = arith.constant 0 : index
      %159 = vector.load %arg5[%c6, %c0_93, %c0_94] : memref<12x64x16xf32, #tpu.memory_space<vmem>>, vector<1x64x16xf32>
      %160 = vector.shape_cast %159 : vector<1x64x16xf32> to vector<64x16xf32>
      %cst_95 = arith.constant dense<0.000000e+00> : vector<34x16xf32>
      %161 = tpu.matmul %90, %160, %cst_95 {dimension_numbers = #tpu.dot_dimension_numbers<[1], [0], [0], [1], [0, 0, 1, 1], [], []>} : vector<34x64xf32>, vector<64x16xf32>, vector<34x16xf32> -> vector<34x16xf32>
      %c10 = arith.constant 10 : index
      %c0_96 = arith.constant 0 : index
      %c0_97 = arith.constant 0 : index
      %162 = vector.load %arg5[%c10, %c0_96, %c0_97] : memref<12x64x16xf32, #tpu.memory_space<vmem>>, vector<1x64x16xf32>
      %163 = vector.shape_cast %162 : vector<1x64x16xf32> to vector<64x16xf32>
      %cst_98 = arith.constant dense<0.000000e+00> : vector<34x16xf32>
      %164 = tpu.matmul %90, %163, %cst_98 {dimension_numbers = #tpu.dot_dimension_numbers<[1], [0], [0], [1], [0, 0, 1, 1], [], []>} : vector<34x64xf32>, vector<64x16xf32>, vector<34x16xf32> -> vector<34x16xf32>
      %cst_99 = arith.constant dense<0.000000e+00> : vector<34x34xf32>
      %165 = tpu.matmul %158, %161, %cst_99 {dimension_numbers = #tpu.dot_dimension_numbers<[1], [1], [0], [0], [0, 0, 1, 0], [], []>} : vector<34x16xf32>, vector<34x16xf32>, vector<34x34xf32> -> vector<34x34xf32>
      %cst_100 = arith.constant 2.500000e-01 : f32
      %166 = vector.broadcast %cst_100 : f32 to vector<34x34xf32>
      %167 = arith.mulf %165, %166 : vector<34x34xf32>
      %168 = arith.addf %167, %22 : vector<34x34xf32>
      %cst_101 = arith.constant dense<0xFF800000> : vector<34xf32>
      %169 = vector.multi_reduction <maximumf>, %168, %cst_101 [1] : vector<34x34xf32> to vector<34xf32>
      %170 = vector.shape_cast %169 : vector<34xf32> to vector<34x1xf32>
      %171 = vector.broadcast %170 : vector<34x1xf32> to vector<34x34xf32>
      %172 = arith.subf %168, %171 : vector<34x34xf32>
      %173 = math.exp %172 : vector<34x34xf32>
      %cst_102 = arith.constant dense<0.000000e+00> : vector<34xf32>
      %174 = vector.multi_reduction <add>, %173, %cst_102 [1] : vector<34x34xf32> to vector<34xf32>
      %175 = vector.shape_cast %174 : vector<34xf32> to vector<34x1xf32>
      %176 = tpu.reciprocal %175 {approx = true} : vector<34x1xf32> -> vector<34x1xf32>
      %177 = arith.mulf %175, %176 : vector<34x1xf32>
      %cst_103 = arith.constant 2.000000e+00 : f32
      %178 = vector.broadcast %cst_103 : f32 to vector<34x1xf32>
      %179 = arith.subf %178, %177 : vector<34x1xf32>
      %180 = arith.mulf %176, %179 : vector<34x1xf32>
      %181 = vector.broadcast %180 : vector<34x1xf32> to vector<34x34xf32>
      %182 = arith.mulf %173, %181 : vector<34x34xf32>
      %cst_104 = arith.constant dense<0.000000e+00> : vector<34x16xf32>
      %183 = tpu.matmul %182, %164, %cst_104 {dimension_numbers = #tpu.dot_dimension_numbers<[1], [0], [0], [1], [0, 0, 1, 1], [], []>} : vector<34x34xf32>, vector<34x16xf32>, vector<34x16xf32> -> vector<34x16xf32>
      %c2_105 = arith.constant 2 : index
      %c0_106 = arith.constant 0 : index
      %c0_107 = arith.constant 0 : index
      %184 = vector.load %arg6[%c2_105, %c0_106, %c0_107] : memref<4x16x64xf32, #tpu.memory_space<vmem>>, vector<1x16x64xf32>
      %185 = vector.shape_cast %184 : vector<1x16x64xf32> to vector<16x64xf32>
      %cst_108 = arith.constant dense<0.000000e+00> : vector<34x64xf32>
      %186 = tpu.matmul %183, %185, %cst_108 {dimension_numbers = #tpu.dot_dimension_numbers<[1], [0], [0], [1], [0, 0, 1, 1], [], []>} : vector<34x16xf32>, vector<16x64xf32>, vector<34x64xf32> -> vector<34x64xf32>
      %187 = arith.addf %155, %186 : vector<34x64xf32>
      %c3 = arith.constant 3 : index
      %c0_109 = arith.constant 0 : index
      %c0_110 = arith.constant 0 : index
      %188 = vector.load %arg5[%c3, %c0_109, %c0_110] : memref<12x64x16xf32, #tpu.memory_space<vmem>>, vector<1x64x16xf32>
      %189 = vector.shape_cast %188 : vector<1x64x16xf32> to vector<64x16xf32>
      %cst_111 = arith.constant dense<0.000000e+00> : vector<34x16xf32>
      %190 = tpu.matmul %90, %189, %cst_111 {dimension_numbers = #tpu.dot_dimension_numbers<[1], [0], [0], [1], [0, 0, 1, 1], [], []>} : vector<34x64xf32>, vector<64x16xf32>, vector<34x16xf32> -> vector<34x16xf32>
      %c7 = arith.constant 7 : index
      %c0_112 = arith.constant 0 : index
      %c0_113 = arith.constant 0 : index
      %191 = vector.load %arg5[%c7, %c0_112, %c0_113] : memref<12x64x16xf32, #tpu.memory_space<vmem>>, vector<1x64x16xf32>
      %192 = vector.shape_cast %191 : vector<1x64x16xf32> to vector<64x16xf32>
      %cst_114 = arith.constant dense<0.000000e+00> : vector<34x16xf32>
      %193 = tpu.matmul %90, %192, %cst_114 {dimension_numbers = #tpu.dot_dimension_numbers<[1], [0], [0], [1], [0, 0, 1, 1], [], []>} : vector<34x64xf32>, vector<64x16xf32>, vector<34x16xf32> -> vector<34x16xf32>
      %c11 = arith.constant 11 : index
      %c0_115 = arith.constant 0 : index
      %c0_116 = arith.constant 0 : index
      %194 = vector.load %arg5[%c11, %c0_115, %c0_116] : memref<12x64x16xf32, #tpu.memory_space<vmem>>, vector<1x64x16xf32>
      %195 = vector.shape_cast %194 : vector<1x64x16xf32> to vector<64x16xf32>
      %cst_117 = arith.constant dense<0.000000e+00> : vector<34x16xf32>
      %196 = tpu.matmul %90, %195, %cst_117 {dimension_numbers = #tpu.dot_dimension_numbers<[1], [0], [0], [1], [0, 0, 1, 1], [], []>} : vector<34x64xf32>, vector<64x16xf32>, vector<34x16xf32> -> vector<34x16xf32>
      %cst_118 = arith.constant dense<0.000000e+00> : vector<34x34xf32>
      %197 = tpu.matmul %190, %193, %cst_118 {dimension_numbers = #tpu.dot_dimension_numbers<[1], [1], [0], [0], [0, 0, 1, 0], [], []>} : vector<34x16xf32>, vector<34x16xf32>, vector<34x34xf32> -> vector<34x34xf32>
      %cst_119 = arith.constant 2.500000e-01 : f32
      %198 = vector.broadcast %cst_119 : f32 to vector<34x34xf32>
      %199 = arith.mulf %197, %198 : vector<34x34xf32>
      %200 = arith.addf %199, %22 : vector<34x34xf32>
      %cst_120 = arith.constant dense<0xFF800000> : vector<34xf32>
      %201 = vector.multi_reduction <maximumf>, %200, %cst_120 [1] : vector<34x34xf32> to vector<34xf32>
      %202 = vector.shape_cast %201 : vector<34xf32> to vector<34x1xf32>
      %203 = vector.broadcast %202 : vector<34x1xf32> to vector<34x34xf32>
      %204 = arith.subf %200, %203 : vector<34x34xf32>
      %205 = math.exp %204 : vector<34x34xf32>
      %cst_121 = arith.constant dense<0.000000e+00> : vector<34xf32>
      %206 = vector.multi_reduction <add>, %205, %cst_121 [1] : vector<34x34xf32> to vector<34xf32>
      %207 = vector.shape_cast %206 : vector<34xf32> to vector<34x1xf32>
      %208 = tpu.reciprocal %207 {approx = true} : vector<34x1xf32> -> vector<34x1xf32>
      %209 = arith.mulf %207, %208 : vector<34x1xf32>
      %cst_122 = arith.constant 2.000000e+00 : f32
      %210 = vector.broadcast %cst_122 : f32 to vector<34x1xf32>
      %211 = arith.subf %210, %209 : vector<34x1xf32>
      %212 = arith.mulf %208, %211 : vector<34x1xf32>
      %213 = vector.broadcast %212 : vector<34x1xf32> to vector<34x34xf32>
      %214 = arith.mulf %205, %213 : vector<34x34xf32>
      %cst_123 = arith.constant dense<0.000000e+00> : vector<34x16xf32>
      %215 = tpu.matmul %214, %196, %cst_123 {dimension_numbers = #tpu.dot_dimension_numbers<[1], [0], [0], [1], [0, 0, 1, 1], [], []>} : vector<34x34xf32>, vector<34x16xf32>, vector<34x16xf32> -> vector<34x16xf32>
      %c3_124 = arith.constant 3 : index
      %c0_125 = arith.constant 0 : index
      %c0_126 = arith.constant 0 : index
      %216 = vector.load %arg6[%c3_124, %c0_125, %c0_126] : memref<4x16x64xf32, #tpu.memory_space<vmem>>, vector<1x16x64xf32>
      %217 = vector.shape_cast %216 : vector<1x16x64xf32> to vector<16x64xf32>
      %cst_127 = arith.constant dense<0.000000e+00> : vector<34x64xf32>
      %218 = tpu.matmul %215, %217, %cst_127 {dimension_numbers = #tpu.dot_dimension_numbers<[1], [0], [0], [1], [0, 0, 1, 1], [], []>} : vector<34x16xf32>, vector<16x64xf32>, vector<34x64xf32> -> vector<34x64xf32>
      %219 = arith.addf %187, %218 : vector<34x64xf32>
      %220 = arith.addf %arg20, %219 : vector<34x64xf32>
      %221 = vector.broadcast %27 : vector<1x64xf32> to vector<34x64xf32>
      %222 = arith.addf %220, %221 : vector<34x64xf32>
      %cst_128 = arith.constant dense<0.000000e+00> : vector<34xf32>
      %223 = vector.multi_reduction <add>, %222, %cst_128 [1] : vector<34x64xf32> to vector<34xf32>
      %224 = vector.shape_cast %223 : vector<34xf32> to vector<34x1xf32>
      %cst_129 = arith.constant 6.400000e+01 : f32
      %225 = vector.broadcast %cst_129 : f32 to vector<34x1xf32>
      %226 = arith.divf %224, %225 : vector<34x1xf32>
      %227 = vector.broadcast %226 : vector<34x1xf32> to vector<34x64xf32>
      %228 = arith.subf %222, %227 : vector<34x64xf32>
      %229 = arith.mulf %228, %228 : vector<34x64xf32>
      %cst_130 = arith.constant dense<0.000000e+00> : vector<34xf32>
      %230 = vector.multi_reduction <add>, %229, %cst_130 [1] : vector<34x64xf32> to vector<34xf32>
      %231 = vector.shape_cast %230 : vector<34xf32> to vector<34x1xf32>
      %cst_131 = arith.constant 6.400000e+01 : f32
      %232 = vector.broadcast %cst_131 : f32 to vector<34x1xf32>
      %233 = arith.divf %231, %232 : vector<34x1xf32>
      %cst_132 = arith.constant 9.99999974E-6 : f32
      %234 = vector.broadcast %cst_132 : f32 to vector<34x1xf32>
      %235 = arith.addf %233, %234 : vector<34x1xf32>
      %236 = math.rsqrt %235 : vector<34x1xf32>
      %237 = vector.broadcast %236 : vector<34x1xf32> to vector<34x64xf32>
      %238 = arith.mulf %228, %237 : vector<34x64xf32>
      %239 = vector.broadcast %25 : vector<1x64xf32> to vector<34x64xf32>
      %240 = arith.mulf %238, %239 : vector<34x64xf32>
      %241 = vector.broadcast %26 : vector<1x64xf32> to vector<34x64xf32>
      %242 = arith.addf %240, %241 : vector<34x64xf32>
      %c0_133 = arith.constant 0 : index
      %c0_134 = arith.constant 0 : index
      %243 = vector.load %arg10[%c0_133, %c0_134] : memref<64x128xf32, #tpu.memory_space<vmem>>, vector<64x128xf32>
      %cst_135 = arith.constant dense<0.000000e+00> : vector<34x128xf32>
      %244 = tpu.matmul %242, %243, %cst_135 {dimension_numbers = #tpu.dot_dimension_numbers<[1], [0], [0], [1], [0, 0, 1, 1], [], []>} : vector<34x64xf32>, vector<64x128xf32>, vector<34x128xf32> -> vector<34x128xf32>
      %245 = vector.broadcast %28 : vector<1x128xf32> to vector<34x128xf32>
      %246 = arith.addf %244, %245 : vector<34x128xf32>
      %cst_136 = arith.constant 5.000000e-01 : f32
      %247 = vector.broadcast %cst_136 : f32 to vector<34x128xf32>
      %248 = arith.mulf %247, %246 : vector<34x128xf32>
      %cst_137 = arith.constant 0.707106769 : f32
      %249 = vector.broadcast %cst_137 : f32 to vector<34x128xf32>
      %250 = arith.mulf %246, %249 : vector<34x128xf32>
      %cst_138 = arith.constant 0.000000e+00 : f32
      %251 = vector.broadcast %cst_138 : f32 to vector<34x128xf32>
      %252 = arith.cmpf olt, %250, %251 : vector<34x128xf32>
      %cst_139 = arith.constant -1.000000e+00 : f32
      %cst_140 = arith.constant 1.000000e+00 : f32
      %253 = vector.broadcast %cst_139 : f32 to vector<34x128xf32>
      %254 = vector.broadcast %cst_140 : f32 to vector<34x128xf32>
      %255 = arith.select %252, %253, %254 : vector<34x128xi1>, vector<34x128xf32>
      %256 = math.absf %250 : vector<34x128xf32>
      %cst_141 = arith.constant 0.327591091 : f32
      %257 = vector.broadcast %cst_141 : f32 to vector<34x128xf32>
      %258 = arith.mulf %257, %256 : vector<34x128xf32>
      %cst_142 = arith.constant 1.000000e+00 : f32
      %259 = vector.broadcast %cst_142 : f32 to vector<34x128xf32>
      %260 = arith.addf %259, %258 : vector<34x128xf32>
      %261 = tpu.reciprocal %260 {approx = true} : vector<34x128xf32> -> vector<34x128xf32>
      %262 = arith.mulf %260, %261 : vector<34x128xf32>
      %cst_143 = arith.constant 2.000000e+00 : f32
      %263 = vector.broadcast %cst_143 : f32 to vector<34x128xf32>
      %264 = arith.subf %263, %262 : vector<34x128xf32>
      %265 = arith.mulf %261, %264 : vector<34x128xf32>
      %cst_144 = arith.constant 1.06140542 : f32
      %266 = vector.broadcast %cst_144 : f32 to vector<34x128xf32>
      %267 = arith.mulf %266, %265 : vector<34x128xf32>
      %cst_145 = arith.constant -1.45315206 : f32
      %268 = vector.broadcast %cst_145 : f32 to vector<34x128xf32>
      %269 = arith.addf %267, %268 : vector<34x128xf32>
      %270 = arith.mulf %269, %265 : vector<34x128xf32>
      %cst_146 = arith.constant 1.42141378 : f32
      %271 = vector.broadcast %cst_146 : f32 to vector<34x128xf32>
      %272 = arith.addf %270, %271 : vector<34x128xf32>
      %273 = arith.mulf %272, %265 : vector<34x128xf32>
      %cst_147 = arith.constant -0.284496725 : f32
      %274 = vector.broadcast %cst_147 : f32 to vector<34x128xf32>
      %275 = arith.addf %273, %274 : vector<34x128xf32>
      %276 = arith.mulf %275, %265 : vector<34x128xf32>
      %cst_148 = arith.constant 0.254829586 : f32
      %277 = vector.broadcast %cst_148 : f32 to vector<34x128xf32>
      %278 = arith.addf %276, %277 : vector<34x128xf32>
      %279 = arith.mulf %278, %265 : vector<34x128xf32>
      %cst_149 = arith.constant 0.000000e+00 : f32
      %280 = vector.broadcast %cst_149 : f32 to vector<34x128xf32>
      %281 = arith.subf %280, %256 : vector<34x128xf32>
      %282 = arith.mulf %281, %256 : vector<34x128xf32>
      %283 = math.exp %282 : vector<34x128xf32>
      %284 = arith.mulf %279, %283 : vector<34x128xf32>
      %cst_150 = arith.constant 1.000000e+00 : f32
      %285 = vector.broadcast %cst_150 : f32 to vector<34x128xf32>
      %286 = arith.subf %285, %284 : vector<34x128xf32>
      %287 = arith.mulf %255, %286 : vector<34x128xf32>
      %cst_151 = arith.constant 1.000000e+00 : f32
      %288 = vector.broadcast %cst_151 : f32 to vector<34x128xf32>
      %289 = arith.addf %288, %287 : vector<34x128xf32>
      %290 = arith.mulf %248, %289 : vector<34x128xf32>
      %c0_152 = arith.constant 0 : index
      %c0_153 = arith.constant 0 : index
      %291 = vector.load %arg12[%c0_152, %c0_153] : memref<128x64xf32, #tpu.memory_space<vmem>>, vector<128x64xf32>
      %cst_154 = arith.constant dense<0.000000e+00> : vector<34x64xf32>
      %292 = tpu.matmul %290, %291, %cst_154 {dimension_numbers = #tpu.dot_dimension_numbers<[1], [0], [0], [1], [0, 0, 1, 1], [], []>} : vector<34x128xf32>, vector<128x64xf32>, vector<34x64xf32> -> vector<34x64xf32>
      %293 = vector.broadcast %29 : vector<1x64xf32> to vector<34x64xf32>
      %294 = arith.addf %292, %293 : vector<34x64xf32>
      %295 = arith.addf %222, %294 : vector<34x64xf32>
      scf.yield %295 : vector<34x64xf32>
    }
    %32 = tpu.iota {dimensions = array<i32: 0>} : vector<2x34xi32>
    %33 = arith.sitofp %32 : vector<2x34xi32> to vector<2x34xf32>
    %34 = tpu.iota {dimensions = array<i32: 1>} : vector<2x34xi32>
    %35 = arith.sitofp %34 : vector<2x34xi32> to vector<2x34xf32>
    %cst_25 = arith.constant 1.700000e+01 : f32
    %36 = vector.broadcast %cst_25 : f32 to vector<2x34xf32>
    %37 = arith.mulf %33, %36 : vector<2x34xf32>
    %38 = arith.cmpf oeq, %35, %37 : vector<2x34xf32>
    %cst_26 = arith.constant 1.000000e+00 : f32
    %cst_27 = arith.constant 0.000000e+00 : f32
    %39 = vector.broadcast %cst_26 : f32 to vector<2x34xf32>
    %40 = vector.broadcast %cst_27 : f32 to vector<2x34xf32>
    %41 = arith.select %38, %39, %40 : vector<2x34xi1>, vector<2x34xf32>
    %cst_28 = arith.constant dense<0.000000e+00> : vector<2x64xf32>
    %42 = tpu.matmul %41, %31, %cst_28 {dimension_numbers = #tpu.dot_dimension_numbers<[1], [0], [0], [1], [0, 0, 1, 1], [], []>} : vector<2x34xf32>, vector<34x64xf32>, vector<2x64xf32> -> vector<2x64xf32>
    %c0_29 = arith.constant 0 : index
    %c0_30 = arith.constant 0 : index
    %43 = vector.load %arg14[%c0_29, %c0_30] : memref<1x64xf32, #tpu.memory_space<vmem>>, vector<1x64xf32>
    %c0_31 = arith.constant 0 : index
    %c0_32 = arith.constant 0 : index
    %44 = vector.load %arg15[%c0_31, %c0_32] : memref<1x64xf32, #tpu.memory_space<vmem>>, vector<1x64xf32>
    %cst_33 = arith.constant dense<0.000000e+00> : vector<2xf32>
    %45 = vector.multi_reduction <add>, %42, %cst_33 [1] : vector<2x64xf32> to vector<2xf32>
    %46 = vector.shape_cast %45 : vector<2xf32> to vector<2x1xf32>
    %cst_34 = arith.constant 6.400000e+01 : f32
    %47 = vector.broadcast %cst_34 : f32 to vector<2x1xf32>
    %48 = arith.divf %46, %47 : vector<2x1xf32>
    %49 = vector.broadcast %48 : vector<2x1xf32> to vector<2x64xf32>
    %50 = arith.subf %42, %49 : vector<2x64xf32>
    %51 = arith.mulf %50, %50 : vector<2x64xf32>
    %cst_35 = arith.constant dense<0.000000e+00> : vector<2xf32>
    %52 = vector.multi_reduction <add>, %51, %cst_35 [1] : vector<2x64xf32> to vector<2xf32>
    %53 = vector.shape_cast %52 : vector<2xf32> to vector<2x1xf32>
    %cst_36 = arith.constant 6.400000e+01 : f32
    %54 = vector.broadcast %cst_36 : f32 to vector<2x1xf32>
    %55 = arith.divf %53, %54 : vector<2x1xf32>
    %cst_37 = arith.constant 9.99999974E-6 : f32
    %56 = vector.broadcast %cst_37 : f32 to vector<2x1xf32>
    %57 = arith.addf %55, %56 : vector<2x1xf32>
    %58 = math.rsqrt %57 : vector<2x1xf32>
    %59 = vector.broadcast %58 : vector<2x1xf32> to vector<2x64xf32>
    %60 = arith.mulf %50, %59 : vector<2x64xf32>
    %61 = vector.broadcast %43 : vector<1x64xf32> to vector<2x64xf32>
    %62 = arith.mulf %60, %61 : vector<2x64xf32>
    %63 = vector.broadcast %44 : vector<1x64xf32> to vector<2x64xf32>
    %64 = arith.addf %62, %63 : vector<2x64xf32>
    %c0_38 = arith.constant 0 : index
    %c0_39 = arith.constant 0 : index
    %65 = vector.load %arg16[%c0_38, %c0_39] : memref<64x128xf32, #tpu.memory_space<vmem>>, vector<64x128xf32>
    %cst_40 = arith.constant dense<0.000000e+00> : vector<2x128xf32>
    %66 = tpu.matmul %64, %65, %cst_40 {dimension_numbers = #tpu.dot_dimension_numbers<[1], [0], [0], [1], [0, 0, 1, 1], [], []>} : vector<2x64xf32>, vector<64x128xf32>, vector<2x128xf32> -> vector<2x128xf32>
    %c0_41 = arith.constant 0 : index
    %c0_42 = arith.constant 0 : index
    %67 = vector.load %arg17[%c0_41, %c0_42] : memref<1x128xf32, #tpu.memory_space<vmem>>, vector<1x128xf32>
    %68 = vector.broadcast %67 : vector<1x128xf32> to vector<2x128xf32>
    %69 = arith.addf %66, %68 : vector<2x128xf32>
    %c0_43 = arith.constant 0 : index
    %c0_44 = arith.constant 0 : index
    %70 = vector.load %arg18[%c0_43, %c0_44] : memref<2x128xf32, #tpu.memory_space<vmem>>, vector<2x128xf32>
    tpu.vector_store %arg18[%c0_43, %c0_44], %69 {strides = array<i32>} : memref<2x128xf32, #tpu.memory_space<vmem>>, vector<2x128xf32>,
    return
  }
}

</mosaic_0001>

<bundles_post_ra>
// kernel: tile.9
= control target key start
LH: loop header
LB: loop body
LE: loop exit
PB: predicated region body
PF: predicated region fallthrough
CT: control target
= control target key end

     0   :  { %vm3_vm0 = vcmask 523264   ;;  %s11_s6 = smov 3  ;;  %s74_s0 = inlined_call_operand.vmem [shape: f32[2,17,64], index: 0, kind: input, shape index: {}]   ;;  %s75_s1 = inlined_call_operand.vmem [shape: f32[34,64], index: 1, kind: output, shape index: {}]  }
   0x1   :  { %v2_v0 = vld [vmem:[%s74_s0] sm:$0xff]   ;;  %v26_v1 = vld [vmem:[%s74_s0 + $0x8] sm:$0xff]  }
   0x2   :  { %v28_v2 = vld [vmem:[%s74_s0 + $0x10] ss:$8 sm:%s11_s6]   ;;  %4 = vst.msk [vmem:[%s75_s1] sm:$0xff] %vm3_vm0, %v2_v0   ;;  %27 = vst.msk [vmem:[%s75_s1 + $0x8] sm:$0xff] %vm3_vm0, %v26_v1  }
   0x3   :  { %29 = vst.msk [vmem:[%s75_s1 + $0x10] sm:$0x3] %vm3_vm0, %v28_v2   ;;  %v30_v3 = vld [vmem:[%s74_s0 + $0x19] sm:$0xff]   ;;  %v32_v4 = vld [vmem:[%s74_s0 + $0x21] sm:$0xff]  }
   0x4   :  { %31 = vst.msk [vmem:[%s75_s1 + $0x12] sm:$0xff] %vm3_vm0, %v30_v3   ;;  %33 = vst.msk [vmem:[%s75_s1 + $0x1a] sm:$0xff] %vm3_vm0, %v32_v4  }

// kernel: vit_forward.1
= control target key start
LH: loop header
LB: loop body
LE: loop exit
PB: predicated region body
PF: predicated region fallthrough
CT: control target
= control target key end

     0   :  { %s7504_s0 = inlined_call_operand.vmem [shape: f32[34,48], index: 0, kind: input, shape index: {}]   ;;  %s7505_s1 = inlined_call_operand.vmem [shape: f32[48,64], index: 1, kind: input, shape index: {}]   ;;  %s7506_s2 = inlined_call_operand.vmem [shape: f32[34,64], index: 2, kind: input, shape index: {}]   ;;  %s7507_s3 = inlined_call_operand.vmem [shape: f32[1,64], index: 3, kind: input, shape index: {}]   ;;  %s7508_s4 = inlined_call_operand.vmem [shape: f32[1,64], index: 4, kind: input, shape index: {}]   ;;  %s7509_s5 = inlined_call_operand.vmem [shape: f32[12,64,16], index: 5, kind: input, shape index: {}]   ;;  %s7510_s6 = inlined_call_operand.vmem [shape: f32[4,16,64], index: 6, kind: input, shape index: {}]   ;;  %s7511_s7 = inlined_call_operand.vmem [shape: f32[1,64], index: 7, kind: input, shape index: {}]   ;;  %s7512_s8 = inlined_call_operand.vmem [shape: f32[1,64], index: 8, kind: input, shape index: {}]   ;;  %s7513_s9 = inlined_call_operand.vmem [shape: f32[1,64], index: 9, kind: input, shape index: {}]   ;;  %s7514_s10 = inlined_call_operand.vmem [shape: f32[64,128], index: 10, kind: input, shape index: {}]   ;;  %s7515_s11 = inlined_call_operand.vmem [shape: f32[1,128], index: 11, kind: input, shape index: {}]   ;;  %s7516_s12 = inlined_call_operand.vmem [shape: f32[128,64], index: 12, kind: input, shape index: {}]   ;;  %s7517_s13 = inlined_call_operand.vmem [shape: f32[1,64], index: 13, kind: input, shape index: {}]   ;;  %s7518_s14 = inlined_call_operand.vmem [shape: f32[1,64], index: 14, kind: input, shape index: {}]   ;;  %s7519_s15 = inlined_call_operand.vmem [shape: f32[1,64], index: 15, kind: input, shape index: {}]   ;;  %s7520_s16 = inlined_call_operand.vmem [shape: f32[64,128], index: 16, kind: input, shape index: {}]   ;;  %s7521_s17 = inlined_call_operand.vmem [shape: f32[1,128], index: 17, kind: input, shape index: {}]   ;;  %s7522_s18 = inlined_call_operand.hbm [shape: f32[2,128], index: 18, kind: output, shape index: {}]  }
   0x1   :  { %7528 = sst [smem:[#allocation5_spill]] %s7504_s0 }
   0x2   :  { %7529 = sst [smem:[#allocation6_spill]] %s7505_s1 }
   0x3   :  { %7530 = sst [smem:[#allocation7_spill]] %s7506_s2 }
   0x4   :  { %23 = vsyncpa [#allocation3], 0  ;;  %s7531_s29 = sld [smem:[#allocation6_spill]]  ;;  %v5839_v2 = vmov 0.0|0.0   ;;  %vm5840_vm0 = vmmov 0   ;;  %v5841_v6 = vmov 0.0   ;;  %v182_v16 = vlaneseq }
   0x5   :  { %5301 = vmatprep.subr.bf16.mxu0 %v5839_v2  ;;  %5576 = vmatprep.subr.bf16.mxu1 %v5839_v2  ;;  %s7532_s27 = sld [smem:[#allocation5_spill]]  ;;  %vm76_vm1 = vcmask 392192   ;;  %v6009_v47 = vld [vmem:[%s7507_s3] ss:$0 sm:$0xff]  ;;  %v5842_v54 = vmov -1e+09  }
   0x6   :  { %4528 = vmatprep.mubr.msk.f32.mxu0 %vm5840_vm0, %v5841_v6  ;;  %4537 = vmatprep.mubr.msk.f32.mxu1 %vm5840_vm0, %v5841_v6  ;;  %v5992_v17 = vshrl.u32 %v182_v16, 7  ;;  %v5998_v22 = vand.u32 127, %v182_v16  ;;  %v6014_v48 = vld [vmem:[%s7508_s4] ss:$0 sm:$0xff]  ;;  %s6076_s24 = smov 0  }
   0x7   :  { %v6019_v49 = vld [vmem:[%s7512_s8] ss:$0 sm:$0xff] }
   0x8   :  { %v184_v18 = vadd.s32 8, %v5992_v17  ;;  %v185_v19 = vadd.s32 16, %v5992_v17  ;;  %v186_v20 = vadd.s32 24, %v5992_v17  ;;  %v187_v21 = vadd.s32 32, %v5992_v17  ;;  %v6024_v50 = vld [vmem:[%s7513_s9] ss:$0 sm:$0xff] }
   0x9   :  { %v7527_v23 = vcvt.s32.f32 %v5992_v17  ;;  %v7526_v28 = vcvt.s32.f32 %v5998_v22  ;;  %v6029_v51 = vld [vmem:[%s7511_s7] ss:$0 sm:$0xff] }
   0xa   :  { %v65_v0 = vld [vmem:[%s7531_s29] sm:$0xff]  ;;  %v66_v1 = vld [vmem:[%s7531_s29 + $0x8] sm:$0xff]  ;;  %v67_v4 = vld [vmem:[%s7531_s29 + $0x10] sm:$0xff]  ;;  %v189_v24 = vcvt.s32.f32 %v184_v18  ;;  %v190_v25 = vcvt.s32.f32 %v185_v19  ;;  %v191_v26 = vcvt.s32.f32 %v186_v20  ;;  %v192_v27 = vcvt.s32.f32 %v187_v21 }
   0xb   :  { %v5302_v3 = vpack.c.bf16 %v66_v1, %v65_v0  ;;  %v68_v5 = vld [vmem:[%s7531_s29 + $0x18] sm:$0xff]  ;;  %v69_v8 = vld [vmem:[%s7531_s29 + $0x20] sm:$0xff]  ;;  %v70_v9 = vld [vmem:[%s7531_s29 + $0x28] sm:$0xff]  ;;  %v196_v29 = vadd.f32 0.5, %v7527_v23  ;;  %v211_v34 = vadd.f32 0.5, %v7526_v28 }
   0xc   :  { %v5305_v7 = vpack.c.bf16 %v68_v5, %v67_v4  ;;  %v5308_v10 = vpack.c.bf16 %v70_v9, %v69_v8  ;;  %v60_v11 = vld [vmem:[%s7532_s27] sm:$0xff]  ;;  %v63_v12 = vld [vmem:[%s7532_s27 + $0x18] sm:$0xff]  ;;  %v61_v13 = vld [vmem:[%s7532_s27 + $0x8] sm:$0xff]  ;;  %v197_v30 = vadd.f32 0.5, %v189_v24  ;;  %v198_v31 = vadd.f32 0.5, %v190_v25 }
   0xd   :  { %5303 = vmatpush3.bf16.msra.mxu0 %v5302_v3  ;;  %5579 = vmatpush3.bf16.msra.mxu1 %v5302_v3  ;;  %v64_v14 = vld [vmem:[%s7532_s27 + $0x20] sm:$0x3]  ;;  %v62_v15 = vld [vmem:[%s7532_s27 + $0x10] sm:$0xff]  ;;  %v199_v32 = vadd.f32 0.5, %v191_v26  ;;  %v200_v33 = vadd.f32 0.5, %v192_v27 }
   0xe   :  { %5304 = vmatprep.subr.bf16.mxu0 %v5839_v2  ;;  %5577 = vmatprep.subr.bf16.mxu1 %v5839_v2  ;;  %v201_v35 = vmul.f32 0.05882353, %v196_v29  ;;  %v202_v36 = vmul.f32 0.05882353, %v197_v30  ;;  %v203_v37 = vmul.f32 0.05882353, %v198_v31 }
   0xf   :  { %v204_v38 = vmul.f32 0.05882353, %v199_v32  ;;  %v205_v39 = vmul.f32 0.05882353, %v200_v33  ;;  %v212_v44 = vmul.f32 0.05882353, %v211_v34 }
  0x10   :  { %v206_v40 = vfloor.f32 %v201_v35  ;;  %v207_v41 = vfloor.f32 %v202_v36  ;;  %v208_v42 = vfloor.f32 %v203_v37  ;;  %v6034_v52 = vld [vmem:[%s7515_s11] ss:$0 sm:$0xff]  ;;  %s7533_s11 = sld [smem:[#allocation7_spill]] }
  0x11   :  { %5306 = vmatpush3.bf16.msra.mxu0 %v5305_v7  ;;  %5580 = vmatpush3.bf16.msra.mxu1 %v5305_v7  ;;  %v209_v43 = vfloor.f32 %v204_v38  ;;  %v210_v45 = vfloor.f32 %v205_v39  ;;  %v213_v46 = vfloor.f32 %v212_v44  ;;  %v6039_v53 = vld [vmem:[%s7517_s13] ss:$0 sm:$0xff] }
  0x12   :  { %5307 = vmatprep.subr.bf16.mxu0 %v5839_v2  ;;  %5578 = vmatprep.subr.bf16.mxu1 %v5839_v2 }
  0x13   :  { %vm214_vm2 = vcmp.eq.f32.partialorder %v206_v40, %v213_v46  ;;  %vm215_vm3 = vcmp.eq.f32.partialorder %v207_v41, %v213_v46  ;;  %vm216_vm4 = vcmp.eq.f32.partialorder %v208_v42, %v213_v46  ;;  %vm217_vm5 = vcmp.eq.f32.partialorder %v209_v43, %v213_v46 }
  0x14   :  { %vm218_vm6 = vcmp.eq.f32.partialorder %v210_v45, %v213_v46  ;;  %v6041_v55 = vsel %vm214_vm2, 0.0, %v5842_v54  ;;  %v6043_v56 = vsel %vm215_vm3, 0.0, %v5842_v54  ;;  %v6045_v57 = vsel %vm216_vm4, 0.0, %v5842_v54 }
  0x15   :  { %5309 = vmatpush3.bf16.msra.mxu0 %v5308_v10  ;;  %5581 = vmatpush3.bf16.msra.mxu1 %v5308_v10  ;;  %v6047_v58 = vsel %vm217_vm5, 0.0, %v5842_v54  ;;  %v6049_v59 = vsel %vm218_vm6, 0.0, %v5842_v54 }
  0x16   :  { %v71_v60 = vld [vmem:[%s7533_s11] sm:$0xff]  ;;  %v74_v61 = vld [vmem:[%s7533_s11 + $0x18] sm:$0xff]  ;;  %v72_v5 = vld [vmem:[%s7533_s11 + $0x8] sm:$0xff] }
  0x17   :  { %v75_v7 = vld [vmem:[%s7533_s11 + $0x20] sm:$0x3] }
  0x18   :  { %4529 = vmatmul.mubr.msk.f32.vlgmr.msra.gmra.mrb[0].mxu0 %vm76_vm1, %v60_v11  ;;  %4538 = vmatmul.mubr.msk.f32.vlgmr.msra.gmra.mrb[0].mxu1 %vm76_vm1, %v63_v12 }
  0x19   :  { %4531 = vmatprep.mubr.msk.f32.mxu0 %vm5840_vm0, %v5841_v6  ;;  %4540 = vmatprep.mubr.msk.f32.mxu1 %vm5840_vm0, %v5841_v6 }
  0x1c   :  { %4532 = vmatmul.mubr.msk.f32.gmra.mrb[2].mxu0 %vm76_vm1, %v61_v13  ;;  %4541 = vmatmul.mubr.msk.f32.gmra.mrb[2].mxu1 %vm76_vm1, %v64_v14  ;;  %v73_v14 = vld [vmem:[%s7533_s11 + $0x10] sm:$0xff] }
  0x1d   :  { %4534 = vmatprep.mubr.msk.f32.mxu0 %vm5840_vm0, %v5841_v6 }
  0x20   :  { %4535 = vmatmul.mubr.msk.f32.gmra.mrb[4].mxu0 %vm76_vm1, %v62_v15 }
  0xeb   :  { %v158_v62 = vpop.f32.mrb[0].mxu0  ;;  %v173_v63 = vpop.f32.mrb[0].mxu1 }
  0xec   :  { %v159_v0 = vadd.f32 %v158_v62, %v71_v60   ;;  %v4530_v1 = vpop.f32.mrb[1].mxu0  ;;  %v174_v3 = vadd.f32 %v173_v63, %v74_v61   ;;  %v4539_v4 = vpop.f32.mrb[1].mxu1 }
  0xef   :  { %v163_v8 = vpop.f32.mrb[2].mxu0  ;;  %v178_v9 = vpop.f32.mrb[2].mxu1 }
  0xf0   :  { %v164_v10 = vadd.f32 %v163_v8, %v72_v5   ;;  %v4533_v11 = vpop.f32.mrb[3].mxu0  ;;  %v179_v12 = vadd.f32 %v178_v9, %v75_v7   ;;  %v4542_v13 = vpop.f32.mrb[3].mxu1 }
  0xf3   :  { %v168_v15 = vpop.f32.mrb[4].mxu0 }
  0xf4   :  { %v169_v16 = vadd.f32 %v168_v15, %v73_v14   ;;  %v4536_v18 = vpop.f32.mrb[5].mxu0 }
  0xf5 LB: > { %vm242_vm7 = vcmask 523264   ;;  %vm255_vm8 = vcmask 517120   ;;  %v332_v1 = vld [vmem:[%s7509_s5] sm:$0xff]  ;;  %v333_v4 = vld [vmem:[%s7509_s5 + $0x8] sm:$0xff]  ;;  %v5843_v9 = vmov 0.0|0.0   ;;  %v334_v13 = vld [vmem:[%s7509_s5 + $0x10] sm:$0xff]  ;;  %s5837_s24 = sphi %s6076_s24, %s236_s24   ;;  %v5833_v0 = vphi %v159_v0, %v7540_v0   ;;  %v5829_v10 = vphi %v164_v10, %v7539_v10   ;;  %v5825_v16 = vphi %v169_v16, %v7538_v16   ;;  %v5821_v3 = vphi %v174_v3, %v7537_v3   ;;  %v5817_v12 = vphi %v179_v12, %v7536_v12  }
  0xf6   : > { %v243_v19 = vsel %vm242_vm7, %v5833_v0, 0.0  ;;  %v249_v20 = vsel %vm242_vm7, %v5825_v16, 0.0  ;;  %v246_v21 = vsel %vm242_vm7, %v5829_v10, 0.0  ;;  %v252_v24 = vsel %vm242_vm7, %v5821_v3, 0.0  ;;  %v3943_v5 = vld [vmem:[%s7509_s5 + $0x100] sm:$0xff]  ;;  %v3944_v8 = vld [vmem:[%s7509_s5 + $0x108] sm:$0xff]  ;;  %5310 = vmatprep.subr.bf16.mxu0 %v5843_v9  ;;  %5322 = vmatprep.subr.bf16.mxu1 %v5843_v9 }
  0xf7   : > { %244 = vadd.xlane.f32.xlu0 %v243_v19  ;;  %250 = vadd.xlane.f32.xlu1 %v249_v20  ;;  %v256_v25 = vsel %vm255_vm8, %v5817_v12, 0.0  ;;  %v5311_v7 = vpack.c.bf16 %v333_v4, %v332_v1  ;;  %v5323_v11 = vpack.c.bf16 %v3944_v8, %v3943_v5  ;;  %v335_v14 = vld [vmem:[%s7509_s5 + $0x18] sm:$0xff]  ;;  %v3945_v15 = vld [vmem:[%s7509_s5 + $0x110] sm:$0xff]  ;;  %vm5844_vm9 = vmmov 0   ;;  %s236_s24 = sadd.s32 1, %s5837_s24  }
  0xf8   : > { %v5314_v18 = vpack.c.bf16 %v335_v14, %v334_v13  ;;  %v3946_v19 = vld [vmem:[%s7509_s5 + $0x118] sm:$0xff]  ;;  %v3956_v14 = vld [vmem:[%s7509_s5 + $0x200] sm:$0xff]  ;;  %vm643_vm10 = vcmask 130048   ;;  %vm861_vm12 = vcmask 1041408   ;;  %vm774_vm13 = vcmask 277504   ;;  %p233_p0 = scmp.ge.s32.totalorder %s236_s24, 4  }
  0xf9   : > { %5312 = vmatpush3.bf16.msra.mxu0 %v5311_v7  ;;  %5324 = vmatpush3.bf16.msra.mxu1 %v5323_v11  ;;  %v5326_v20 = vpack.c.bf16 %v3946_v19, %v3945_v15  ;;  %v3957_v15 = vld [vmem:[%s7509_s5 + $0x208] sm:$0xff]  ;;  %vm6313_vm11 = vmpackc.low %vm643_vm10, %vm643_vm10  ;;  %vm787_vm14 = vcmask 271360   ;;  %s5847_s23 = smov (%p233_p0), [#allocation2]  }
  0xfa   : > { %5313 = vmatprep.subr.bf16.mxu0 %v5843_v9  ;;  %5325 = vmatprep.subr.bf16.mxu1 %v5843_v9  ;;  %s3903_s25 = sshll.u32 (%p233_p0), %s5847_s23, 4  ;;  %s3904_s25 = int_to_ptr.vmem [resolvable:$true] %s3903_s25 }
  0xfb   : > { %247 = vadd.xlane.f32.xlu0 %v246_v21  ;;  %253 = vadd.xlane.f32.xlu1 %v252_v24  ;;  %v336_v21 = vld [vmem:[%s7509_s5 + $0x20] sm:$0xff]  ;;  %v337_v24 = vld [vmem:[%s7509_s5 + $0x28] sm:$0xff]  ;;  %p5772_p2 = scmp.lt.s32.totalorder (%p233_p0), %s3904_s25, %s3904_s25 }
  0xfd   : > { %5315 = vmatpush3.bf16.msra.mxu0 %v5314_v18  ;;  %5327 = vmatpush3.bf16.msra.mxu1 %v5326_v20 }
  0xfe   : > { %5316 = vmatprep.subr.bf16.mxu0 %v5843_v9  ;;  %5328 = vmatprep.subr.bf16.mxu1 %v5843_v9 }
  0xff   : > { %257 = vadd.xlane.f32.xlu0 %v256_v25  ;;  %v3947_v25 = vld [vmem:[%s7509_s5 + $0x120] sm:$0xff] }
 0x184   : > { %v245_v26 = vpop.xlane.xlu0 %244  ;;  %v251_v27 = vpop.xlane.xlu1 %250 }
 0x185   : > { %v260_v29 = vmul.f32 0.015625, %v245_v26  ;;  %v262_v30 = vmul.f32 0.015625, %v251_v27  ;;  %v5317_v26 = vpack.c.bf16 %v337_v24, %v336_v21  ;;  %v3948_v27 = vld [vmem:[%s7509_s5 + $0x128] sm:$0xff]  ;;  %v5335_v24 = vpack.c.bf16 %v3957_v15, %v3956_v14 }
 0x187   : > { %v6107_v31 = vsub.f32 %v5833_v0, %v260_v29  ;;  %v6110_v32 = vsub.f32 %v5825_v16, %v262_v30  ;;  %v5329_v29 = vpack.c.bf16 %v3948_v27, %v3947_v25  ;;  %5318 = vmatpush3.bf16.msra.mxu0 %v5317_v26  ;;  %v338_v30 = vld [vmem:[%s7509_s5 + $0x30] sm:$0xff]  ;;  %v3959_v27 = vld [vmem:[%s7509_s5 + $0x218] sm:$0xff] }
 0x188   : > { %v248_v33 = vpop.xlane.xlu0 %247  ;;  %v254_v34 = vpop.xlane.xlu1 %253  ;;  %5319 = vmatprep.subr.bf16.mxu0 %v5843_v9  ;;  %v3958_v26 = vld [vmem:[%s7509_s5 + $0x210] sm:$0xff] }
 0x189   : > { %v261_v35 = vmul.f32 0.015625, %v248_v33  ;;  %v270_v36 = vmul.f32 %v6107_v31, %v6107_v31  ;;  %v263_v37 = vmul.f32 0.015625, %v254_v34  ;;  %v272_v38 = vmul.f32 %v6110_v32, %v6110_v32  ;;  %5330 = vmatpush3.bf16.msra.mxu1 %v5329_v29  ;;  %v339_v33 = vld [vmem:[%s7509_s5 + $0x38] sm:$0xff]  ;;  %v3949_v34 = vld [vmem:[%s7509_s5 + $0x130] sm:$0xff] }
 0x18a   : > { %5331 = vmatprep.subr.bf16.mxu1 %v5843_v9 }
 0x18b   : > { %v6117_v39 = vsub.f32 %v5829_v10, %v261_v35  ;;  %v275_v40 = vsel %vm242_vm7, %v270_v36, 0.0  ;;  %v6121_v41 = vsub.f32 %v5821_v3, %v263_v37  ;;  %v281_v44 = vsel %vm242_vm7, %v272_v38, 0.0  ;;  %v3950_v36 = vld [vmem:[%s7509_s5 + $0x138] sm:$0xff] }
 0x18c   : > { %276 = vadd.xlane.f32.xlu1 %v275_v40  ;;  %v258_v42 = vpop.xlane.xlu0 %257  ;;  %v5320_v35 = vpack.c.bf16 %v339_v33, %v338_v30  ;;  %v5332_v37 = vpack.c.bf16 %v3950_v36, %v3949_v34  ;;  %v5845_v38 = vmov 0.0   ;;  %v5338_v34 = vpack.c.bf16 %v3959_v27, %v3958_v26  ;;  %v3960_v36 = vld [vmem:[%s7509_s5 + $0x220] sm:$0xff] }
 0x18d   : > { %v264_v43 = vmul.f32 0.015625, %v258_v42  ;;  %v271_v45 = vmul.f32 %v6117_v39, %v6117_v39  ;;  %v273_v46 = vmul.f32 %v6121_v41, %v6121_v41  ;;  %4559 = vmatprep.mubr.msk.f32.mxu0 %vm5844_vm9, %v5845_v38  ;;  %4590 = vmatprep.mubr.msk.f32.mxu1 %vm5844_vm9, %v5845_v38 }
 0x18e   : > { %5321 = vmatpush3.bf16.msra.mxu0 %v5320_v35  ;;  %5333 = vmatpush3.bf16.msra.mxu1 %v5332_v37  ;;  %v3961_v37 = vld [vmem:[%s7509_s5 + $0x228] sm:$0xff] }
 0x18f   : > { %v6129_v54 = vsub.f32 %v5817_v12, %v264_v43  ;;  %v278_v60 = vsel %vm242_vm7, %v271_v45, 0.0  ;;  %v284_v61 = vsel %vm242_vm7, %v273_v46, 0.0  ;;  %5334 = vmatprep.subr.bf16.mxu0 %v5843_v9  ;;  %5346 = vmatprep.subr.bf16.mxu1 %v5843_v9 }
 0x190   : > { %282 = vadd.xlane.f32.xlu1 %v281_v44  ;;  %279 = vadd.xlane.f32.xlu0 %v278_v60 }
 0x191   : > { %v274_v62 = vmul.f32 %v6129_v54, %v6129_v54 }
 0x193   : > { %v287_v63 = vsel %vm255_vm8, %v274_v62, 0.0 }
 0x194   : > { %285 = vadd.xlane.f32.xlu0 %v284_v61  ;;  %288 = vadd.xlane.f32.xlu1 %v287_v63 }
 0x219   : > { %v277_v40 = vpop.xlane.xlu1 %276 }
 0x21a   : > { %v290_v42 = vmul.f32 0.015625, %v277_v40 }
 0x21c   : > { %v295_v43 = vadd.f32 1e-05, %v290_v42 }
 0x21d   : > { %v283_v44 = vpop.xlane.xlu1 %282  ;;  %v280_v45 = vpop.xlane.xlu0 %279 }
 0x21e   : > { %5645 = vrsqrt.f32 %v295_v43  ;;  %v292_v46 = vmul.f32 0.015625, %v283_v44  ;;  %v291_v60 = vmul.f32 0.015625, %v280_v45  ;;  %v5341_v43 = vpack.c.bf16 %v3961_v37, %v3960_v36  ;;  %v3962_v44 = vld [vmem:[%s7509_s5 + $0x230] sm:$0xff]  ;;  %v3963_v45 = vld [vmem:[%s7509_s5 + $0x238] sm:$0xff]  ;;  %v3985_v36 = vld [vmem:[%s7509_s5 + $0x40] sm:$0xff] }
 0x21f   : > { %v3986_v37 = vld [vmem:[%s7509_s5 + $0x48] sm:$0xff] }
 0x220   : > { %v297_v61 = vadd.f32 1e-05, %v292_v46  ;;  %v296_v62 = vadd.f32 1e-05, %v291_v60  ;;  %v5344_v60 = vpack.c.bf16 %v3963_v45, %v3962_v44  ;;  %v3987_v45 = vld [vmem:[%s7509_s5 + $0x50] sm:$0xff] }
 0x221   : > { %v289_v63 = vpop.xlane.xlu1 %288  ;;  %v286_v1 = vpop.xlane.xlu0 %285 }
 0x222   : > { %5647 = vrsqrt.f32 %v297_v61  ;;  %v294_v4 = vmul.f32 0.015625, %v289_v63  ;;  %v293_v5 = vmul.f32 0.015625, %v286_v1 }
 0x223   : > { %5649 = vrsqrt.f32 %v296_v62 }
 0x224   : > { %v298_v7 = vadd.f32 1e-05, %v293_v5  ;;  %v299_v8 = vadd.f32 1e-05, %v294_v4 }
 0x226   : > { %5651 = vrsqrt.f32 %v298_v7 }
 0x227   : > { %5653 = vrsqrt.f32 %v299_v8 }
 0x228   : > { %v5646_v11 = vpop.eup %5645 }
 0x229   : > { %v305_v13 = vmul.f32 %v5646_v11, %v6107_v31 }
 0x22b   : > { %v316_v18 = vmul.f32 %v6009_v47, %v305_v13 }
 0x22c   : > { %v5648_v19 = vpop.eup %5647 }
 0x22d   : > { %v5650_v20 = vpop.eup %5649  ;;  %v6207_v21 = vadd.f32 %v6014_v48, %v316_v18  ;;  %v307_v25 = vmul.f32 %v5648_v19, %v6110_v32 }
 0x22e   : > { %v306_v31 = vmul.f32 %v5650_v20, %v6117_v39 }
 0x22f   : > { %4560 = vmatmul.mubr.msk.f32.vlgmr.msra.gmra.mrb[0].mxu0 %vm242_vm7, %v6207_v21  ;;  %4591 = vmatmul.mubr.msk.f32.vlgmr.msra.gmra.mrb[0].mxu1 %vm242_vm7, %v6207_v21  ;;  %v318_v39 = vmul.f32 %v6009_v47, %v307_v25 }
 0x230   : > { %v317_v29 = vmul.f32 %v6009_v47, %v306_v31  ;;  %4562 = vmatprep.mubr.msk.f32.mxu0 %vm5844_vm9, %v5845_v38  ;;  %4593 = vmatprep.mubr.msk.f32.mxu1 %vm5844_vm9, %v5845_v38  ;;  %v5652_v32 = vpop.eup %5651 }
 0x231   : > { %5336 = vmatpush3.bf16.msra.mxu0 %v5335_v24  ;;  %v308_v33 = vmul.f32 %v5652_v32, %v6121_v41  ;;  %v5654_v35 = vpop.eup %5653  ;;  %v6247_v41 = vadd.f32 %v6014_v48, %v318_v39 }
 0x232   : > { %v6228_v30 = vadd.f32 %v6014_v48, %v317_v29  ;;  %5337 = vmatprep.subr.bf16.mxu0 %v5843_v9  ;;  %v309_v40 = vmul.f32 %v5654_v35, %v6129_v54 }
 0x233   : > { %v319_v42 = vmul.f32 %v6009_v47, %v308_v33 }
 0x234   : > { %4563 = vmatmul.mubr.msk.f32.gmra.mrb[2].mxu0 %vm242_vm7, %v6228_v30  ;;  %4594 = vmatmul.mubr.msk.f32.gmra.mrb[2].mxu1 %vm242_vm7, %v6228_v30  ;;  %v320_v54 = vmul.f32 %v6009_v47, %v309_v40 }
 0x235   : > { %4565 = vmatprep.mubr.msk.f32.mxu0 %vm5844_vm9, %v5845_v38  ;;  %4596 = vmatprep.mubr.msk.f32.mxu1 %vm5844_vm9, %v5845_v38  ;;  %v6268_v46 = vadd.f32 %v6014_v48, %v319_v42  ;;  %v5361_v42 = vpack.c.bf16 %v3986_v37, %v3985_v36 }
 0x236   : > { %5339 = vmatpush3.bf16.msra.mxu0 %v5338_v34  ;;  %v6280_v61 = vadd.f32 %v6014_v48, %v320_v54  ;;  %v3988_v54 = vld [vmem:[%s7509_s5 + $0x58] sm:$0xff] }
 0x237   : > { %5340 = vmatprep.subr.bf16.mxu0 %v5843_v9 }
 0x238   : > { %4566 = vmatmul.mubr.msk.f32.gmra.mrb[4].mxu0 %vm242_vm7, %v6247_v41  ;;  %4597 = vmatmul.mubr.msk.f32.gmra.mrb[4].mxu1 %vm242_vm7, %v6247_v41 }
 0x239   : > { %4568 = vmatprep.mubr.msk.f32.mxu0 %vm5844_vm9, %v5845_v38  ;;  %4599 = vmatprep.mubr.msk.f32.mxu1 %vm5844_vm9, %v5845_v38 }
 0x23a   : > { %5342 = vmatpush3.bf16.msra.mxu0 %v5341_v43 }
 0x23b   : > { %5343 = vmatprep.subr.bf16.mxu0 %v5843_v9 }
 0x23c   : > { %4569 = vmatmul.mubr.msk.f32.gmra.mrb[6].mxu0 %vm242_vm7, %v6268_v46  ;;  %4600 = vmatmul.mubr.msk.f32.gmra.mrb[6].mxu1 %vm242_vm7, %v6268_v46 }
 0x23d   : > { %4571 = vmatprep.mubr.msk.f32.mxu0 %vm5844_vm9, %v5845_v38  ;;  %4602 = vmatprep.mubr.msk.f32.mxu1 %vm5844_vm9, %v5845_v38 }
 0x23e   : > { %5345 = vmatpush3.bf16.msra.mxu0 %v5344_v60 }
 0x23f   : > { %5354 = vmatprep.subr.bf16.mxu0 %v5843_v9 }
 0x240   : > { %4572 = vmatmul.mubr.msk.f32.gmra.mrb[8].mxu0 %vm242_vm7, %v6280_v61  ;;  %4603 = vmatmul.mubr.msk.f32.gmra.mrb[8].mxu1 %vm242_vm7, %v6280_v61 }
 0x241   : > { %4621 = vmatprep.mubr.msk.f32.mxu0 %vm5844_vm9, %v5845_v38  ;;  %4646 = vmatprep.mubr.msk.f32.mxu1 %vm5844_vm9, %v5845_v38 }
 0x244   : > { %4622 = vmatmul.mubr.msk.f32.vlgmr.msra.gmra.mrb[10].mxu0 %vm242_vm7, %v6207_v21 }
 0x245   : > { %4624 = vmatprep.mubr.msk.f32.mxu0 %vm5844_vm9, %v5845_v38 }
 0x248   : > { %4625 = vmatmul.mubr.msk.f32.gmra.mrb[12].mxu0 %vm242_vm7, %v6228_v30 }
 0x249   : > { %4627 = vmatprep.mubr.msk.f32.mxu0 %vm5844_vm9, %v5845_v38 }
 0x24c   : > { %4628 = vmatmul.mubr.msk.f32.gmra.mrb[14].mxu0 %vm242_vm7, %v6247_v41 }
 0x24d   : > { %4630 = vmatprep.mubr.msk.f32.mxu0 %vm5844_vm9, %v5845_v38 }
 0x250   : > { %4631 = vmatmul.mubr.msk.f32.gmra.mrb[16].mxu0 %vm242_vm7, %v6268_v46 }
 0x251   : > { %4633 = vmatprep.mubr.msk.f32.mxu0 %vm5844_vm9, %v5845_v38 }
 0x254   : > { %4634 = vmatmul.mubr.msk.f32.gmra.mrb[18].mxu0 %vm242_vm7, %v6280_v61 }
 0x255   : > { %4671 = vmatprep.mubr.msk.f32.mxu0 %vm5844_vm9, %v5845_v38 }
 0x302   : > { %v421_v62 = vpop.f32.mrb[0].mxu0  ;;  %v520_v63 = vpop.f32.mrb[0].mxu1 }
 0x303   : > { %v4561_v1 = vpop.f32.mrb[1].mxu0  ;;  %v4592_v4 = vpop.f32.mrb[1].mxu1 }
 0x304   : > { %v3989_v4 = vld [vmem:[%s7509_s5 + $0x60] sm:$0xff] }
 0x307   : > { %v426_v5 = vpop.f32.mrb[2].mxu0  ;;  %v525_v7 = vpop.f32.mrb[2].mxu1 }
 0x308   : > { %v5347_v11 = vpack.c.bf16 %v525_v7, %v520_v63  ;;  %v4564_v13 = vpop.f32.mrb[3].mxu0  ;;  %v4595_v14 = vpop.f32.mrb[3].mxu1  ;;  %v5364_v63 = vpack.c.bf16 %v3988_v54, %v3987_v45 }
 0x30a   : > { %5349 = vmatpush3.bf16.xpose.msk.msra.mxu1 %vm6313_vm11, %v5347_v11 }
 0x30b   : > { %v431_v15 = vpop.f32.mrb[4].mxu0  ;;  %v530_v18 = vpop.f32.mrb[4].mxu1  ;;  %5350 = vmatprep.subr.bf16.mxu1 %v5843_v9 }
 0x30c   : > { %v4567_v19 = vpop.f32.mrb[5].mxu0  ;;  %v4598_v20 = vpop.f32.mrb[5].mxu1 }
 0x30d   : > { %v3992_v19 = vld [vmem:[%s7509_s5 + $0x78] sm:$0xff] }
 0x30f   : > { %v436_v24 = vpop.f32.mrb[6].mxu0  ;;  %v535_v25 = vpop.f32.mrb[6].mxu1 }
 0x310   : > { %v5351_v31 = vpack.c.bf16 %v535_v25, %v530_v18  ;;  %v4570_v26 = vpop.f32.mrb[7].mxu0  ;;  %v4601_v27 = vpop.f32.mrb[7].mxu1  ;;  %v3991_v18 = vld [vmem:[%s7509_s5 + $0x70] sm:$0xff] }
 0x311   : > { %v5370_v20 = vpack.c.bf16 %v3992_v19, %v3991_v18  ;;  %v4013_v26 = vld [vmem:[%s7509_s5 + $0x250] sm:$0xff]  ;;  %v4014_v27 = vld [vmem:[%s7509_s5 + $0x258] sm:$0xff] }
 0x312   : > { %5353 = vmatpush3.bf16.xpose.msk.msra.mxu1 %vm6313_vm11, %v5351_v31  ;;  %v4012_v31 = vld [vmem:[%s7509_s5 + $0x248] sm:$0xff] }
 0x313   : > { %v441_v29 = vpop.f32.mrb[8].mxu0  ;;  %v540_v32 = vpop.f32.mrb[8].mxu1  ;;  %4644 = vmatprep.subr.mxu1 %v5845_v38 }
 0x314   : > { %v4573_v39 = vpop.f32.mrb[9].mxu0  ;;  %v4604_v33 = vpop.f32.mrb[9].mxu1 }
 0x315   : > { %v4016_v39 = vld [vmem:[%s7509_s5 + $0x268] sm:$0xff] }
 0x317   : > { %v619_v34 = vpop.f32.mrb[10].mxu0 }
 0x318   : > { %v4623_v35 = vpop.f32.mrb[11].mxu0 }
 0x319   : > { %v4018_v35 = vld [vmem:[%s7509_s5 + $0x278] sm:$0xff] }
 0x31a   : > { %4645 = vmatpush3.xpose.msk.msra.mxu1 %vm643_vm10, %v540_v32  ;;  %v4015_v32 = vld [vmem:[%s7509_s5 + $0x260] sm:$0xff] }
 0x31b   : > { %v624_v40 = vpop.f32.mrb[12].mxu0  ;;  %5360 = vmatprep.subr.bf16.mxu1 %v5843_v9  ;;  %v5391_v33 = vpack.c.bf16 %v4016_v39, %v4015_v32 }
 0x31c   : > { %v5355_v43 = vpack.c.bf16 %v624_v40, %v619_v34  ;;  %v4626_v44 = vpop.f32.mrb[13].mxu0  ;;  %v4017_v34 = vld [vmem:[%s7509_s5 + $0x270] sm:$0xff] }
 0x31d   : > { %4647 = vmatmul.mubr.msk.f32.vlgmr.msra.gmra.mrb[10].mxu1 %vm643_vm10, %v421_v62  ;;  %v3990_v62 = vld [vmem:[%s7509_s5 + $0x68] sm:$0xff]  ;;  %v5394_v36 = vpack.c.bf16 %v4018_v35, %v4017_v34 }
 0x31e   : > { %5356 = vmatpush3.bf16.msra.mxu0 %v5355_v43  ;;  %4649 = vmatprep.mubr.msk.f32.mxu1 %vm5844_vm9, %v5845_v38  ;;  %v5367_v11 = vpack.c.bf16 %v3990_v62, %v3989_v4 }
 0x31f   : > { %v629_v60 = vpop.f32.mrb[14].mxu0  ;;  %5362 = vmatpush3.bf16.msra.mxu1 %v5361_v42  ;;  %5357 = vmatprep.subr.bf16.mxu0 %v5843_v9 }
 0x320   : > { %v4629_v1 = vpop.f32.mrb[15].mxu0  ;;  %5363 = vmatprep.subr.bf16.mxu1 %v5843_v9 }
 0x321   : > { %4650 = vmatmul.mubr.msk.f32.gmra.mrb[12].mxu1 %vm643_vm10, %v426_v5 }
 0x322   : > { %4652 = vmatprep.mubr.msk.f32.mxu1 %vm5844_vm9, %v5845_v38 }
 0x323   : > { %v634_v7 = vpop.f32.mrb[16].mxu0  ;;  %5365 = vmatpush3.bf16.msra.mxu1 %v5364_v63 }
 0x324   : > { %v5358_v13 = vpack.c.bf16 %v634_v7, %v629_v60  ;;  %v4632_v14 = vpop.f32.mrb[17].mxu0  ;;  %5366 = vmatprep.subr.bf16.mxu1 %v5843_v9 }
 0x325   : > { %4653 = vmatmul.mubr.msk.f32.gmra.mrb[14].mxu1 %vm643_vm10, %v431_v15  ;;  %v4011_v15 = vld [vmem:[%s7509_s5 + $0x240] sm:$0xff] }
 0x326   : > { %5359 = vmatpush3.bf16.msra.mxu0 %v5358_v13  ;;  %4655 = vmatprep.mubr.msk.f32.mxu1 %vm5844_vm9, %v5845_v38 }
 0x327   : > { %v639_v5 = vpop.f32.mrb[18].mxu0  ;;  %4669 = vmatprep.subr.mxu0 %v5845_v38  ;;  %5368 = vmatpush3.bf16.msra.mxu1 %v5367_v11 }
 0x328   : > { %v4635_v25 = vpop.f32.mrb[19].mxu0  ;;  %5369 = vmatprep.subr.bf16.mxu1 %v5843_v9 }
 0x329   : > { %4656 = vmatmul.mubr.msk.f32.gmra.mrb[16].mxu1 %vm643_vm10, %v436_v24  ;;  %v5385_v24 = vpack.c.bf16 %v4012_v31, %v4011_v15 }
 0x32a   : > { %4670 = vmatpush3.msk.msra.mxu0 %vm861_vm12, %v639_v5  ;;  %4658 = vmatprep.mubr.msk.f32.mxu1 %vm5844_vm9, %v5845_v38 }
 0x32b   : > { %5371 = vmatpush3.bf16.msra.mxu1 %v5370_v20  ;;  %5372 = vmatprep.subr.bf16.mxu0 %v5843_v9 }
 0x32c   : > { %5384 = vmatprep.subr.bf16.mxu1 %v5843_v9 }
 0x32d   : > { %4659 = vmatmul.mubr.msk.f32.gmra.mrb[18].mxu1 %vm643_vm10, %v441_v29  ;;  %v5388_v29 = vpack.c.bf16 %v4014_v27, %v4013_v26 }
 0x32e   : > { %4702 = vmatprep.mubr.msk.f32.mxu1 %vm5844_vm9, %v5845_v38 }
 0x331   : > { %4703 = vmatmul.mubr.msk.f32.vlgmr.msra.gmra.mrb[20].mxu1 %vm242_vm7, %v6207_v21 }
 0x332   : > { %4705 = vmatprep.mubr.msk.f32.mxu1 %vm5844_vm9, %v5845_v38  ;;  %5386 = vmatpush3.bf16.msra.mxu1 %v5385_v24 }
 0x333   : > { %5387 = vmatprep.subr.bf16.mxu1 %v5843_v9 }
 0x335   : > { %4706 = vmatmul.mubr.msk.f32.gmra.mrb[22].mxu1 %vm242_vm7, %v6228_v30 }
 0x336   : > { %4708 = vmatprep.mubr.msk.f32.mxu1 %vm5844_vm9, %v5845_v38  ;;  %5389 = vmatpush3.bf16.msra.mxu1 %v5388_v29 }
 0x337   : > { %5390 = vmatprep.subr.bf16.mxu1 %v5843_v9 }
 0x339   : > { %4709 = vmatmul.mubr.msk.f32.gmra.mrb[24].mxu1 %vm242_vm7, %v6247_v41 }
 0x33a   : > { %4711 = vmatprep.mubr.msk.f32.mxu1 %vm5844_vm9, %v5845_v38  ;;  %5392 = vmatpush3.bf16.msra.mxu1 %v5391_v33 }
 0x33b   : > { %5393 = vmatprep.subr.bf16.mxu1 %v5843_v9 }
 0x33d   : > { %4712 = vmatmul.mubr.msk.f32.gmra.mrb[26].mxu1 %vm242_vm7, %v6268_v46 }
 0x33e   : > { %4714 = vmatprep.mubr.msk.f32.mxu1 %vm5844_vm9, %v5845_v38  ;;  %5395 = vmatpush3.bf16.msra.mxu1 %v5394_v36 }
 0x33f   : > { %5582 = vmatprep.subr.bf16.mxu1 %v5843_v9 }
 0x341   : > { %4715 = vmatmul.mubr.msk.f32.gmra.mrb[28].mxu1 %vm242_vm7, %v6280_v61 }
 0x342   : > { %4764 = vmatprep.mubr.msk.f32.mxu1 %vm5844_vm9, %v5845_v38 }
 0x345   : > { %4765 = vmatmul.mubr.msk.f32.vlgmr.msra.gmra.mrb[30].mxu1 %vm242_vm7, %v6207_v21 }
 0x346   : > { %4767 = vmatprep.mubr.msk.f32.mxu1 %vm5844_vm9, %v5845_v38 }
 0x349   : > { %4768 = vmatmul.mubr.msk.f32.gmra.mrb[32].mxu1 %vm242_vm7, %v6228_v30 }
 0x34a   : > { %4770 = vmatprep.mubr.msk.f32.mxu1 %vm5844_vm9, %v5845_v38 }
 0x34d   : > { %4771 = vmatmul.mubr.msk.f32.gmra.mrb[34].mxu1 %vm242_vm7, %v6247_v41 }
 0x34e   : > { %4773 = vmatprep.mubr.msk.f32.mxu1 %vm5844_vm9, %v5845_v38 }
 0x351   : > { %4774 = vmatmul.mubr.msk.f32.gmra.mrb[36].mxu1 %vm242_vm7, %v6268_v46 }
 0x352   : > { %4776 = vmatprep.mubr.msk.f32.mxu1 %vm5844_vm9, %v5845_v38 }
 0x355   : > { %4777 = vmatmul.mubr.msk.f32.gmra.mrb[38].mxu1 %vm242_vm7, %v6280_v61 }
 0x356   : > { %4817 = vmatprep.mubr.msk.f32.mxu1 %vm5844_vm9, %v5845_v38 }
 0x3f0   : > { %v740_v37 = vpop.f32.mrb[10].mxu1 }
 0x3f1   : > { %v764_v40 = vmul.f32 0.25, %v740_v37  ;;  %v4648_v42 = vpop.f32.mrb[11].mxu1 }
 0x3f3   : > { %v769_v43 = vadd.f32 %v764_v40, %v6041_v55 }
 0x3f4   : > { %v745_v44 = vpop.f32.mrb[12].mxu1 }
 0x3f5   : > { %v765_v45 = vmul.f32 0.25, %v745_v44  ;;  %v4651_v54 = vpop.f32.mrb[13].mxu1  ;;  %v775_v60 = vsel %vm774_vm13, %v769_v43, -inf }
 0x3f6   : > { %776 = vmax.xlane.f32.xlu0 %v775_v60 }
 0x3f7   : > { %v770_v63 = vadd.f32 %v765_v45, %v6043_v56 }
 0x3f8   : > { %v750_v1 = vpop.f32.mrb[14].mxu1 }
 0x3f9   : > { %v766_v4 = vmul.f32 0.25, %v750_v1  ;;  %v4654_v62 = vpop.f32.mrb[15].mxu1  ;;  %v778_v7 = vsel %vm774_vm13, %v770_v63, -inf }
 0x3fa   : > { %779 = vmax.xlane.f32.xlu1 %v778_v7 }
 0x3fb   : > { %v771_v11 = vadd.f32 %v766_v4, %v6045_v57 }
 0x3fc   : > { %v755_v13 = vpop.f32.mrb[16].mxu1 }
 0x3fd   : > { %v767_v14 = vmul.f32 0.25, %v755_v13  ;;  %v4657_v18 = vpop.f32.mrb[17].mxu1  ;;  %v781_v19 = vsel %vm774_vm13, %v771_v11, -inf }
 0x3fe   : > { %782 = vmax.xlane.f32.xlu0 %v781_v19 }
 0x3ff   : > { %v772_v5 = vadd.f32 %v767_v14, %v6047_v58 }
 0x400   : > { %v760_v20 = vpop.f32.mrb[18].mxu1 }
 0x401   : > { %v768_v25 = vmul.f32 0.25, %v760_v20  ;;  %v4660_v15 = vpop.f32.mrb[19].mxu1  ;;  %v784_v31 = vsel %vm774_vm13, %v772_v5, -inf }
 0x402   : > { %785 = vmax.xlane.f32.xlu1 %v784_v31 }
 0x403   : > { %v773_v24 = vadd.f32 %v768_v25, %v6049_v59 }
 0x404   : > { %v6449_v26 = vpop.f32.mrb[20].mxu1 }
 0x405   : > { %v4704_v27 = vpop.f32.mrb[21].mxu1  ;;  %v788_v29 = vsel %vm787_vm14, %v773_v24, -inf }
 0x406   : > { %789 = vmax.xlane.f32.xlu0 %v788_v29 }
 0x408   : > { %v6452_v32 = vpop.f32.mrb[22].mxu1 }
 0x409   : > { %v4707_v39 = vpop.f32.mrb[23].mxu1 }
 0x40c   : > { %v6454_v33 = vpop.f32.mrb[24].mxu1 }
 0x40d   : > { %v4710_v34 = vpop.f32.mrb[25].mxu1 }
 0x410   : > { %v6456_v35 = vpop.f32.mrb[26].mxu1 }
 0x411   : > { %v4713_v36 = vpop.f32.mrb[27].mxu1 }
 0x414   : > { %v6458_v37 = vpop.f32.mrb[28].mxu1 }
 0x415   : > { %v4716_v40 = vpop.f32.mrb[29].mxu1 }
 0x418   : > { %v1230_v42 = vpop.f32.mrb[30].mxu1 }
 0x419   : > { %v4766_v44 = vpop.f32.mrb[31].mxu1 }
 0x41c   : > { %v1235_v45 = vpop.f32.mrb[32].mxu1 }
 0x41d   : > { %v6460_v54 = vpack.c.bf16 %v1235_v45, %v1230_v42  ;;  %v4769_v60 = vpop.f32.mrb[33].mxu1 }
 0x41f   : > { %5585 = vmatpush3.bf16.msra.mxu1 %v6460_v54 }
 0x420   : > { %v1240_v1 = vpop.f32.mrb[34].mxu1  ;;  %5583 = vmatprep.subr.bf16.mxu1 %v5843_v9 }
 0x421   : > { %v4772_v4 = vpop.f32.mrb[35].mxu1 }
 0x424   : > { %v1245_v62 = vpop.f32.mrb[36].mxu1 }
 0x425   : > { %v6464_v7 = vpack.c.bf16 %v1245_v62, %v1240_v1  ;;  %v4775_v13 = vpop.f32.mrb[37].mxu1 }
 0x427   : > { %5586 = vmatpush3.bf16.msra.mxu1 %v6464_v7 }
 0x428   : > { %v6467_v14 = vpop.f32.mrb[38].mxu1  ;;  %5584 = vmatprep.subr.mxu1 %v5845_v38 }
 0x429   : > { %v4778_v18 = vpop.f32.mrb[39].mxu1 }
 0x42b   : > { %5587 = vmatpush3.msk.msra.mxu1 %vm861_vm12, %v6467_v14 }
 0x42c   : > { %5413 = vmatprep.subr.bf16.mxu1 %v5843_v9 }
 0x483   : > { %v777_v19 = vpop.xlane.xlu0 %776 }
 0x484   : > { %v791_v20 = vsub.f32 %v769_v43, %v777_v19 }
 0x486   : > { %v796_v25 = vmul.f32 1.442695, %v791_v20 }
 0x487   : > { %v780_v15 = vpop.xlane.xlu1 %779 }
 0x488   : > { %5655 = vpow2.f32 %v796_v25  ;;  %v792_v31 = vsub.f32 %v770_v63, %v780_v15 }
 0x48a   : > { %v798_v27 = vmul.f32 1.442695, %v792_v31 }
 0x48b   : > { %v783_v29 = vpop.xlane.xlu0 %782 }
 0x48c   : > { %5657 = vpow2.f32 %v798_v27  ;;  %v793_v39 = vsub.f32 %v771_v11, %v783_v29 }
 0x48e   : > { %v800_v34 = vmul.f32 1.442695, %v793_v39  ;;  %v3998_v39 = vld [vmem:[%s7509_s5 + $0x140] sm:$0xff] }
 0x48f   : > { %v786_v36 = vpop.xlane.xlu1 %785 }
 0x490   : > { %5659 = vpow2.f32 %v800_v34  ;;  %v794_v40 = vsub.f32 %v772_v5, %v786_v36  ;;  %v3999_v34 = vld [vmem:[%s7509_s5 + $0x148] sm:$0xff] }
 0x492   : > { %v5656_v42 = vpop.eup %5655  ;;  %v802_v44 = vmul.f32 1.442695, %v794_v40 }
 0x493   : > { %v790_v45 = vpop.xlane.xlu0 %789  ;;  %v806_v60 = vsel %vm774_vm13, %v5656_v42, 0.0 }
 0x494   : > { %5661 = vpow2.f32 %v802_v44  ;;  %v795_v1 = vsub.f32 %v773_v24, %v790_v45  ;;  %807 = vadd.xlane.f32.xlu1 %v806_v60  ;;  %v5373_v60 = vpack.c.bf16 %v3999_v34, %v3998_v39 }
 0x496   : > { %v5658_v43 = vpop.eup %5657  ;;  %v804_v4 = vmul.f32 1.442695, %v795_v1 }
 0x497   : > { %v809_v63 = vsel %vm774_vm13, %v5658_v43, 0.0 }
 0x498   : > { %5663 = vpow2.f32 %v804_v4  ;;  %810 = vadd.xlane.f32.xlu0 %v809_v63  ;;  %v4000_v63 = vld [vmem:[%s7509_s5 + $0x150] sm:$0xff] }
 0x49a   : > { %v5660_v62 = vpop.eup %5659 }
 0x49b   : > { %v812_v11 = vsel %vm774_vm13, %v5660_v62, 0.0 }
 0x49c   : > { %813 = vadd.xlane.f32.xlu1 %v812_v11  ;;  %v4001_v11 = vld [vmem:[%s7509_s5 + $0x158] sm:$0xff] }
 0x49e   : > { %v5662_v13 = vpop.eup %5661 }
 0x49f   : > { %v815_v5 = vsel %vm774_vm13, %v5662_v13, 0.0 }
 0x4a0   : > { %816 = vadd.xlane.f32.xlu0 %v815_v5 }
 0x4a2   : > { %v6477_v18 = vpop.eup %5663 }
 0x4a3   : > { %v818_v24 = vsel %vm787_vm14, %v6477_v18, 0.0 }
 0x4a4   : > { %819 = vadd.xlane.f32.xlu1 %v818_v24 }
 0x521   : > { %v808_v19 = vpop.xlane.xlu1 %807 }
 0x522   : > { %5665 = vrcp.f32 %v808_v19 }
 0x525   : > { %v811_v20 = vpop.xlane.xlu0 %810 }
 0x526   : > { %5667 = vrcp.f32 %v811_v20 }
 0x529   : > { %v814_v25 = vpop.xlane.xlu1 %813 }
 0x52a   : > { %5669 = vrcp.f32 %v814_v25 }
 0x52c   : > { %v5666_v15 = vpop.eup %5665 }
 0x52d   : > { %v826_v31 = vmul.f32 %v5666_v15, %v808_v19  ;;  %v817_v27 = vpop.xlane.xlu0 %816 }
 0x52e   : > { %5671 = vrcp.f32 %v817_v27 }
 0x52f   : > { %v831_v29 = vsub.f32 2.0, %v826_v31  ;;  %v4002_v31 = vld [vmem:[%s7509_s5 + $0x160] sm:$0xff] }
 0x530   : > { %v5668_v36 = vpop.eup %5667 }
 0x531   : > { %v836_v40 = vmul.f32 %v5666_v15, %v831_v29  ;;  %v827_v44 = vmul.f32 %v5668_v36, %v811_v20  ;;  %v820_v45 = vpop.xlane.xlu1 %819  ;;  %v5376_v20 = vpack.c.bf16 %v4001_v11, %v4000_v63  ;;  %v4003_v29 = vld [vmem:[%s7509_s5 + $0x168] sm:$0xff] }
 0x532   : > { %5673 = vrcp.f32 %v820_v45 }
 0x533   : > { %v841_v1 = vmul.f32 %v5656_v42, %v836_v40  ;;  %v832_v4 = vsub.f32 2.0, %v827_v44  ;;  %v4004_v44 = vld [vmem:[%s7509_s5 + $0x170] sm:$0xff] }
 0x534   : > { %v5670_v5 = vpop.eup %5669 }
 0x535   : > { %v837_v24 = vmul.f32 %v5668_v36, %v832_v4  ;;  %v828_v19 = vmul.f32 %v5670_v5, %v814_v25  ;;  %4672 = vmatmul.mubr.msk.f32.vlgmr.msra.gmra.mrb[20].mxu0 %vm774_vm13, %v841_v1 }
 0x536   : > { %4674 = vmatprep.mubr.msk.f32.mxu0 %vm5844_vm9, %v5845_v38  ;;  %5374 = vmatpush3.bf16.msra.mxu0 %v5373_v60  ;;  %v4005_v60 = vld [vmem:[%s7509_s5 + $0x178] sm:$0xff] }
 0x537   : > { %v842_v42 = vmul.f32 %v5658_v43, %v837_v24  ;;  %v833_v15 = vsub.f32 2.0, %v828_v19  ;;  %5375 = vmatprep.subr.bf16.mxu0 %v5843_v9  ;;  %v5379_v43 = vpack.c.bf16 %v4003_v29, %v4002_v31 }
 0x538   : > { %v5672_v25 = vpop.eup %5671 }
 0x539   : > { %v838_v39 = vmul.f32 %v5670_v5, %v833_v15  ;;  %v829_v34 = vmul.f32 %v5672_v25, %v817_v27  ;;  %4675 = vmatmul.mubr.msk.f32.gmra.mrb[22].mxu0 %vm774_vm13, %v842_v42 }
 0x53a   : > { %4677 = vmatprep.mubr.msk.f32.mxu0 %vm5844_vm9, %v5845_v38  ;;  %5377 = vmatpush3.bf16.msra.mxu0 %v5376_v20 }
 0x53b   : > { %v843_v36 = vmul.f32 %v5660_v62, %v838_v39  ;;  %v834_v40 = vsub.f32 2.0, %v829_v34  ;;  %5378 = vmatprep.subr.bf16.mxu0 %v5843_v9  ;;  %v5382_v62 = vpack.c.bf16 %v4005_v60, %v4004_v44 }
 0x53c   : > { %v5674_v27 = vpop.eup %5673 }
 0x53d   : > { %v839_v1 = vmul.f32 %v5672_v25, %v834_v40  ;;  %v830_v4 = vmul.f32 %v5674_v27, %v820_v45  ;;  %4678 = vmatmul.mubr.msk.f32.gmra.mrb[24].mxu0 %vm774_vm13, %v843_v36 }
 0x53e   : > { %4680 = vmatprep.mubr.msk.f32.mxu0 %vm5844_vm9, %v5845_v38  ;;  %5380 = vmatpush3.bf16.msra.mxu0 %v5379_v43 }
 0x53f   : > { %v844_v63 = vmul.f32 %v5662_v13, %v839_v1  ;;  %v835_v11 = vsub.f32 2.0, %v830_v4  ;;  %5381 = vmatprep.subr.bf16.mxu0 %v5843_v9 }
 0x541   : > { %v840_v5 = vmul.f32 %v5674_v27, %v835_v11  ;;  %4681 = vmatmul.mubr.msk.f32.gmra.mrb[26].mxu0 %vm774_vm13, %v844_v63 }
 0x542   : > { %4683 = vmatprep.mubr.msk.f32.mxu0 %vm5844_vm9, %v5845_v38  ;;  %5383 = vmatpush3.bf16.msra.mxu0 %v5382_v62 }
 0x543   : > { %v845_v45 = vmul.f32 %v6477_v18, %v840_v5  ;;  %5396 = vmatprep.subr.bf16.mxu0 %v5843_v9 }
 0x545   : > { %4684 = vmatmul.mubr.msk.f32.gmra.mrb[28].mxu0 %vm774_vm13, %v845_v45 }
 0x546   : > { %4733 = vmatprep.mubr.msk.f32.mxu0 %vm5844_vm9, %v5845_v38 }
 0x549   : > { %4734 = vmatmul.mubr.msk.f32.vlgmr.msra.gmra.mrb[30].mxu0 %vm242_vm7, %v6207_v21 }
 0x54a   : > { %4736 = vmatprep.mubr.msk.f32.mxu0 %vm5844_vm9, %v5845_v38 }
 0x54d   : > { %4737 = vmatmul.mubr.msk.f32.gmra.mrb[32].mxu0 %vm242_vm7, %v6228_v30 }
 0x54e   : > { %4739 = vmatprep.mubr.msk.f32.mxu0 %vm5844_vm9, %v5845_v38 }
 0x551   : > { %4740 = vmatmul.mubr.msk.f32.gmra.mrb[34].mxu0 %vm242_vm7, %v6247_v41 }
 0x552   : > { %4742 = vmatprep.mubr.msk.f32.mxu0 %vm5844_vm9, %v5845_v38 }
 0x555   : > { %4743 = vmatmul.mubr.msk.f32.gmra.mrb[36].mxu0 %vm242_vm7, %v6268_v46 }
 0x556   : > { %4745 = vmatprep.mubr.msk.f32.mxu0 %vm5844_vm9, %v5845_v38 }
 0x559   : > { %4746 = vmatmul.mubr.msk.f32.gmra.mrb[38].mxu0 %vm242_vm7, %v6280_v61 }
 0x55a   : > { %4789 = vmatprep.mubr.msk.f32.mxu0 %vm5844_vm9, %v5845_v38 }
 0x608   : > { %v6545_v13 = vpop.f32.mrb[20].mxu0 }
 0x609   : > { %v4673_v18 = vpop.f32.mrb[21].mxu0 }
 0x60c   : > { %v6547_v24 = vpop.f32.mrb[22].mxu0 }
 0x60d   : > { %v4676_v19 = vpop.f32.mrb[23].mxu0 }
 0x610   : > { %v6549_v20 = vpop.f32.mrb[24].mxu0 }
 0x611   : > { %v4679_v42 = vpop.f32.mrb[25].mxu0 }
 0x614   : > { %v6551_v15 = vpop.f32.mrb[26].mxu0 }
 0x615   : > { %v4682_v31 = vpop.f32.mrb[27].mxu0 }
 0x618   : > { %v6553_v29 = vpop.f32.mrb[28].mxu0 }
 0x619   : > { %v4685_v25 = vpop.f32.mrb[29].mxu0 }
 0x61c   : > { %v1131_v39 = vpop.f32.mrb[30].mxu0 }
 0x61d   : > { %v4735_v34 = vpop.f32.mrb[31].mxu0 }
 0x620   : > { %v1136_v43 = vpop.f32.mrb[32].mxu0 }
 0x621   : > { %v5397_v36 = vpack.c.bf16 %v1136_v43, %v1131_v39  ;;  %v4738_v40 = vpop.f32.mrb[33].mxu0 }
 0x623   : > { %5399 = vmatpush3.bf16.xpose.msk.msra.mxu0 %vm6313_vm11, %v5397_v36 }
 0x624   : > { %v1141_v44 = vpop.f32.mrb[34].mxu0  ;;  %5400 = vmatprep.subr.bf16.mxu0 %v5843_v9 }
 0x625   : > { %v4741_v60 = vpop.f32.mrb[35].mxu0 }
 0x628   : > { %v1146_v27 = vpop.f32.mrb[36].mxu0 }
 0x629   : > { %v5401_v1 = vpack.c.bf16 %v1146_v27, %v1141_v44  ;;  %v4744_v4 = vpop.f32.mrb[37].mxu0 }
 0x62b   : > { %5403 = vmatpush3.bf16.xpose.msk.msra.mxu0 %vm6313_vm11, %v5401_v1 }
 0x62c   : > { %v1151_v62 = vpop.f32.mrb[38].mxu0  ;;  %4787 = vmatprep.subr.mxu0 %v5845_v38 }
 0x62d   : > { %v4747_v63 = vpop.f32.mrb[39].mxu0 }
 0x633   : > { %4788 = vmatpush3.xpose.msk.msra.mxu0 %vm643_vm10, %v1151_v62 }
 0x634   : > { %5404 = vmatprep.subr.bf16.mxu0 %v5843_v9 }
 0x636   : > { %4790 = vmatmul.mubr.msk.f32.vlgmr.msra.gmra.mrb[40].mxu0 %vm643_vm10, %v6449_v26 }
 0x637   : > { %5406 = vmatpush3.bf16.msra.mxu0 %v6460_v54  ;;  %4792 = vmatprep.mubr.msk.f32.mxu0 %vm5844_vm9, %v5845_v38 }
 0x638   : > { %5407 = vmatprep.subr.bf16.mxu0 %v5843_v9 }
 0x63a   : > { %4793 = vmatmul.mubr.msk.f32.gmra.mrb[42].mxu0 %vm643_vm10, %v6452_v32 }
 0x63b   : > { %5409 = vmatpush3.bf16.msra.mxu0 %v6464_v7  ;;  %4795 = vmatprep.mubr.msk.f32.mxu0 %vm5844_vm9, %v5845_v38 }
 0x63c   : > { %4812 = vmatprep.subr.mxu0 %v5845_v38 }
 0x63e   : > { %4796 = vmatmul.mubr.msk.f32.gmra.mrb[44].mxu0 %vm643_vm10, %v6454_v33 }
 0x63f   : > { %4813 = vmatpush3.msk.msra.mxu0 %vm861_vm12, %v6467_v14  ;;  %4798 = vmatprep.mubr.msk.f32.mxu0 %vm5844_vm9, %v5845_v38 }
 0x640   : > { %5410 = vmatprep.subr.bf16.mxu0 %v5843_v9 }
 0x642   : > { %4799 = vmatmul.mubr.msk.f32.gmra.mrb[46].mxu0 %vm643_vm10, %v6456_v35 }
 0x643   : > { %4801 = vmatprep.mubr.msk.f32.mxu0 %vm5844_vm9, %v5845_v38 }
 0x646   : > { %4802 = vmatmul.mubr.msk.f32.gmra.mrb[48].mxu0 %vm643_vm10, %v6458_v37 }
 0x647   : > { %4814 = vmatprep.mubr.msk.f32.mxu0 %vm5844_vm9, %v5845_v38 }
 0x709   : > { %v1350_v26 = vpop.f32.mrb[40].mxu0 }
 0x70a   : > { %v1374_v32 = vmul.f32 0.25, %v1350_v26  ;;  %v4791_v33 = vpop.f32.mrb[41].mxu0 }
 0x70c   : > { %v1379_v54 = vadd.f32 %v1374_v32, %v6041_v55 }
 0x70d   : > { %v1355_v7 = vpop.f32.mrb[42].mxu0 }
 0x70e   : > { %v1375_v14 = vmul.f32 0.25, %v1355_v7  ;;  %v4794_v11 = vpop.f32.mrb[43].mxu0  ;;  %v1384_v5 = vsel %vm774_vm13, %v1379_v54, -inf }
 0x70f   : > { %1385 = vmax.xlane.f32.xlu0 %v1384_v5 }
 0x710   : > { %v1380_v35 = vadd.f32 %v1375_v14, %v6043_v56 }
 0x711   : > { %v1360_v45 = vpop.f32.mrb[44].mxu0 }
 0x712   : > { %v1376_v18 = vmul.f32 0.25, %v1360_v45  ;;  %v4797_v19 = vpop.f32.mrb[45].mxu0  ;;  %v1387_v37 = vsel %vm774_vm13, %v1380_v35, -inf }
 0x713   : > { %1388 = vmax.xlane.f32.xlu1 %v1387_v37 }
 0x714   : > { %v1381_v42 = vadd.f32 %v1376_v18, %v6045_v57 }
 0x715   : > { %v1365_v31 = vpop.f32.mrb[46].mxu0 }
 0x716   : > { %v1377_v25 = vmul.f32 0.25, %v1365_v31  ;;  %v4800_v39 = vpop.f32.mrb[47].mxu0  ;;  %v1390_v34 = vsel %vm774_vm13, %v1381_v42, -inf }
 0x717   : > { %1391 = vmax.xlane.f32.xlu0 %v1390_v34 }
 0x718   : > { %v1382_v43 = vadd.f32 %v1377_v25, %v6047_v58 }
 0x719   : > { %v1370_v36 = vpop.f32.mrb[48].mxu0 }
 0x71a   : > { %v1378_v40 = vmul.f32 0.25, %v1370_v36  ;;  %v4803_v44 = vpop.f32.mrb[49].mxu0  ;;  %v1393_v60 = vsel %vm774_vm13, %v1382_v43, -inf }
 0x71b   : > { %1394 = vmax.xlane.f32.xlu1 %v1393_v60 }
 0x71c   : > { %v1383_v27 = vadd.f32 %v1378_v40, %v6049_v59 }
 0x71e   : > { %v1396_v1 = vsel %vm787_vm14, %v1383_v27, -inf }
 0x71f   : > { %1397 = vmax.xlane.f32.xlu0 %v1396_v1 }
 0x79c   : > { %v1386_v4 = vpop.xlane.xlu0 %1385 }
 0x79d   : > { %v1399_v62 = vsub.f32 %v1379_v54, %v1386_v4 }
 0x79f   : > { %v1404_v63 = vmul.f32 1.442695, %v1399_v62 }
 0x7a0   : > { %v1389_v26 = vpop.xlane.xlu1 %1388 }
 0x7a1   : > { %5675 = vpow2.f32 %v1404_v63  ;;  %v1400_v32 = vsub.f32 %v1380_v35, %v1389_v26 }
 0x7a3   : > { %v1406_v33 = vmul.f32 1.442695, %v1400_v32  ;;  %v4040_v32 = vld [vmem:[%s7510_s6 + $0x10] sm:$0xff] }
 0x7a4   : > { %v1392_v7 = vpop.xlane.xlu0 %1391 }
 0x7a5   : > { %5677 = vpow2.f32 %v1406_v33  ;;  %v1401_v14 = vsub.f32 %v1381_v42, %v1392_v7  ;;  %v4041_v33 = vld [vmem:[%s7510_s6 + $0x18] sm:$0xff] }
 0x7a7   : > { %v1408_v11 = vmul.f32 1.442695, %v1401_v14 }
 0x7a8   : > { %v1395_v5 = vpop.xlane.xlu1 %1394 }
 0x7a9   : > { %5679 = vpow2.f32 %v1408_v11  ;;  %v1402_v45 = vsub.f32 %v1382_v43, %v1395_v5 }
 0x7ab   : > { %v5676_v18 = vpop.eup %5675  ;;  %v1410_v19 = vmul.f32 1.442695, %v1402_v45  ;;  %v5411_v45 = vpack.c.bf16 %v4041_v33, %v4040_v32 }
 0x7ac   : > { %v1398_v37 = vpop.xlane.xlu0 %1397  ;;  %v1414_v31 = vsel %vm774_vm13, %v5676_v18, 0.0 }
 0x7ad   : > { %5681 = vpow2.f32 %v1410_v19  ;;  %v1403_v25 = vsub.f32 %v1383_v27, %v1398_v37  ;;  %1415 = vadd.xlane.f32.xlu1 %v1414_v31  ;;  %v955_v31 = vld [vmem:[%s7510_s6] sm:$0xff] }
 0x7af   : > { %v5678_v54 = vpop.eup %5677  ;;  %v1412_v39 = vmul.f32 1.442695, %v1403_v25  ;;  %v956_v25 = vld [vmem:[%s7510_s6 + $0x8] sm:$0xff] }
 0x7b0   : > { %v1417_v35 = vsel %vm774_vm13, %v5678_v54, 0.0 }
 0x7b1   : > { %5683 = vpow2.f32 %v1412_v39  ;;  %1418 = vadd.xlane.f32.xlu0 %v1417_v35 }
 0x7b3   : > { %v5680_v34 = vpop.eup %5679 }
 0x7b4   : > { %v1420_v42 = vsel %vm774_vm13, %v5680_v34, 0.0 }
 0x7b5   : > { %1421 = vadd.xlane.f32.xlu1 %v1420_v42 }
 0x7b7   : > { %v5682_v36 = vpop.eup %5681 }
 0x7b8   : > { %v1423_v43 = vsel %vm774_vm13, %v5682_v36, 0.0 }
 0x7b9   : > { %1424 = vadd.xlane.f32.xlu0 %v1423_v43  ;;  %v5414_v43 = vpack.c.bf16 %v956_v25, %v955_v31  ;;  %v4071_v31 = vld [vmem:[%s7509_s5 + $0x1b0] sm:$0xff]  ;;  %v4072_v25 = vld [vmem:[%s7509_s5 + $0x1b8] sm:$0xff] }
 0x7bb   : > { %v5684_v40 = vpop.eup %5683 }
 0x7bc   : > { %v1426_v44 = vsel %vm787_vm14, %v5684_v40, 0.0 }
 0x7bd   : > { %1427 = vadd.xlane.f32.xlu1 %v1426_v44 }
 0x83a   : > { %v1416_v60 = vpop.xlane.xlu1 %1415 }
 0x83b   : > { %5685 = vrcp.f32 %v1416_v60 }
 0x83e   : > { %v1419_v27 = vpop.xlane.xlu0 %1418 }
 0x83f   : > { %5687 = vrcp.f32 %v1419_v27 }
 0x842   : > { %v1422_v1 = vpop.xlane.xlu1 %1421 }
 0x843   : > { %5689 = vrcp.f32 %v1422_v1 }
 0x845   : > { %v5686_v4 = vpop.eup %5685 }
 0x846   : > { %v1434_v62 = vmul.f32 %v5686_v4, %v1416_v60  ;;  %v1425_v63 = vpop.xlane.xlu0 %1424 }
 0x847   : > { %5691 = vrcp.f32 %v1425_v63 }
 0x848   : > { %v1439_v26 = vsub.f32 2.0, %v1434_v62 }
 0x849   : > { %v5688_v7 = vpop.eup %5687 }
 0x84a   : > { %v1444_v14 = vmul.f32 %v5686_v4, %v1439_v26  ;;  %v1435_v11 = vmul.f32 %v5688_v7, %v1419_v27  ;;  %v1428_v5 = vpop.xlane.xlu1 %1427 }
 0x84b   : > { %5693 = vrcp.f32 %v1428_v5 }
 0x84c   : > { %v1449_v19 = vmul.f32 %v5676_v18, %v1444_v14  ;;  %v1440_v37 = vsub.f32 2.0, %v1435_v11  ;;  %v4065_v14 = vld [vmem:[%s7509_s5 + $0x180] sm:$0xff]  ;;  %v4066_v11 = vld [vmem:[%s7509_s5 + $0x188] sm:$0xff] }
 0x84d   : > { %v5690_v39 = vpop.eup %5689 }
 0x84e   : > { %v1445_v35 = vmul.f32 %v5688_v7, %v1440_v37  ;;  %v1436_v42 = vmul.f32 %v5690_v39, %v1422_v1  ;;  %4815 = vmatmul.mubr.msk.f32.vlgmr.msra.gmra.mrb[50].mxu0 %vm774_vm13, %v1449_v19  ;;  %v4069_v19 = vld [vmem:[%s7509_s5 + $0x1a0] sm:$0xff]  ;;  %v4070_v37 = vld [vmem:[%s7509_s5 + $0x1a8] sm:$0xff] }
 0x84f   : > { %5412 = vmatpush3.bf16.msra.mxu0 %v5411_v45  ;;  %4833 = vmatprep.mubr.msk.f32.mxu0 %vm5844_vm9, %v5845_v38 }
 0x850   : > { %v1450_v18 = vmul.f32 %v5678_v54, %v1445_v35  ;;  %v1441_v44 = vsub.f32 2.0, %v1436_v42  ;;  %5416 = vmatprep.subr.bf16.mxu0 %v5843_v9  ;;  %v4055_v35 = vld [vmem:[%s7509_s5 + $0x98] sm:$0xff] }
 0x851   : > { %v5692_v60 = vpop.eup %5691 }
 0x852   : > { %v1446_v27 = vmul.f32 %v5690_v39, %v1441_v44  ;;  %v1437_v4 = vmul.f32 %v5692_v60, %v1425_v63  ;;  %4818 = vmatmul.mubr.msk.f32.vlgmr.msra.gmra.mrb[40].mxu1 %vm774_vm13, %v1450_v18  ;;  %v4054_v39 = vld [vmem:[%s7509_s5 + $0x90] sm:$0xff]  ;;  %v4056_v44 = vld [vmem:[%s7509_s5 + $0xa0] sm:$0xff] }
 0x853   : > { %4820 = vmatprep.mubr.msk.f32.mxu1 %vm5844_vm9, %v5845_v38  ;;  %5415 = vmatpush3.bf16.msra.mxu1 %v5414_v43  ;;  %v5420_v18 = vpack.c.bf16 %v4055_v35, %v4054_v39  ;;  %v4085_v39 = vld [vmem:[%s7509_s5 + $0x2b8] sm:$0xff] }
 0x854   : > { %v1451_v1 = vmul.f32 %v5680_v34, %v1446_v27  ;;  %v1442_v62 = vsub.f32 2.0, %v1437_v4  ;;  %5428 = vmatprep.subr.bf16.mxu1 %v5843_v9 }
 0x855   : > { %v5694_v26 = vpop.eup %5693 }
 0x856   : > { %v1447_v32 = vmul.f32 %v5692_v60, %v1442_v62  ;;  %v1438_v33 = vmul.f32 %v5694_v26, %v1428_v5  ;;  %4821 = vmatmul.mubr.msk.f32.gmra.mrb[42].mxu1 %vm774_vm13, %v1451_v1  ;;  %v4067_v5 = vld [vmem:[%s7509_s5 + $0x190] sm:$0xff]  ;;  %v4057_v60 = vld [vmem:[%s7509_s5 + $0xa8] sm:$0xff] }
 0x857   : > { %4823 = vmatprep.mubr.msk.f32.mxu1 %vm5844_vm9, %v5845_v38  ;;  %v5423_v1 = vpack.c.bf16 %v4057_v60, %v4056_v44  ;;  %v4058_v62 = vld [vmem:[%s7509_s5 + $0xb0] sm:$0xff] }
 0x858   : > { %v1452_v54 = vmul.f32 %v5682_v36, %v1447_v32  ;;  %v1443_v63 = vsub.f32 2.0, %v1438_v33  ;;  %v5429_v36 = vpack.c.bf16 %v4066_v11, %v4065_v14  ;;  %v4079_v14 = vld [vmem:[%s7509_s5 + $0x288] sm:$0xff] }
 0x85a   : > { %v1448_v7 = vmul.f32 %v5694_v26, %v1443_v63  ;;  %4824 = vmatmul.mubr.msk.f32.gmra.mrb[44].mxu1 %vm774_vm13, %v1452_v54  ;;  %v4059_v26 = vld [vmem:[%s7509_s5 + $0xb8] sm:$0xff] }
 0x85b   : > { %4826 = vmatprep.mubr.msk.f32.mxu1 %vm5844_vm9, %v5845_v38  ;;  %v5426_v54 = vpack.c.bf16 %v4059_v26, %v4058_v62 }
 0x85c   : > { %v1453_v34 = vmul.f32 %v5684_v40, %v1448_v7  ;;  %v4068_v40 = vld [vmem:[%s7509_s5 + $0x198] sm:$0xff] }
 0x85d   : > { %v5432_v45 = vpack.c.bf16 %v4068_v40, %v4067_v5  ;;  %v4080_v40 = vld [vmem:[%s7509_s5 + $0x290] sm:$0xff] }
 0x85e   : > { %4827 = vmatmul.mubr.msk.f32.gmra.mrb[46].mxu1 %vm774_vm13, %v1453_v34  ;;  %v4078_v34 = vld [vmem:[%s7509_s5 + $0x280] sm:$0xff] }
 0x85f   : > { %4852 = vmatprep.mubr.msk.f32.mxu1 %vm5844_vm9, %v5845_v38  ;;  %v5441_v5 = vpack.c.bf16 %v4079_v14, %v4078_v34 }
 0x862   : > { %4853 = vmatmul.mubr.msk.f32.vlgmr.msra.gmra.mrb[48].mxu1 %vm643_vm10, %v6545_v13  ;;  %v5435_v13 = vpack.c.bf16 %v4070_v37, %v4069_v19 }
 0x863   : > { %4855 = vmatprep.mubr.msk.f32.mxu1 %vm5844_vm9, %v5845_v38  ;;  %5430 = vmatpush3.bf16.msra.mxu1 %v5429_v36 }
 0x864   : > { %5431 = vmatprep.subr.bf16.mxu1 %v5843_v9 }
 0x866   : > { %4856 = vmatmul.mubr.msk.f32.gmra.mrb[50].mxu1 %vm643_vm10, %v6547_v24  ;;  %v5438_v24 = vpack.c.bf16 %v4072_v25, %v4071_v31  ;;  %v4082_v31 = vld [vmem:[%s7509_s5 + $0x2a0] sm:$0xff]  ;;  %v4083_v25 = vld [vmem:[%s7509_s5 + $0x2a8] sm:$0xff] }
 0x867   : > { %4858 = vmatprep.mubr.msk.f32.mxu1 %vm5844_vm9, %v5845_v38  ;;  %5433 = vmatpush3.bf16.msra.mxu1 %v5432_v45  ;;  %v4081_v45 = vld [vmem:[%s7509_s5 + $0x298] sm:$0xff] }
 0x868   : > { %5434 = vmatprep.subr.bf16.mxu1 %v5843_v9 }
 0x86a   : > { %4859 = vmatmul.mubr.msk.f32.gmra.mrb[52].mxu1 %vm643_vm10, %v6549_v20  ;;  %v4052_v20 = vld [vmem:[%s7509_s5 + $0x80] sm:$0xff] }
 0x86b   : > { %4861 = vmatprep.mubr.msk.f32.mxu1 %vm5844_vm9, %v5845_v38  ;;  %5436 = vmatpush3.bf16.msra.mxu1 %v5435_v13  ;;  %v5444_v13 = vpack.c.bf16 %v4081_v45, %v4080_v40 }
 0x86c   : > { %5437 = vmatprep.subr.bf16.mxu1 %v5843_v9 }
 0x86e   : > { %4862 = vmatmul.mubr.msk.f32.gmra.mrb[54].mxu1 %vm643_vm10, %v6551_v15  ;;  %v4053_v15 = vld [vmem:[%s7509_s5 + $0x88] sm:$0xff] }
 0x86f   : > { %4864 = vmatprep.mubr.msk.f32.mxu1 %vm5844_vm9, %v5845_v38  ;;  %5439 = vmatpush3.bf16.msra.mxu1 %v5438_v24 }
 0x870   : > { %5452 = vmatprep.subr.bf16.mxu1 %v5843_v9 }
 0x872   : > { %4865 = vmatmul.mubr.msk.f32.gmra.mrb[56].mxu1 %vm643_vm10, %v6553_v29  ;;  %v5417_v29 = vpack.c.bf16 %v4053_v15, %v4052_v20  ;;  %v5447_v15 = vpack.c.bf16 %v4083_v25, %v4082_v31 }
 0x873   : > { %4914 = vmatprep.mubr.msk.f32.mxu1 %vm5844_vm9, %v5845_v38 }
 0x876   : > { %4915 = vmatmul.mubr.msk.f32.vlgmr.msra.gmra.mrb[58].mxu1 %vm242_vm7, %v6207_v21 }
 0x877   : > { %4917 = vmatprep.mubr.msk.f32.mxu1 %vm5844_vm9, %v5845_v38 }
 0x87a   : > { %4918 = vmatmul.mubr.msk.f32.gmra.mrb[60].mxu1 %vm242_vm7, %v6228_v30 }
 0x87b   : > { %4920 = vmatprep.mubr.msk.f32.mxu1 %vm5844_vm9, %v5845_v38 }
 0x87e   : > { %4921 = vmatmul.mubr.msk.f32.gmra.mrb[62].mxu1 %vm242_vm7, %v6247_v41 }
 0x87f   : > { %4923 = vmatprep.mubr.msk.f32.mxu1 %vm5844_vm9, %v5845_v38 }
 0x882   : > { %4924 = vmatmul.mubr.msk.f32.gmra.mrb[64].mxu1 %vm242_vm7, %v6268_v46 }
 0x883   : > { %4926 = vmatprep.mubr.msk.f32.mxu1 %vm5844_vm9, %v5845_v38 }
 0x886   : > { %4927 = vmatmul.mubr.msk.f32.gmra.mrb[66].mxu1 %vm242_vm7, %v6280_v61 }
 0x887   : > { %4970 = vmatprep.mubr.msk.f32.mxu1 %vm5844_vm9, %v5845_v38 }
 0x921   : > { %v1538_v42 = vpop.f32.mrb[50].mxu0 }
 0x922   : > { %v4816_v43 = vpop.f32.mrb[51].mxu0  ;;  %4834 = vmatmul.mubr.msk.f32.vlgmr.msra.gmra.mrb[52].mxu0 %vm643_vm10, %v1538_v42 }
 0x923   : > { %4836 = vmatprep.mubr.msk.f32.mxu0 %vm5844_vm9, %v5845_v38  ;;  %5418 = vmatpush3.bf16.msra.mxu0 %v5417_v29  ;;  %v4084_v29 = vld [vmem:[%s7509_s5 + $0x2b0] sm:$0xff] }
 0x924   : > { %5419 = vmatprep.subr.bf16.mxu0 %v5843_v9  ;;  %v5450_v43 = vpack.c.bf16 %v4085_v39, %v4084_v29 }
 0x925   : > { %v1543_v27 = vpop.f32.mrb[40].mxu1 }
 0x926   : > { %v4819_v4 = vpop.f32.mrb[41].mxu1  ;;  %4837 = vmatmul.mubr.msk.f32.gmra.mrb[54].mxu0 %vm643_vm10, %v1543_v27 }
 0x927   : > { %4839 = vmatprep.mubr.msk.f32.mxu0 %vm5844_vm9, %v5845_v38  ;;  %5421 = vmatpush3.bf16.msra.mxu0 %v5420_v18 }
 0x928   : > { %5422 = vmatprep.subr.bf16.mxu0 %v5843_v9 }
 0x929   : > { %v1548_v32 = vpop.f32.mrb[42].mxu1 }
 0x92a   : > { %v4822_v33 = vpop.f32.mrb[43].mxu1  ;;  %4840 = vmatmul.mubr.msk.f32.gmra.mrb[56].mxu0 %vm643_vm10, %v1548_v32 }
 0x92b   : > { %4842 = vmatprep.mubr.msk.f32.mxu0 %vm5844_vm9, %v5845_v38  ;;  %5424 = vmatpush3.bf16.msra.mxu0 %v5423_v1 }
 0x92c   : > { %5425 = vmatprep.subr.bf16.mxu0 %v5843_v9 }
 0x92d   : > { %v1553_v63 = vpop.f32.mrb[44].mxu1 }
 0x92e   : > { %v4825_v7 = vpop.f32.mrb[45].mxu1  ;;  %4843 = vmatmul.mubr.msk.f32.gmra.mrb[58].mxu0 %vm643_vm10, %v1553_v63 }
 0x92f   : > { %4845 = vmatprep.mubr.msk.f32.mxu0 %vm5844_vm9, %v5845_v38  ;;  %5427 = vmatpush3.bf16.msra.mxu0 %v5426_v54 }
 0x930   : > { %5440 = vmatprep.subr.bf16.mxu0 %v5843_v9 }
 0x931   : > { %v1558_v11 = vpop.f32.mrb[46].mxu1 }
 0x932   : > { %v4828_v36 = vpop.f32.mrb[47].mxu1  ;;  %4846 = vmatmul.mubr.msk.f32.gmra.mrb[60].mxu0 %vm643_vm10, %v1558_v11 }
 0x933   : > { %4883 = vmatprep.mubr.msk.f32.mxu0 %vm5844_vm9, %v5845_v38 }
 0x935   : > { %v6757_v19 = vpop.f32.mrb[48].mxu1 }
 0x936   : > { %v4854_v37 = vpop.f32.mrb[49].mxu1  ;;  %4884 = vmatmul.mubr.msk.f32.vlgmr.msra.gmra.mrb[62].mxu0 %vm242_vm7, %v6207_v21 }
 0x937   : > { %4886 = vmatprep.mubr.msk.f32.mxu0 %vm5844_vm9, %v5845_v38  ;;  %5442 = vmatpush3.bf16.msra.mxu0 %v5441_v5 }
 0x938   : > { %5443 = vmatprep.subr.bf16.mxu0 %v5843_v9 }
 0x939   : > { %v1756_v24 = vpop.f32.mrb[50].mxu1 }
 0x93a   : > { %v4857_v20 = vpop.f32.mrb[51].mxu1  ;;  %4887 = vmatmul.mubr.msk.f32.gmra.mrb[64].mxu0 %vm242_vm7, %v6228_v30 }
 0x93b   : > { %4889 = vmatprep.mubr.msk.f32.mxu0 %vm5844_vm9, %v5845_v38  ;;  %5445 = vmatpush3.bf16.msra.mxu0 %v5444_v13 }
 0x93c   : > { %5446 = vmatprep.subr.bf16.mxu0 %v5843_v9 }
 0x93d   : > { %v1761_v35 = vpop.f32.mrb[52].mxu1 }
 0x93e   : > { %v4860_v42 = vpop.f32.mrb[53].mxu1  ;;  %4890 = vmatmul.mubr.msk.f32.gmra.mrb[66].mxu0 %vm242_vm7, %v6247_v41 }
 0x93f   : > { %4892 = vmatprep.mubr.msk.f32.mxu0 %vm5844_vm9, %v5845_v38  ;;  %5448 = vmatpush3.bf16.msra.mxu0 %v5447_v15 }
 0x940   : > { %5449 = vmatprep.subr.bf16.mxu0 %v5843_v9 }
 0x941   : > { %v1766_v18 = vpop.f32.mrb[54].mxu1 }
 0x942   : > { %v4863_v44 = vpop.f32.mrb[55].mxu1  ;;  %4893 = vmatmul.mubr.msk.f32.gmra.mrb[68].mxu0 %vm242_vm7, %v6268_v46 }
 0x943   : > { %4895 = vmatprep.mubr.msk.f32.mxu0 %vm5844_vm9, %v5845_v38  ;;  %5451 = vmatpush3.bf16.msra.mxu0 %v5450_v43 }
 0x944   : > { %5460 = vmatprep.subr.bf16.mxu0 %v5843_v9 }
 0x945   : > { %v1771_v60 = vpop.f32.mrb[56].mxu1 }
 0x946   : > { %v4866_v27 = vpop.f32.mrb[57].mxu1  ;;  %4896 = vmatmul.mubr.msk.f32.gmra.mrb[70].mxu0 %vm242_vm7, %v6280_v61 }
 0x947   : > { %4945 = vmatprep.mubr.msk.f32.mxu0 %vm5844_vm9, %v5845_v38 }
 0x949   : > { %v1949_v4 = vpop.f32.mrb[58].mxu1 }
 0x94a   : > { %v4916_v1 = vpop.f32.mrb[59].mxu1  ;;  %4946 = vmatmul.mubr.msk.f32.vlgmr.msra.gmra.mrb[72].mxu0 %vm242_vm7, %v6207_v21 }
 0x94b   : > { %4948 = vmatprep.mubr.msk.f32.mxu0 %vm5844_vm9, %v5845_v38 }
 0x94d   : > { %v1954_v62 = vpop.f32.mrb[60].mxu1 }
 0x94e   : > { %v5453_v26 = vpack.c.bf16 %v1954_v62, %v1949_v4  ;;  %v4919_v32 = vpop.f32.mrb[61].mxu1  ;;  %4949 = vmatmul.mubr.msk.f32.gmra.mrb[74].mxu0 %vm242_vm7, %v6228_v30 }
 0x94f   : > { %4951 = vmatprep.mubr.msk.f32.mxu0 %vm5844_vm9, %v5845_v38 }
 0x950   : > { %5455 = vmatpush3.bf16.xpose.msk.msra.mxu1 %vm6313_vm11, %v5453_v26 }
 0x951   : > { %v1959_v33 = vpop.f32.mrb[62].mxu1  ;;  %5456 = vmatprep.subr.bf16.mxu1 %v5843_v9 }
 0x952   : > { %v4922_v54 = vpop.f32.mrb[63].mxu1  ;;  %4952 = vmatmul.mubr.msk.f32.gmra.mrb[76].mxu0 %vm242_vm7, %v6247_v41 }
 0x953   : > { %4954 = vmatprep.mubr.msk.f32.mxu0 %vm5844_vm9, %v5845_v38 }
 0x955   : > { %v1964_v63 = vpop.f32.mrb[64].mxu1 }
 0x956   : > { %v5457_v7 = vpack.c.bf16 %v1964_v63, %v1959_v33  ;;  %v4925_v34 = vpop.f32.mrb[65].mxu1  ;;  %4955 = vmatmul.mubr.msk.f32.gmra.mrb[78].mxu0 %vm242_vm7, %v6268_v46 }
 0x957   : > { %4957 = vmatprep.mubr.msk.f32.mxu0 %vm5844_vm9, %v5845_v38 }
 0x958   : > { %5459 = vmatpush3.bf16.xpose.msk.msra.mxu1 %vm6313_vm11, %v5457_v7 }
 0x959   : > { %v1969_v14 = vpop.f32.mrb[66].mxu1  ;;  %4968 = vmatprep.subr.mxu1 %v5845_v38 }
 0x95a   : > { %v4928_v11 = vpop.f32.mrb[67].mxu1  ;;  %4958 = vmatmul.mubr.msk.f32.gmra.mrb[80].mxu0 %vm242_vm7, %v6280_v61 }
 0x95b   : > { %4995 = vmatprep.mubr.msk.f32.mxu0 %vm5844_vm9, %v5845_v38 }
 0x960   : > { %4969 = vmatpush3.xpose.msk.msra.mxu1 %vm643_vm10, %v1969_v14 }
 0x961   : > { %5466 = vmatprep.subr.bf16.mxu1 %v5843_v9 }
 0x9f5   : > { %v1646_v36 = vpop.f32.mrb[52].mxu0 }
 0x9f6   : > { %v6824_v5 = vadd.f32 %v6757_v19, %v1646_v36  ;;  %v4835_v40 = vpop.f32.mrb[53].mxu0 }
 0x9f9   : > { %v1651_v45 = vpop.f32.mrb[54].mxu0 }
 0x9fa   : > { %v6826_v37 = vadd.f32 %v1756_v24, %v1651_v45  ;;  %v4838_v13 = vpop.f32.mrb[55].mxu0 }
 0x9fd   : > { %v1656_v31 = vpop.f32.mrb[56].mxu0 }
 0x9fe   : > { %v6828_v25 = vadd.f32 %v1761_v35, %v1656_v31  ;;  %v4841_v20 = vpop.f32.mrb[57].mxu0 }
 0xa01   : > { %v1661_v15 = vpop.f32.mrb[58].mxu0 }
 0xa02   : > { %v6830_v29 = vadd.f32 %v1766_v18, %v1661_v15  ;;  %v4844_v39 = vpop.f32.mrb[59].mxu0 }
 0xa05   : > { %v1666_v42 = vpop.f32.mrb[60].mxu0 }
 0xa06   : > { %v6832_v43 = vadd.f32 %v1771_v60, %v1666_v42  ;;  %v4847_v44 = vpop.f32.mrb[61].mxu0 }
 0xa09   : > { %v1850_v27 = vpop.f32.mrb[62].mxu0 }
 0xa0a   : > { %v4885_v19 = vpop.f32.mrb[63].mxu0  ;;  %4971 = vmatmul.mubr.msk.f32.vlgmr.msra.gmra.mrb[68].mxu1 %vm643_vm10, %v1850_v27 }
 0xa0b   : > { %4973 = vmatprep.mubr.msk.f32.mxu1 %vm5844_vm9, %v5845_v38 }
 0xa0d   : > { %v1855_v24 = vpop.f32.mrb[64].mxu0 }
 0xa0e   : > { %v4888_v4 = vpop.f32.mrb[65].mxu0  ;;  %4974 = vmatmul.mubr.msk.f32.gmra.mrb[70].mxu1 %vm643_vm10, %v1855_v24 }
 0xa0f   : > { %4976 = vmatprep.mubr.msk.f32.mxu1 %vm5844_vm9, %v5845_v38 }
 0xa11   : > { %v1860_v35 = vpop.f32.mrb[66].mxu0 }
 0xa12   : > { %v4891_v18 = vpop.f32.mrb[67].mxu0  ;;  %4977 = vmatmul.mubr.msk.f32.gmra.mrb[72].mxu1 %vm643_vm10, %v1860_v35 }
 0xa13   : > { %4979 = vmatprep.mubr.msk.f32.mxu1 %vm5844_vm9, %v5845_v38 }
 0xa15   : > { %v1865_v60 = vpop.f32.mrb[68].mxu0 }
 0xa16   : > { %v4894_v1 = vpop.f32.mrb[69].mxu0  ;;  %4980 = vmatmul.mubr.msk.f32.gmra.mrb[74].mxu1 %vm643_vm10, %v1865_v60 }
 0xa17   : > { %4982 = vmatprep.mubr.msk.f32.mxu1 %vm5844_vm9, %v5845_v38 }
 0xa19   : > { %v1870_v62 = vpop.f32.mrb[70].mxu0 }
 0xa1a   : > { %v4897_v26 = vpop.f32.mrb[71].mxu0  ;;  %4983 = vmatmul.mubr.msk.f32.gmra.mrb[76].mxu1 %vm643_vm10, %v1870_v62 }
 0xa1b   : > { %5014 = vmatprep.mubr.msk.f32.mxu1 %vm5844_vm9, %v5845_v38 }
 0xa1d   : > { %v2048_v32 = vpop.f32.mrb[72].mxu0 }
 0xa1e   : > { %v4947_v33 = vpop.f32.mrb[73].mxu0 }
 0xa21   : > { %v2053_v54 = vpop.f32.mrb[74].mxu0 }
 0xa22   : > { %v5461_v63 = vpack.c.bf16 %v2053_v54, %v2048_v32  ;;  %v4950_v7 = vpop.f32.mrb[75].mxu0 }
 0xa24   : > { %5462 = vmatpush3.bf16.msra.mxu0 %v5461_v63 }
 0xa25   : > { %v2058_v34 = vpop.f32.mrb[76].mxu0  ;;  %5463 = vmatprep.subr.bf16.mxu0 %v5843_v9 }
 0xa26   : > { %v4953_v14 = vpop.f32.mrb[77].mxu0 }
 0xa29   : > { %v2063_v11 = vpop.f32.mrb[78].mxu0 }
 0xa2a   : > { %v5464_v36 = vpack.c.bf16 %v2063_v11, %v2058_v34  ;;  %v4956_v40 = vpop.f32.mrb[79].mxu0 }
 0xa2c   : > { %5465 = vmatpush3.bf16.msra.mxu0 %v5464_v36 }
 0xa2d   : > { %v2068_v45 = vpop.f32.mrb[80].mxu0  ;;  %4993 = vmatprep.subr.mxu0 %v5845_v38 }
 0xa2e   : > { %v4959_v13 = vpop.f32.mrb[81].mxu0 }
 0xa30   : > { %4994 = vmatpush3.msk.msra.mxu0 %vm861_vm12, %v2068_v45 }
 0xa31   : > { %5469 = vmatprep.subr.bf16.mxu0 %v5843_v9 }
 0xadd   : > { %v2168_v31 = vpop.f32.mrb[68].mxu1 }
 0xade   : > { %v2192_v20 = vmul.f32 0.25, %v2168_v31  ;;  %v4972_v15 = vpop.f32.mrb[69].mxu1 }
 0xae0   : > { %v2197_v39 = vadd.f32 %v2192_v20, %v6041_v55 }
 0xae1   : > { %v2173_v42 = vpop.f32.mrb[70].mxu1 }
 0xae2   : > { %v2193_v44 = vmul.f32 0.25, %v2173_v42  ;;  %v4975_v27 = vpop.f32.mrb[71].mxu1  ;;  %v2202_v19 = vsel %vm774_vm13, %v2197_v39, -inf }
 0xae3   : > { %2203 = vmax.xlane.f32.xlu0 %v2202_v19 }
 0xae4   : > { %v2198_v24 = vadd.f32 %v2193_v44, %v6043_v56 }
 0xae5   : > { %v2178_v4 = vpop.f32.mrb[72].mxu1 }
 0xae6   : > { %v2194_v35 = vmul.f32 0.25, %v2178_v4  ;;  %v4978_v18 = vpop.f32.mrb[73].mxu1  ;;  %v2205_v60 = vsel %vm774_vm13, %v2198_v24, -inf }
 0xae7   : > { %2206 = vmax.xlane.f32.xlu1 %v2205_v60 }
 0xae8   : > { %v2199_v1 = vadd.f32 %v2194_v35, %v6045_v57 }
 0xae9   : > { %v2183_v62 = vpop.f32.mrb[74].mxu1 }
 0xaea   : > { %v2195_v26 = vmul.f32 0.25, %v2183_v62  ;;  %v4981_v32 = vpop.f32.mrb[75].mxu1  ;;  %v2208_v33 = vsel %vm774_vm13, %v2199_v1, -inf }
 0xaeb   : > { %2209 = vmax.xlane.f32.xlu0 %v2208_v33 }
 0xaec   : > { %v2200_v54 = vadd.f32 %v2195_v26, %v6047_v58 }
 0xaed   : > { %v2188_v63 = vpop.f32.mrb[76].mxu1 }
 0xaee   : > { %v2196_v7 = vmul.f32 0.25, %v2188_v63  ;;  %v4984_v34 = vpop.f32.mrb[77].mxu1  ;;  %v2211_v14 = vsel %vm774_vm13, %v2200_v54, -inf }
 0xaef   : > { %2212 = vmax.xlane.f32.xlu1 %v2211_v14  ;;  %v4107_v14 = vld [vmem:[%s7510_s6 + $0x20] sm:$0xff] }
 0xaf0   : > { %v2201_v11 = vadd.f32 %v2196_v7, %v6049_v59 }
 0xaf2   : > { %v2214_v36 = vsel %vm787_vm14, %v2201_v11, -inf }
 0xaf3   : > { %2215 = vmax.xlane.f32.xlu0 %v2214_v36 }
 0xb70   : > { %v2204_v40 = vpop.xlane.xlu0 %2203 }
 0xb71   : > { %v2217_v45 = vsub.f32 %v2197_v39, %v2204_v40 }
 0xb73   : > { %v2222_v13 = vmul.f32 1.442695, %v2217_v45 }
 0xb74   : > { %v2207_v31 = vpop.xlane.xlu1 %2206 }
 0xb75   : > { %5695 = vpow2.f32 %v2222_v13  ;;  %v2218_v20 = vsub.f32 %v2198_v24, %v2207_v31 }
 0xb77   : > { %v2224_v15 = vmul.f32 1.442695, %v2218_v20 }
 0xb78   : > { %v2210_v42 = vpop.xlane.xlu0 %2209 }
 0xb79   : > { %5697 = vpow2.f32 %v2224_v15  ;;  %v2219_v44 = vsub.f32 %v2199_v1, %v2210_v42 }
 0xb7b   : > { %v2226_v27 = vmul.f32 1.442695, %v2219_v44  ;;  %v4114_v44 = vld [vmem:[%s7509_s5 + $0xc0] sm:$0xff] }
 0xb7c   : > { %v2213_v19 = vpop.xlane.xlu1 %2212 }
 0xb7d   : > { %5699 = vpow2.f32 %v2226_v27  ;;  %v2220_v4 = vsub.f32 %v2200_v54, %v2213_v19  ;;  %v4115_v27 = vld [vmem:[%s7509_s5 + $0xc8] sm:$0xff] }
 0xb7f   : > { %v5696_v35 = vpop.eup %5695  ;;  %v2228_v18 = vmul.f32 1.442695, %v2220_v4 }
 0xb80   : > { %v2216_v60 = vpop.xlane.xlu0 %2215  ;;  %v2232_v62 = vsel %vm774_vm13, %v5696_v35, 0.0 }
 0xb81   : > { %5701 = vpow2.f32 %v2228_v18  ;;  %v2221_v26 = vsub.f32 %v2201_v11, %v2216_v60  ;;  %2233 = vadd.xlane.f32.xlu1 %v2232_v62  ;;  %v4108_v11 = vld [vmem:[%s7510_s6 + $0x28] sm:$0xff]  ;;  %v5470_v62 = vpack.c.bf16 %v4115_v27, %v4114_v44  ;;  %v4120_v27 = vld [vmem:[%s7509_s5 + $0xf0] sm:$0xff] }
 0xb82   : > { %v5467_v36 = vpack.c.bf16 %v4108_v11, %v4107_v14 }
 0xb83   : > { %v5698_v39 = vpop.eup %5697  ;;  %v2230_v32 = vmul.f32 1.442695, %v2221_v26 }
 0xb84   : > { %v2235_v24 = vsel %vm774_vm13, %v5698_v39, 0.0  ;;  %5468 = vmatpush3.bf16.msra.mxu1 %v5467_v36 }
 0xb85   : > { %5703 = vpow2.f32 %v2230_v32  ;;  %2236 = vadd.xlane.f32.xlu0 %v2235_v24  ;;  %5481 = vmatprep.subr.bf16.mxu1 %v5843_v9  ;;  %v4116_v24 = vld [vmem:[%s7509_s5 + $0xd0] sm:$0xff] }
 0xb87   : > { %v5700_v33 = vpop.eup %5699 }
 0xb88   : > { %v2238_v1 = vsel %vm774_vm13, %v5700_v33, 0.0 }
 0xb89   : > { %2239 = vadd.xlane.f32.xlu1 %v2238_v1  ;;  %v4117_v1 = vld [vmem:[%s7509_s5 + $0xd8] sm:$0xff] }
 0xb8a   : > { %v5473_v11 = vpack.c.bf16 %v4117_v1, %v4116_v24  ;;  %v4140_v24 = vld [vmem:[%s7509_s5 + $0x2c0] sm:$0xff] }
 0xb8b   : > { %v6866_v63 = vpop.eup %5701 }
 0xb8c   : > { %v2241_v54 = vsel %vm774_vm13, %v6866_v63, 0.0 }
 0xb8d   : > { %2242 = vadd.xlane.f32.xlu0 %v2241_v54 }
 0xb8f   : > { %v6870_v7 = vpop.eup %5703 }
 0xb90   : > { %v2244_v34 = vsel %vm787_vm14, %v6870_v7, 0.0 }
 0xb91   : > { %2245 = vadd.xlane.f32.xlu1 %v2244_v34 }
 0xc0e   : > { %v2234_v40 = vpop.xlane.xlu1 %2233 }
 0xc0f   : > { %5705 = vrcp.f32 %v2234_v40 }
 0xc12   : > { %v2237_v45 = vpop.xlane.xlu0 %2236 }
 0xc13   : > { %5707 = vrcp.f32 %v2237_v45 }
 0xc16   : > { %v2240_v13 = vpop.xlane.xlu1 %2239 }
 0xc17   : > { %5709 = vrcp.f32 %v2240_v13 }
 0xc19   : > { %v5706_v31 = vpop.eup %5705 }
 0xc1a   : > { %v2252_v20 = vmul.f32 %v5706_v31, %v2234_v40  ;;  %v2243_v15 = vpop.xlane.xlu0 %2242  ;;  %v4118_v40 = vld [vmem:[%s7509_s5 + $0xe0] sm:$0xff] }
 0xc1b   : > { %5711 = vrcp.f32 %v2243_v15 }
 0xc1c   : > { %v2257_v42 = vsub.f32 2.0, %v2252_v20 }
 0xc1d   : > { %v5708_v19 = vpop.eup %5707 }
 0xc1e   : > { %v2262_v4 = vmul.f32 %v5706_v31, %v2257_v42  ;;  %v2253_v18 = vmul.f32 %v5708_v19, %v2237_v45  ;;  %v2246_v60 = vpop.xlane.xlu1 %2245  ;;  %v4119_v45 = vld [vmem:[%s7509_s5 + $0xe8] sm:$0xff] }
 0xc1f   : > { %5713 = vrcp.f32 %v2246_v60 }
 0xc20   : > { %v2267_v26 = vmul.f32 %v5696_v35, %v2262_v4  ;;  %v2258_v32 = vsub.f32 2.0, %v2253_v18 }
 0xc21   : > { %v5710_v54 = vpop.eup %5709 }
 0xc22   : > { %v2263_v34 = vmul.f32 %v5708_v19, %v2258_v32  ;;  %v2254_v14 = vmul.f32 %v5710_v54, %v2240_v13  ;;  %4996 = vmatmul.mubr.msk.f32.vlgmr.msra.gmra.mrb[82].mxu0 %vm774_vm13, %v2267_v26  ;;  %v4121_v19 = vld [vmem:[%s7509_s5 + $0xf8] sm:$0xff] }
 0xc23   : > { %4998 = vmatprep.mubr.msk.f32.mxu0 %vm5844_vm9, %v5845_v38  ;;  %5471 = vmatpush3.bf16.msra.mxu0 %v5470_v62 }
 0xc24   : > { %v2268_v35 = vmul.f32 %v5698_v39, %v2263_v34  ;;  %v2259_v36 = vsub.f32 2.0, %v2254_v14  ;;  %5472 = vmatprep.subr.bf16.mxu0 %v5843_v9  ;;  %v5476_v39 = vpack.c.bf16 %v4119_v45, %v4118_v40  ;;  %v4144_v14 = vld [vmem:[%s7509_s5 + $0x2e0] sm:$0xff]  ;;  %v4147_v40 = vld [vmem:[%s7509_s5 + $0x2f8] sm:$0xff] }
 0xc25   : > { %v5712_v13 = vpop.eup %5711 }
 0xc26   : > { %v2264_v31 = vmul.f32 %v5710_v54, %v2259_v36  ;;  %v2255_v20 = vmul.f32 %v5712_v13, %v2243_v15  ;;  %4999 = vmatmul.mubr.msk.f32.gmra.mrb[84].mxu0 %vm774_vm13, %v2268_v35  ;;  %v4143_v54 = vld [vmem:[%s7509_s5 + $0x2d8] sm:$0xff]  ;;  %v4146_v36 = vld [vmem:[%s7509_s5 + $0x2f0] sm:$0xff] }
 0xc27   : > { %5001 = vmatprep.mubr.msk.f32.mxu0 %vm5844_vm9, %v5845_v38  ;;  %5474 = vmatpush3.bf16.msra.mxu0 %v5473_v11  ;;  %v4145_v11 = vld [vmem:[%s7509_s5 + $0x2e8] sm:$0xff]  ;;  %v5503_v45 = vpack.c.bf16 %v4147_v40, %v4146_v36 }
 0xc28   : > { %v2269_v42 = vmul.f32 %v5700_v33, %v2264_v31  ;;  %v2260_v44 = vsub.f32 2.0, %v2255_v20  ;;  %5475 = vmatprep.subr.bf16.mxu0 %v5843_v9  ;;  %v5479_v33 = vpack.c.bf16 %v4121_v19, %v4120_v27  ;;  %v5500_v35 = vpack.c.bf16 %v4145_v11, %v4144_v14  ;;  %v4128_v31 = vld [vmem:[%s7509_s5 + $0x1c8] sm:$0xff] }
 0xc29   : > { %v5714_v15 = vpop.eup %5713 }
 0xc2a   : > { %v2265_v4 = vmul.f32 %v5712_v13, %v2260_v44  ;;  %v2256_v18 = vmul.f32 %v5714_v15, %v2246_v60  ;;  %5002 = vmatmul.mubr.msk.f32.gmra.mrb[86].mxu0 %vm774_vm13, %v2269_v42  ;;  %v4127_v13 = vld [vmem:[%s7509_s5 + $0x1c0] sm:$0xff]  ;;  %v4130_v42 = vld [vmem:[%s7509_s5 + $0x1d8] sm:$0xff] }
 0xc2b   : > { %5004 = vmatprep.mubr.msk.f32.mxu0 %vm5844_vm9, %v5845_v38  ;;  %5477 = vmatpush3.bf16.msra.mxu0 %v5476_v39  ;;  %v5482_v20 = vpack.c.bf16 %v4128_v31, %v4127_v13  ;;  %v4129_v39 = vld [vmem:[%s7509_s5 + $0x1d0] sm:$0xff] }
 0xc2c   : > { %v2270_v62 = vmul.f32 %v6866_v63, %v2265_v4  ;;  %v2261_v26 = vsub.f32 2.0, %v2256_v18  ;;  %5478 = vmatprep.subr.bf16.mxu0 %v5843_v9  ;;  %v4141_v63 = vld [vmem:[%s7509_s5 + $0x2c8] sm:$0xff]  ;;  %v5485_v19 = vpack.c.bf16 %v4130_v42, %v4129_v39 }
 0xc2d   : > { %v5494_v1 = vpack.c.bf16 %v4141_v63, %v4140_v24  ;;  %v4132_v4 = vld [vmem:[%s7509_s5 + $0x1e8] sm:$0xff] }
 0xc2e   : > { %v2266_v32 = vmul.f32 %v5714_v15, %v2261_v26  ;;  %5005 = vmatmul.mubr.msk.f32.gmra.mrb[88].mxu0 %vm774_vm13, %v2270_v62  ;;  %v4131_v15 = vld [vmem:[%s7509_s5 + $0x1e0] sm:$0xff]  ;;  %v4133_v26 = vld [vmem:[%s7509_s5 + $0x1f0] sm:$0xff] }
 0xc2f   : > { %5007 = vmatprep.mubr.msk.f32.mxu0 %vm5844_vm9, %v5845_v38  ;;  %5480 = vmatpush3.bf16.msra.mxu0 %v5479_v33  ;;  %v5488_v62 = vpack.c.bf16 %v4132_v4, %v4131_v15 }
 0xc30   : > { %v2271_v60 = vmul.f32 %v6870_v7, %v2266_v32  ;;  %5493 = vmatprep.subr.bf16.mxu0 %v5843_v9  ;;  %v4142_v7 = vld [vmem:[%s7509_s5 + $0x2d0] sm:$0xff]  ;;  %v4134_v32 = vld [vmem:[%s7509_s5 + $0x1f8] sm:$0xff] }
 0xc31   : > { %v5497_v34 = vpack.c.bf16 %v4143_v54, %v4142_v7  ;;  %v5491_v63 = vpack.c.bf16 %v4134_v32, %v4133_v26 }
 0xc32   : > { %5008 = vmatmul.mubr.msk.f32.gmra.mrb[90].mxu0 %vm774_vm13, %v2271_v60 }
 0xc33   : > { %5045 = vmatprep.mubr.msk.f32.mxu0 %vm5844_vm9, %v5845_v38 }
 0xc36   : > { %5046 = vmatmul.mubr.msk.f32.vlgmr.msra.gmra.mrb[92].mxu0 %vm242_vm7, %v6207_v21 }
 0xc37   : > { %5048 = vmatprep.mubr.msk.f32.mxu0 %vm5844_vm9, %v5845_v38  ;;  %5495 = vmatpush3.bf16.msra.mxu0 %v5494_v1 }
 0xc38   : > { %5496 = vmatprep.subr.bf16.mxu0 %v5843_v9 }
 0xc3a   : > { %5049 = vmatmul.mubr.msk.f32.gmra.mrb[94].mxu0 %vm242_vm7, %v6228_v30 }
 0xc3b   : > { %5051 = vmatprep.mubr.msk.f32.mxu0 %vm5844_vm9, %v5845_v38  ;;  %5498 = vmatpush3.bf16.msra.mxu0 %v5497_v34 }
 0xc3c   : > { %5499 = vmatprep.subr.bf16.mxu0 %v5843_v9 }
 0xc3e   : > { %5052 = vmatmul.mubr.msk.f32.gmra.mrb[96].mxu0 %vm242_vm7, %v6247_v41 }
 0xc3f   : > { %5054 = vmatprep.mubr.msk.f32.mxu0 %vm5844_vm9, %v5845_v38  ;;  %5501 = vmatpush3.bf16.msra.mxu0 %v5500_v35 }
 0xc40   : > { %5502 = vmatprep.subr.bf16.mxu0 %v5843_v9 }
 0xc42   : > { %5055 = vmatmul.mubr.msk.f32.gmra.mrb[98].mxu0 %vm242_vm7, %v6268_v46 }
 0xc43   : > { %5057 = vmatprep.mubr.msk.f32.mxu0 %vm5844_vm9, %v5845_v38  ;;  %5504 = vmatpush3.bf16.msra.mxu0 %v5503_v45 }
 0xc44   : > { %5513 = vmatprep.subr.bf16.mxu0 %v5843_v9 }
 0xc46   : > { %5058 = vmatmul.mubr.msk.f32.gmra.mrb[100].mxu0 %vm242_vm7, %v6280_v61 }
 0xc47   : > { %5107 = vmatprep.mubr.msk.f32.mxu0 %vm5844_vm9, %v5845_v38 }
 0xc4a   : > { %5108 = vmatmul.mubr.msk.f32.vlgmr.msra.gmra.mrb[102].mxu0 %vm242_vm7, %v6207_v21 }
 0xc4b   : > { %5110 = vmatprep.mubr.msk.f32.mxu0 %vm5844_vm9, %v5845_v38 }
 0xc4e   : > { %5111 = vmatmul.mubr.msk.f32.gmra.mrb[104].mxu0 %vm242_vm7, %v6228_v30 }
 0xc4f   : > { %5113 = vmatprep.mubr.msk.f32.mxu0 %vm5844_vm9, %v5845_v38 }
 0xc52   : > { %5114 = vmatmul.mubr.msk.f32.gmra.mrb[106].mxu0 %vm242_vm7, %v6247_v41 }
 0xc53   : > { %5116 = vmatprep.mubr.msk.f32.mxu0 %vm5844_vm9, %v5845_v38 }
 0xc56   : > { %5117 = vmatmul.mubr.msk.f32.gmra.mrb[108].mxu0 %vm242_vm7, %v6268_v46 }
 0xc57   : > { %5119 = vmatprep.mubr.msk.f32.mxu0 %vm5844_vm9, %v5845_v38 }
 0xc5a   : > { %5120 = vmatmul.mubr.msk.f32.gmra.mrb[110].mxu0 %vm242_vm7, %v6280_v61 }
 0xc5b   : > { %5157 = vmatprep.mubr.msk.f32.mxu0 %vm5844_vm9, %v5845_v38 }
 0xcf5   : > { %v2356_v44 = vpop.f32.mrb[82].mxu0 }
 0xcf6   : > { %v4997_v27 = vpop.f32.mrb[83].mxu0  ;;  %5015 = vmatmul.mubr.msk.f32.vlgmr.msra.gmra.mrb[78].mxu1 %vm643_vm10, %v2356_v44 }
 0xcf7   : > { %5017 = vmatprep.mubr.msk.f32.mxu1 %vm5844_vm9, %v5845_v38  ;;  %5483 = vmatpush3.bf16.msra.mxu1 %v5482_v20 }
 0xcf8   : > { %5484 = vmatprep.subr.bf16.mxu1 %v5843_v9 }
 0xcf9   : > { %v2361_v18 = vpop.f32.mrb[84].mxu0 }
 0xcfa   : > { %v5000_v33 = vpop.f32.mrb[85].mxu0  ;;  %5018 = vmatmul.mubr.msk.f32.gmra.mrb[80].mxu1 %vm643_vm10, %v2361_v18 }
 0xcfb   : > { %5020 = vmatprep.mubr.msk.f32.mxu1 %vm5844_vm9, %v5845_v38  ;;  %5486 = vmatpush3.bf16.msra.mxu1 %v5485_v19 }
 0xcfc   : > { %5487 = vmatprep.subr.bf16.mxu1 %v5843_v9 }
 0xcfd   : > { %v2366_v60 = vpop.f32.mrb[86].mxu0 }
 0xcfe   : > { %v5003_v24 = vpop.f32.mrb[87].mxu0  ;;  %5021 = vmatmul.mubr.msk.f32.gmra.mrb[82].mxu1 %vm643_vm10, %v2366_v60 }
 0xcff   : > { %5023 = vmatprep.mubr.msk.f32.mxu1 %vm5844_vm9, %v5845_v38  ;;  %5489 = vmatpush3.bf16.msra.mxu1 %v5488_v62 }
 0xd00   : > { %5490 = vmatprep.subr.bf16.mxu1 %v5843_v9 }
 0xd01   : > { %v2371_v1 = vpop.f32.mrb[88].mxu0 }
 0xd02   : > { %v5006_v7 = vpop.f32.mrb[89].mxu0  ;;  %5024 = vmatmul.mubr.msk.f32.gmra.mrb[84].mxu1 %vm643_vm10, %v2371_v1 }
 0xd03   : > { %5026 = vmatprep.mubr.msk.f32.mxu1 %vm5844_vm9, %v5845_v38  ;;  %5492 = vmatpush3.bf16.msra.mxu1 %v5491_v63 }
 0xd04   : > { %5505 = vmatprep.subr.bf16.mxu1 %v5843_v9 }
 0xd05   : > { %v2376_v54 = vpop.f32.mrb[90].mxu0 }
 0xd06   : > { %v5009_v34 = vpop.f32.mrb[91].mxu0  ;;  %5027 = vmatmul.mubr.msk.f32.gmra.mrb[86].mxu1 %vm643_vm10, %v2376_v54 }
 0xd07   : > { %5076 = vmatprep.mubr.msk.f32.mxu1 %vm5844_vm9, %v5845_v38 }
 0xd09   : > { %v7037_v14 = vpop.f32.mrb[92].mxu0 }
 0xd0a   : > { %v5047_v11 = vpop.f32.mrb[93].mxu0  ;;  %5077 = vmatmul.mubr.msk.f32.vlgmr.msra.gmra.mrb[88].mxu1 %vm242_vm7, %v6207_v21 }
 0xd0b   : > { %5079 = vmatprep.mubr.msk.f32.mxu1 %vm5844_vm9, %v5845_v38 }
 0xd0d   : > { %v7043_v35 = vpop.f32.mrb[94].mxu0 }
 0xd0e   : > { %v5050_v36 = vpop.f32.mrb[95].mxu0  ;;  %5080 = vmatmul.mubr.msk.f32.gmra.mrb[90].mxu1 %vm242_vm7, %v6228_v30 }
 0xd0f   : > { %5082 = vmatprep.mubr.msk.f32.mxu1 %vm5844_vm9, %v5845_v38 }
 0xd11   : > { %v7049_v40 = vpop.f32.mrb[96].mxu0 }
 0xd12   : > { %v5053_v45 = vpop.f32.mrb[97].mxu0  ;;  %5083 = vmatmul.mubr.msk.f32.gmra.mrb[92].mxu1 %vm242_vm7, %v6247_v41 }
 0xd13   : > { %5085 = vmatprep.mubr.msk.f32.mxu1 %vm5844_vm9, %v5845_v38 }
 0xd15   : > { %v7055_v21 = vpop.f32.mrb[98].mxu0 }
 0xd16   : > { %v5056_v13 = vpop.f32.mrb[99].mxu0  ;;  %5086 = vmatmul.mubr.msk.f32.gmra.mrb[94].mxu1 %vm242_vm7, %v6268_v46 }
 0xd17   : > { %5088 = vmatprep.mubr.msk.f32.mxu1 %vm5844_vm9, %v5845_v38 }
 0xd19   : > { %v7061_v30 = vpop.f32.mrb[100].mxu0 }
 0xd1a   : > { %v5059_v31 = vpop.f32.mrb[101].mxu0  ;;  %5089 = vmatmul.mubr.msk.f32.gmra.mrb[96].mxu1 %vm242_vm7, %v6280_v61 }
 0xd1b   : > { %5132 = vmatprep.mubr.msk.f32.mxu1 %vm5844_vm9, %v5845_v38 }
 0xd1d   : > { %v2766_v41 = vpop.f32.mrb[102].mxu0 }
 0xd1e   : > { %v5109_v20 = vpop.f32.mrb[103].mxu0 }
 0xd21   : > { %v2771_v39 = vpop.f32.mrb[104].mxu0 }
 0xd22   : > { %v5514_v42 = vpack.c.bf16 %v2771_v39, %v2766_v41  ;;  %v5112_v44 = vpop.f32.mrb[105].mxu0 }
 0xd24   : > { %5515 = vmatpush3.bf16.msra.mxu0 %v5514_v42 }
 0xd25   : > { %v2776_v27 = vpop.f32.mrb[106].mxu0  ;;  %5516 = vmatprep.subr.bf16.mxu0 %v5843_v9 }
 0xd26   : > { %v5115_v46 = vpop.f32.mrb[107].mxu0 }
 0xd29   : > { %v2781_v19 = vpop.f32.mrb[108].mxu0 }
 0xd2a   : > { %v5517_v15 = vpack.c.bf16 %v2781_v19, %v2776_v27  ;;  %v5118_v4 = vpop.f32.mrb[109].mxu0 }
 0xd2c   : > { %5518 = vmatpush3.bf16.msra.mxu0 %v5517_v15 }
 0xd2d   : > { %v2786_v18 = vpop.f32.mrb[110].mxu0  ;;  %5155 = vmatprep.subr.mxu0 %v5845_v38 }
 0xd2e   : > { %v5121_v61 = vpop.f32.mrb[111].mxu0 }
 0xd30   : > { %5156 = vmatpush3.msk.msra.mxu0 %vm861_vm12, %v2786_v18 }
 0xd31   : > { %5522 = vmatprep.subr.bf16.mxu0 %v5843_v9 }
 0xdc9   : > { %v2464_v33 = vpop.f32.mrb[78].mxu1 }
 0xdca   : > { %v7072_v62 = vadd.f32 %v2464_v33, %v6824_v5  ;;  %v5016_v26 = vpop.f32.mrb[79].mxu1 }
 0xdcd   : > { %v2469_v32 = vpop.f32.mrb[80].mxu1 }
 0xdce   : > { %v7075_v60 = vadd.f32 %v2469_v32, %v6826_v37  ;;  %v5019_v24 = vpop.f32.mrb[81].mxu1 }
 0xdd1   : > { %v2474_v63 = vpop.f32.mrb[82].mxu1 }
 0xdd2   : > { %v7078_v1 = vadd.f32 %v2474_v63, %v6828_v25  ;;  %v5022_v7 = vpop.f32.mrb[83].mxu1 }
 0xdd5   : > { %v2479_v54 = vpop.f32.mrb[84].mxu1 }
 0xdd6   : > { %v7081_v34 = vadd.f32 %v2479_v54, %v6830_v29  ;;  %v5025_v11 = vpop.f32.mrb[85].mxu1 }
 0xdd9   : > { %v2484_v36 = vpop.f32.mrb[86].mxu1 }
 0xdda   : > { %v7084_v5 = vadd.f32 %v2484_v36, %v6832_v43  ;;  %v5028_v45 = vpop.f32.mrb[87].mxu1 }
 0xddd   : > { %v2667_v13 = vpop.f32.mrb[88].mxu1 }
 0xdde   : > { %v5078_v31 = vpop.f32.mrb[89].mxu1 }
 0xde1   : > { %v2672_v37 = vpop.f32.mrb[90].mxu1 }
 0xde2   : > { %v5506_v41 = vpack.c.bf16 %v2672_v37, %v2667_v13  ;;  %v5081_v20 = vpop.f32.mrb[91].mxu1 }
 0xde4   : > { %5508 = vmatpush3.bf16.xpose.msk.msra.mxu1 %vm6313_vm11, %v5506_v41 }
 0xde5   : > { %v2677_v25 = vpop.f32.mrb[92].mxu1  ;;  %5509 = vmatprep.subr.bf16.mxu1 %v5843_v9 }
 0xde6   : > { %v5084_v39 = vpop.f32.mrb[93].mxu1 }
 0xde9   : > { %v2682_v29 = vpop.f32.mrb[94].mxu1 }
 0xdea   : > { %v5510_v42 = vpack.c.bf16 %v2682_v29, %v2677_v25  ;;  %v5087_v44 = vpop.f32.mrb[95].mxu1 }
 0xdec   : > { %5512 = vmatpush3.bf16.xpose.msk.msra.mxu1 %vm6313_vm11, %v5510_v42 }
 0xded   : > { %v2687_v43 = vpop.f32.mrb[96].mxu1  ;;  %5130 = vmatprep.subr.mxu1 %v5845_v38 }
 0xdee   : > { %v5090_v27 = vpop.f32.mrb[97].mxu1 }
 0xdf4   : > { %5131 = vmatpush3.xpose.msk.msra.mxu1 %vm643_vm10, %v2687_v43 }
 0xdf5   : > { %5519 = vmatprep.subr.bf16.mxu1 %v5843_v9 }
 0xdf7   : > { %5133 = vmatmul.mubr.msk.f32.vlgmr.msra.gmra.mrb[98].mxu1 %vm643_vm10, %v7037_v14 }
 0xdf8   : > { %5135 = vmatprep.mubr.msk.f32.mxu1 %vm5844_vm9, %v5845_v38 }
 0xdfb   : > { %5136 = vmatmul.mubr.msk.f32.gmra.mrb[100].mxu1 %vm643_vm10, %v7043_v35 }
 0xdfc   : > { %5138 = vmatprep.mubr.msk.f32.mxu1 %vm5844_vm9, %v5845_v38 }
 0xdff   : > { %5139 = vmatmul.mubr.msk.f32.gmra.mrb[102].mxu1 %vm643_vm10, %v7049_v40 }
 0xe00   : > { %5141 = vmatprep.mubr.msk.f32.mxu1 %vm5844_vm9, %v5845_v38 }
 0xe03   : > { %5142 = vmatmul.mubr.msk.f32.gmra.mrb[104].mxu1 %vm643_vm10, %v7055_v21 }
 0xe04   : > { %5144 = vmatprep.mubr.msk.f32.mxu1 %vm5844_vm9, %v5845_v38 }
 0xe07   : > { %5145 = vmatmul.mubr.msk.f32.gmra.mrb[106].mxu1 %vm643_vm10, %v7061_v30 }
 0xe08   : > { %5176 = vmatprep.mubr.msk.f32.mxu1 %vm5844_vm9, %v5845_v38 }
 0xeca   : > { %v2886_v8 = vpop.f32.mrb[98].mxu1 }
 0xecb   : > { %v2910_v14 = vmul.f32 0.25, %v2886_v8  ;;  %v5134_v35 = vpop.f32.mrb[99].mxu1 }
 0xecd   : > { %v2915_v40 = vadd.f32 %v2910_v14, %v6041_v55  ;;  %v3808_v55 = vld [vmem:[%s7520_s16 + $0x8] sm:$0xff] (%p233_p0) }
 0xece   : > { %v2891_v46 = vpop.f32.mrb[100].mxu1 }
 0xecf   : > { %v2911_v19 = vmul.f32 0.25, %v2891_v46  ;;  %v5137_v15 = vpop.f32.mrb[101].mxu1  ;;  %v2920_v4 = vsel %vm774_vm13, %v2915_v40, -inf }
 0xed0   : > { %2921 = vmax.xlane.f32.xlu0 %v2920_v4 }
 0xed1   : > { %v2916_v21 = vadd.f32 %v2911_v19, %v6043_v56 }
 0xed2   : > { %v2896_v18 = vpop.f32.mrb[102].mxu1 }
 0xed3   : > { %v2912_v61 = vmul.f32 0.25, %v2896_v18  ;;  %v5140_v33 = vpop.f32.mrb[103].mxu1  ;;  %v2923_v30 = vsel %vm774_vm13, %v2916_v21, -inf }
 0xed4   : > { %2924 = vmax.xlane.f32.xlu1 %v2923_v30 }
 0xed5   : > { %v2917_v26 = vadd.f32 %v2912_v61, %v6045_v57  ;;  %v3809_v57 = vld [vmem:[%s7520_s16 + $0x10] sm:$0xff] (%p233_p0) }
 0xed6   : > { %v2901_v32 = vpop.f32.mrb[104].mxu1 }
 0xed7   : > { %v2913_v24 = vmul.f32 0.25, %v2901_v32  ;;  %v5143_v63 = vpop.f32.mrb[105].mxu1  ;;  %v2926_v7 = vsel %vm774_vm13, %v2917_v26, -inf }
 0xed8   : > { %2927 = vmax.xlane.f32.xlu0 %v2926_v7  ;;  %v4169_v63 = vld [vmem:[%s7510_s6 + $0x30] sm:$0xff]  ;;  %v4170_v7 = vld [vmem:[%s7510_s6 + $0x38] sm:$0xff] }
 0xed9   : > { %v2918_v54 = vadd.f32 %v2913_v24, %v6047_v58  ;;  %v3810_v58 = vld [vmem:[%s7520_s16 + $0x18] sm:$0xff] (%p233_p0) }
 0xeda   : > { %v2906_v11 = vpop.f32.mrb[106].mxu1 }
 0xedb   : > { %v2914_v36 = vmul.f32 0.25, %v2906_v11  ;;  %v5146_v45 = vpop.f32.mrb[107].mxu1  ;;  %v2929_v13 = vsel %vm774_vm13, %v2918_v54, -inf }
 0xedc   : > { %2930 = vmax.xlane.f32.xlu1 %v2929_v13 }
 0xedd   : > { %v2919_v31 = vadd.f32 %v2914_v36, %v6049_v59  ;;  %v5568_v59 = vpack.c.bf16 (%p233_p0), %v3810_v58, %v3809_v57 }
 0xedf   : > { %v2932_v37 = vsel %vm787_vm14, %v2919_v31, -inf }
 0xee0   : > { %2933 = vmax.xlane.f32.xlu0 %v2932_v37 }
 0xf5d   : > { %v2922_v41 = vpop.xlane.xlu0 %2921 }
 0xf5e   : > { %v2935_v20 = vsub.f32 %v2915_v40, %v2922_v41 }
 0xf60   : > { %v2940_v25 = vmul.f32 1.442695, %v2935_v20 }
 0xf61   : > { %v2925_v39 = vpop.xlane.xlu1 %2924 }
 0xf62   : > { %5715 = vpow2.f32 %v2940_v25  ;;  %v2936_v29 = vsub.f32 %v2916_v21, %v2925_v39 }
 0xf64   : > { %v2942_v42 = vmul.f32 1.442695, %v2936_v29 }
 0xf65   : > { %v2928_v44 = vpop.xlane.xlu0 %2927 }
 0xf66   : > { %5717 = vpow2.f32 %v2942_v42  ;;  %v2937_v43 = vsub.f32 %v2917_v26, %v2928_v44 }
 0xf68   : > { %v2944_v27 = vmul.f32 1.442695, %v2937_v43 }
 0xf69   : > { %v2931_v8 = vpop.xlane.xlu1 %2930 }
 0xf6a   : > { %5719 = vpow2.f32 %v2944_v27  ;;  %v2938_v14 = vsub.f32 %v2918_v54, %v2931_v8  ;;  %v5520_v54 = vpack.c.bf16 %v4170_v7, %v4169_v63 }
 0xf6c   : > { %v5716_v35 = vpop.eup %5715  ;;  %v2946_v46 = vmul.f32 1.442695, %v2938_v14  ;;  %5521 = vmatpush3.bf16.msra.mxu1 %v5520_v54 }
 0xf6d   : > { %v2934_v19 = vpop.xlane.xlu0 %2933  ;;  %v2950_v15 = vsel %vm774_vm13, %v5716_v35, 0.0  ;;  %5534 = vmatprep.subr.bf16.mxu1 %v5843_v9 }
 0xf6e   : > { %5721 = vpow2.f32 %v2946_v46  ;;  %v2939_v4 = vsub.f32 %v2919_v31, %v2934_v19  ;;  %2951 = vadd.xlane.f32.xlu1 %v2950_v15 }
 0xf70   : > { %v5718_v40 = vpop.eup %5717  ;;  %v2948_v18 = vmul.f32 1.442695, %v2939_v4 }
 0xf71   : > { %v2953_v21 = vsel %vm774_vm13, %v5718_v40, 0.0 }
 0xf72   : > { %5723 = vpow2.f32 %v2948_v18  ;;  %2954 = vadd.xlane.f32.xlu0 %v2953_v21 }
 0xf74   : > { %v5720_v61 = vpop.eup %5719 }
 0xf75   : > { %v2956_v33 = vsel %vm774_vm13, %v5720_v61, 0.0 }
 0xf76   : > { %2957 = vadd.xlane.f32.xlu1 %v2956_v33 }
 0xf78   : > { %v5722_v30 = vpop.eup %5721 }
 0xf79   : > { %v2959_v26 = vsel %vm774_vm13, %v5722_v30, 0.0 }
 0xf7a   : > { %2960 = vadd.xlane.f32.xlu0 %v2959_v26 }
 0xf7c   : > { %v5724_v32 = vpop.eup %5723 }
 0xf7d   : > { %v2962_v24 = vsel %vm787_vm14, %v5724_v32, 0.0 }
 0xf7e   : > { %2963 = vadd.xlane.f32.xlu1 %v2962_v24 }
 0xffb   : > { %v2952_v11 = vpop.xlane.xlu1 %2951 }
 0xffc   : > { %5725 = vrcp.f32 %v2952_v11 }
 0xfff   : > { %v2955_v36 = vpop.xlane.xlu0 %2954 }
0x1000   : > { %5727 = vrcp.f32 %v2955_v36 }
0x1003   : > { %v2958_v45 = vpop.xlane.xlu1 %2957 }
0x1004   : > { %5729 = vrcp.f32 %v2958_v45 }
0x1006   : > { %v5726_v13 = vpop.eup %5725 }
0x1007   : > { %v2970_v31 = vmul.f32 %v5726_v13, %v2952_v11  ;;  %v2961_v37 = vpop.xlane.xlu0 %2960 }
0x1008   : > { %5731 = vrcp.f32 %v2961_v37 }
0x1009   : > { %v2975_v41 = vsub.f32 2.0, %v2970_v31 }
0x100a   : > { %v5728_v20 = vpop.eup %5727 }
0x100b   : > { %v2980_v25 = vmul.f32 %v5726_v13, %v2975_v41  ;;  %v2971_v39 = vmul.f32 %v5728_v20, %v2955_v36  ;;  %v2964_v29 = vpop.xlane.xlu1 %2963 }
0x100c   : > { %5733 = vrcp.f32 %v2964_v29 }
0x100d   : > { %v2985_v42 = vmul.f32 %v5716_v35, %v2980_v25  ;;  %v2976_v44 = vsub.f32 2.0, %v2971_v39 }
0x100e   : > { %v5730_v43 = vpop.eup %5729 }
0x100f   : > { %v2981_v27 = vmul.f32 %v5728_v20, %v2976_v44  ;;  %v2972_v8 = vmul.f32 %v5730_v43, %v2958_v45  ;;  %5158 = vmatmul.mubr.msk.f32.vlgmr.msra.gmra.mrb[112].mxu0 %vm774_vm13, %v2985_v42 }
0x1010   : > { %5160 = vmatprep.mubr.msk.f32.mxu0 %vm5844_vm9, %v5845_v38 }
0x1011   : > { %v2986_v14 = vmul.f32 %v5718_v40, %v2981_v27  ;;  %v2977_v46 = vsub.f32 2.0, %v2972_v8 }
0x1012   : > { %v5732_v19 = vpop.eup %5731 }
0x1013   : > { %v2982_v15 = vmul.f32 %v5730_v43, %v2977_v46  ;;  %v2973_v4 = vmul.f32 %v5732_v19, %v2961_v37  ;;  %5161 = vmatmul.mubr.msk.f32.gmra.mrb[114].mxu0 %vm774_vm13, %v2986_v14 }
0x1014   : > { %5163 = vmatprep.mubr.msk.f32.mxu0 %vm5844_vm9, %v5845_v38 }
0x1015   : > { %v2987_v35 = vmul.f32 %v5720_v61, %v2982_v15  ;;  %v2978_v18 = vsub.f32 2.0, %v2973_v4 }
0x1016   : > { %v5734_v21 = vpop.eup %5733 }
0x1017   : > { %v2983_v33 = vmul.f32 %v5732_v19, %v2978_v18  ;;  %v2974_v26 = vmul.f32 %v5734_v21, %v2964_v29  ;;  %5164 = vmatmul.mubr.msk.f32.gmra.mrb[116].mxu0 %vm774_vm13, %v2987_v35 }
0x1018   : > { %5166 = vmatprep.mubr.msk.f32.mxu0 %vm5844_vm9, %v5845_v38 }
0x1019   : > { %v2988_v40 = vmul.f32 %v5722_v30, %v2983_v33  ;;  %v2979_v24 = vsub.f32 2.0, %v2974_v26 }
0x101b   : > { %v2984_v63 = vmul.f32 %v5734_v21, %v2979_v24  ;;  %5167 = vmatmul.mubr.msk.f32.gmra.mrb[118].mxu0 %vm774_vm13, %v2988_v40 }
0x101c   : > { %5169 = vmatprep.mubr.msk.f32.mxu0 %vm5844_vm9, %v5845_v38 }
0x101d   : > { %v2989_v7 = vmul.f32 %v5724_v32, %v2984_v63 }
0x101f   : > { %5170 = vmatmul.mubr.msk.f32.gmra.mrb[120].mxu0 %vm774_vm13, %v2989_v7 }
0x1020   : > { %5207 = vmatprep.mubr.msk.f32.mxu0 %vm5844_vm9, %v5845_v38 }
0x10e2   : > { %v3074_v61 = vpop.f32.mrb[112].mxu0 }
0x10e3   : > { %v5159_v54 = vpop.f32.mrb[113].mxu0  ;;  %5177 = vmatmul.mubr.msk.f32.vlgmr.msra.gmra.mrb[108].mxu1 %vm643_vm10, %v3074_v61 }
0x10e4   : > { %5179 = vmatprep.mubr.msk.f32.mxu1 %vm5844_vm9, %v5845_v38 }
0x10e6   : > { %v3079_v30 = vpop.f32.mrb[114].mxu0 }
0x10e7   : > { %v5162_v11 = vpop.f32.mrb[115].mxu0  ;;  %5180 = vmatmul.mubr.msk.f32.gmra.mrb[110].mxu1 %vm643_vm10, %v3079_v30 }
0x10e8   : > { %5182 = vmatprep.mubr.msk.f32.mxu1 %vm5844_vm9, %v5845_v38 }
0x10ea   : > { %v3084_v32 = vpop.f32.mrb[116].mxu0 }
0x10eb   : > { %v5165_v36 = vpop.f32.mrb[117].mxu0  ;;  %5183 = vmatmul.mubr.msk.f32.gmra.mrb[112].mxu1 %vm643_vm10, %v3084_v32 }
0x10ec   : > { %5185 = vmatprep.mubr.msk.f32.mxu1 %vm5844_vm9, %v5845_v38 }
0x10ee   : > { %v3089_v45 = vpop.f32.mrb[118].mxu0 }
0x10ef   : > { %v5168_v13 = vpop.f32.mrb[119].mxu0  ;;  %5186 = vmatmul.mubr.msk.f32.gmra.mrb[114].mxu1 %vm643_vm10, %v3089_v45 }
0x10f0   : > { %5188 = vmatprep.mubr.msk.f32.mxu1 %vm5844_vm9, %v5845_v38 }
0x10f2   : > { %v3094_v31 = vpop.f32.mrb[120].mxu0 }
0x10f3   : > { %v5171_v37 = vpop.f32.mrb[121].mxu0  ;;  %5189 = vmatmul.mubr.msk.f32.gmra.mrb[116].mxu1 %vm643_vm10, %v3094_v31 }
0x10f4   : > { %5254 = vmatprep.mubr.msk.f32.mxu1 %vm5844_vm9, %v5845_v38 }
0x11b6   : > { %v3182_v41 = vpop.f32.mrb[108].mxu1 }
0x11b7   : > { %v3206_v20 = vadd.f32 %v3182_v41, %v7072_v62  ;;  %v5178_v25 = vpop.f32.mrb[109].mxu1 }
0x11b9   : > { %v3211_v39 = vadd.f32 %v5833_v0, %v3206_v20 }
0x11ba   : > { %v3187_v29 = vpop.f32.mrb[110].mxu1 }
0x11bb   : > { %v7169_v42 = vadd.f32 %v6029_v51, %v3211_v39  ;;  %v3207_v44 = vadd.f32 %v3187_v29, %v7075_v60  ;;  %v5181_v43 = vpop.f32.mrb[111].mxu1 }
0x11bd   : > { %v3212_v27 = vadd.f32 %v5829_v10, %v3207_v44  ;;  %v3227_v8 = vsel %vm242_vm7, %v7169_v42, 0.0 }
0x11be   : > { %3228 = vadd.xlane.f32.xlu0 %v3227_v8  ;;  %v3192_v14 = vpop.f32.mrb[112].mxu1 }
0x11bf   : > { %v7176_v46 = vadd.f32 %v6029_v51, %v3212_v27  ;;  %v3208_v62 = vadd.f32 %v3192_v14, %v7078_v1  ;;  %v5184_v0 = vpop.f32.mrb[113].mxu1 }
0x11c0   : > { %v3314_v0 = vld [vmem:[%s7514_s10] sm:$0xff] }
0x11c1   : > { %v3213_v19 = vadd.f32 %v5825_v16, %v3208_v62  ;;  %v3230_v15 = vsel %vm242_vm7, %v7176_v46, 0.0 }
0x11c2   : > { %3231 = vadd.xlane.f32.xlu1 %v3230_v15  ;;  %v3197_v60 = vpop.f32.mrb[114].mxu1 }
0x11c3   : > { %v7183_v10 = vadd.f32 %v6029_v51, %v3213_v19  ;;  %v3209_v4 = vadd.f32 %v3197_v60, %v7081_v34  ;;  %v5187_v35 = vpop.f32.mrb[115].mxu1  ;;  %v3315_v19 = vld [vmem:[%s7514_s10 + $0x8] sm:$0xff]  ;;  %v3316_v60 = vld [vmem:[%s7514_s10 + $0x10] sm:$0xff] }
0x11c4   : > { %v5523_v15 = vpack.c.bf16 %v3315_v19, %v3314_v0 }
0x11c5   : > { %v3214_v18 = vadd.f32 %v5821_v3, %v3209_v4  ;;  %v3233_v21 = vsel %vm242_vm7, %v7183_v10, 0.0  ;;  %v3317_v4 = vld [vmem:[%s7514_s10 + $0x18] sm:$0xff] }
0x11c6   : > { %3234 = vadd.xlane.f32.xlu0 %v3233_v21  ;;  %v3202_v1 = vpop.f32.mrb[116].mxu1  ;;  %5524 = vmatpush3.bf16.msra.mxu0 %v5523_v15  ;;  %v5526_v35 = vpack.c.bf16 %v3317_v4, %v3316_v60  ;;  %v3319_v21 = vld [vmem:[%s7514_s10 + $0x28] sm:$0xff] }
0x11c7   : > { %v7190_v16 = vadd.f32 %v6029_v51, %v3214_v18  ;;  %v3210_v33 = vadd.f32 %v3202_v1, %v7084_v5  ;;  %v5190_v26 = vpop.f32.mrb[117].mxu1  ;;  %5525 = vmatprep.subr.bf16.mxu0 %v5843_v9  ;;  %v3318_v18 = vld [vmem:[%s7514_s10 + $0x20] sm:$0xff] }
0x11c8   : > { %v5529_v1 = vpack.c.bf16 %v3319_v21, %v3318_v18  ;;  %v3321_v26 = vld [vmem:[%s7514_s10 + $0x38] sm:$0xff] }
0x11c9   : > { %v3215_v40 = vadd.f32 %v5817_v12, %v3210_v33  ;;  %v3236_v24 = vsel %vm242_vm7, %v7190_v16, 0.0  ;;  %v3320_v33 = vld [vmem:[%s7514_s10 + $0x30] sm:$0xff] }
0x11ca   : > { %3237 = vadd.xlane.f32.xlu1 %v3236_v24  ;;  %5527 = vmatpush3.bf16.msra.mxu0 %v5526_v35 }
0x11cb   : > { %v7197_v34 = vadd.f32 %v6029_v51, %v3215_v40  ;;  %5528 = vmatprep.subr.bf16.mxu0 %v5843_v9  ;;  %v5532_v40 = vpack.c.bf16 %v3321_v26, %v3320_v33  ;;  %v3578_v33 = vld [vmem:[%s7516_s12] sm:$0xff]  ;;  %v3579_v26 = vld [vmem:[%s7516_s12 + $0x8] sm:$0xff] }
0x11cd   : > { %v3239_v3 = vsel %vm255_vm8, %v7197_v34, 0.0 }
0x11ce   : > { %3240 = vadd.xlane.f32.xlu0 %v3239_v3  ;;  %5530 = vmatpush3.bf16.msra.mxu0 %v5529_v1 }
0x11cf   : > { %5531 = vmatprep.subr.bf16.mxu0 %v5843_v9 }
0x11d2   : > { %5533 = vmatpush3.bf16.msra.mxu0 %v5532_v40  ;;  %v3580_v40 = vld [vmem:[%s7516_s12 + $0x10] sm:$0xff] }
0x11d3   :  { %5558 = vmatprep.subr.bf16.mxu0 (%p233_p0), %v5839_v2 }
0x124b   : > { %v3229_v63 = vpop.xlane.xlu0 %3228 }
0x124c   : > { %v3242_v7 = vmul.f32 0.015625, %v3229_v63 }
0x124e   : > { %v7202_v61 = vsub.f32 %v7169_v42, %v3242_v7 }
0x124f   : > { %v3232_v5 = vpop.xlane.xlu1 %3231 }
0x1250   : > { %v3243_v54 = vmul.f32 0.015625, %v3232_v5  ;;  %v3252_v12 = vmul.f32 %v7202_v61, %v7202_v61 }
0x1252   : > { %v7207_v30 = vsub.f32 %v7176_v46, %v3243_v54  ;;  %v3257_v11 = vsel %vm242_vm7, %v3252_v12, 0.0 }
0x1253   : > { %v3235_v32 = vpop.xlane.xlu0 %3234  ;;  %3258 = vadd.xlane.f32.xlu1 %v3257_v11 }
0x1254   : > { %v3244_v36 = vmul.f32 0.015625, %v3235_v32  ;;  %v3253_v45 = vmul.f32 %v7207_v30, %v7207_v30 }
0x1256   : > { %v7213_v13 = vsub.f32 %v7183_v10, %v3244_v36  ;;  %v3260_v31 = vsel %vm242_vm7, %v3253_v45, 0.0 }
0x1257   : > { %v3238_v37 = vpop.xlane.xlu1 %3237  ;;  %3261 = vadd.xlane.f32.xlu0 %v3260_v31 }
0x1258   : > { %v3245_v41 = vmul.f32 0.015625, %v3238_v37  ;;  %v3254_v20 = vmul.f32 %v7213_v13, %v7213_v13 }
0x125a   : > { %v7219_v25 = vsub.f32 %v7190_v16, %v3245_v41  ;;  %v3263_v39 = vsel %vm242_vm7, %v3254_v20, 0.0 }
0x125b   : > { %3264 = vadd.xlane.f32.xlu1 %v3263_v39  ;;  %v3241_v29 = vpop.xlane.xlu0 %3240 }
0x125c   : > { %v3246_v44 = vmul.f32 0.015625, %v3241_v29  ;;  %v3255_v43 = vmul.f32 %v7219_v25, %v7219_v25 }
0x125e   : > { %v7225_v27 = vsub.f32 %v7197_v34, %v3246_v44  ;;  %v3266_v8 = vsel %vm242_vm7, %v3255_v43, 0.0 }
0x125f   : > { %3267 = vadd.xlane.f32.xlu0 %v3266_v8 }
0x1260   : > { %v3256_v14 = vmul.f32 %v7225_v27, %v7225_v27 }
0x1262   : > { %v3269_v62 = vsel %vm255_vm8, %v3256_v14, 0.0 }
0x1263   : > { %3270 = vadd.xlane.f32.xlu1 %v3269_v62 }
0x12e0   : > { %v3259_v24 = vpop.xlane.xlu1 %3258 }
0x12e1   : > { %v3272_v3 = vmul.f32 0.015625, %v3259_v24  ;;  %v3581_v24 = vld [vmem:[%s7516_s12 + $0x18] sm:$0xff] }
0x12e3   : > { %v3277_v63 = vadd.f32 1e-05, %v3272_v3  ;;  %v5538_v3 = vpack.c.bf16 %v3581_v24, %v3580_v40 }
0x12e4   : > { %v3262_v7 = vpop.xlane.xlu0 %3261 }
0x12e5   : > { %5735 = vrsqrt.f32 %v3277_v63  ;;  %v3273_v5 = vmul.f32 0.015625, %v3262_v7  ;;  %v3582_v63 = vld [vmem:[%s7516_s12 + $0x20] sm:$0xff]  ;;  %v3583_v7 = vld [vmem:[%s7516_s12 + $0x28] sm:$0xff] }
0x12e7   : > { %v3278_v54 = vadd.f32 1e-05, %v3273_v5  ;;  %v5541_v5 = vpack.c.bf16 %v3583_v7, %v3582_v63 }
0x12e8   : > { %v3265_v12 = vpop.xlane.xlu1 %3264 }
0x12e9   : > { %5737 = vrsqrt.f32 %v3278_v54  ;;  %v3274_v11 = vmul.f32 0.015625, %v3265_v12  ;;  %v3584_v54 = vld [vmem:[%s7516_s12 + $0x30] sm:$0xff]  ;;  %v3585_v12 = vld [vmem:[%s7516_s12 + $0x38] sm:$0xff] }
0x12eb   : > { %v3279_v32 = vadd.f32 1e-05, %v3274_v11  ;;  %v5544_v11 = vpack.c.bf16 %v3585_v12, %v3584_v54 }
0x12ec   : > { %v3268_v36 = vpop.xlane.xlu0 %3267 }
0x12ed   : > { %5739 = vrsqrt.f32 %v3279_v32  ;;  %v3275_v45 = vmul.f32 0.015625, %v3268_v36  ;;  %v3586_v32 = vld [vmem:[%s7516_s12 + $0x40] sm:$0xff]  ;;  %v3587_v36 = vld [vmem:[%s7516_s12 + $0x48] sm:$0xff] }
0x12ef   : > { %v5736_v31 = vpop.eup %5735  ;;  %v3280_v37 = vadd.f32 1e-05, %v3275_v45  ;;  %v5547_v45 = vpack.c.bf16 %v3587_v36, %v3586_v32 }
0x12f0   : > { %v3287_v41 = vmul.f32 %v5736_v31, %v7202_v61  ;;  %v3271_v20 = vpop.xlane.xlu1 %3270  ;;  %v3588_v31 = vld [vmem:[%s7516_s12 + $0x50] sm:$0xff] }
0x12f1   : > { %5741 = vrsqrt.f32 %v3280_v37  ;;  %v3276_v39 = vmul.f32 0.015625, %v3271_v20  ;;  %v3589_v37 = vld [vmem:[%s7516_s12 + $0x58] sm:$0xff]  ;;  %v3590_v20 = vld [vmem:[%s7516_s12 + $0x60] sm:$0xff] }
0x12f2   : > { %v3298_v29 = vmul.f32 %v6019_v49, %v3287_v41  ;;  %v5550_v41 = vpack.c.bf16 %v3589_v37, %v3588_v31 }
0x12f3   : > { %v5738_v44 = vpop.eup %5737  ;;  %v3281_v43 = vadd.f32 1e-05, %v3276_v39  ;;  %v3591_v39 = vld [vmem:[%s7516_s12 + $0x68] sm:$0xff] }
0x12f4   : > { %v3309_v8 = vadd.f32 %v6024_v50, %v3298_v29  ;;  %v3288_v14 = vmul.f32 %v5738_v44, %v7207_v30  ;;  %v5553_v29 = vpack.c.bf16 %v3591_v39, %v3590_v20  ;;  %v3592_v44 = vld [vmem:[%s7516_s12 + $0x70] sm:$0xff] }
0x12f5   : > { %5743 = vrsqrt.f32 %v3281_v43  ;;  %v3593_v43 = vld [vmem:[%s7516_s12 + $0x78] sm:$0xff] }
0x12f6   : > { %5208 = vmatmul.mubr.msk.f32.vlgmr.msra.gmra.mrb[122].mxu0 %vm242_vm7, %v3309_v8  ;;  %v3299_v62 = vmul.f32 %v6019_v49, %v3288_v14  ;;  %v5556_v8 = vpack.c.bf16 %v3593_v43, %v3592_v44 }
0x12f7   : > { %v5740_v0 = vpop.eup %5739  ;;  %5210 = vmatprep.mubr.msk.f32.mxu0 %vm5844_vm9, %v5845_v38 }
0x12f8   : > { %v3310_v61 = vadd.f32 %v6024_v50, %v3299_v62  ;;  %v3289_v19 = vmul.f32 %v5740_v0, %v7213_v13 }
0x12fa   : > { %5211 = vmatmul.mubr.msk.f32.gmra.mrb[124].mxu0 %vm242_vm7, %v3310_v61  ;;  %v3300_v15 = vmul.f32 %v6019_v49, %v3289_v19 }
0x12fb   : > { %v5742_v60 = vpop.eup %5741  ;;  %5213 = vmatprep.mubr.msk.f32.mxu0 %vm5844_vm9, %v5845_v38 }
0x12fc   : > { %v3311_v30 = vadd.f32 %v6024_v50, %v3300_v15  ;;  %v3290_v4 = vmul.f32 %v5742_v60, %v7219_v25 }
0x12fe   : > { %5214 = vmatmul.mubr.msk.f32.gmra.mrb[126].mxu0 %vm242_vm7, %v3311_v30  ;;  %v3301_v35 = vmul.f32 %v6019_v49, %v3290_v4 }
0x12ff   : > { %v5744_v18 = vpop.eup %5743  ;;  %5216 = vmatprep.mubr.msk.f32.mxu0 %vm5844_vm9, %v5845_v38 }
0x1300   : > { %v3312_v13 = vadd.f32 %v6024_v50, %v3301_v35  ;;  %v3291_v21 = vmul.f32 %v5744_v18, %v7225_v27  ;;  %v5535_v27 = vpack.c.bf16 %v3579_v26, %v3578_v33 }
0x1302   : > { %5217 = vmatmul.mubr.msk.f32.gmra.mrb[128].mxu0 %vm242_vm7, %v3312_v13  ;;  %v3302_v1 = vmul.f32 %v6019_v49, %v3291_v21  ;;  %5536 = vmatpush3.bf16.msra.mxu1 %v5535_v27 }
0x1303   : > { %5219 = vmatprep.mubr.msk.f32.mxu0 %vm5844_vm9, %v5845_v38  ;;  %5537 = vmatprep.subr.bf16.mxu1 %v5843_v9 }
0x1304   : > { %v3313_v25 = vadd.f32 %v6024_v50, %v3302_v1 }
0x1306   : > { %5220 = vmatmul.mubr.msk.f32.gmra.mrb[130].mxu0 %vm242_vm7, %v3313_v25  ;;  %5539 = vmatpush3.bf16.msra.mxu1 %v5538_v3 }
0x1307   : > { %5540 = vmatprep.subr.bf16.mxu1 %v5843_v9  ;;  %5279 = vmatprep.mubr.msk.f32.mxu0 (%p233_p0), %vm5840_vm0, %v5841_v6 }
0x130a   : > { %5542 = vmatpush3.bf16.msra.mxu1 %v5541_v5 }
0x130b   : > { %5543 = vmatprep.subr.bf16.mxu1 %v5843_v9 }
0x130e   : > { %5545 = vmatpush3.bf16.msra.mxu1 %v5544_v11 }
0x130f   : > { %5546 = vmatprep.subr.bf16.mxu1 %v5843_v9 }
0x1312   : > { %5548 = vmatpush3.bf16.msra.mxu1 %v5547_v45 }
0x1313   : > { %5549 = vmatprep.subr.bf16.mxu1 %v5843_v9 }
0x1316   : > { %5551 = vmatpush3.bf16.msra.mxu1 %v5550_v41 }
0x1317   : > { %5552 = vmatprep.subr.bf16.mxu1 %v5843_v9 }
0x131a   : > { %5554 = vmatpush3.bf16.msra.mxu1 %v5553_v29 }
0x131b   : > { %5555 = vmatprep.subr.bf16.mxu1 %v5843_v9 }
0x131e   : > { %5557 = vmatpush3.bf16.msra.mxu1 %v5556_v8 }
0x131f   :  { %5564 = vmatprep.subr.bf16.mxu1 (%p233_p0), %v5839_v2 }
0x13c9   : > { %v3409_v14 = vpop.f32.mrb[122].mxu0 }
0x13ca   : > { %v7342_v62 = vadd.f32 %v6034_v52, %v3409_v14  ;;  %v5209_v0 = vpop.f32.mrb[123].mxu0 }
0x13cc   : > { %v7345_v61 = vmul.f32 0.70710677, %v7342_v62 }
0x13cd   : > { %v3414_v19 = vpop.f32.mrb[124].mxu0 }
0x13ce   : > { %v3453_v9 = vand.u32 2147483647, %v7345_v61  ;;  %v7349_v15 = vadd.f32 %v6034_v52, %v3414_v19  ;;  %v5212_v60 = vpop.f32.mrb[125].mxu0  ;;  %vm3443_vm15 = vcmp.lt.f32.partialorder %v7345_v61, 0.0 }
0x13d0   : > { %v3458_v30 = vmul.f32 0.3275911, %v3453_v9  ;;  %v7352_v4 = vmul.f32 0.70710677, %v7349_v15  ;;  %v3533_v39 = vsub.f32 0.0, %v3453_v9 }
0x13d1   : > { %v3419_v35 = vpop.f32.mrb[126].mxu0 }
0x13d2   : > { %v3463_v18 = vadd.f32 1.0, %v3458_v30  ;;  %v3454_v13 = vand.u32 2147483647, %v7352_v4  ;;  %v5215_v21 = vpop.f32.mrb[127].mxu0  ;;  %v7356_v1 = vadd.f32 %v6034_v52, %v3419_v35  ;;  %v3538_v60 = vmul.f32 %v3533_v39, %v3453_v9 }
0x13d3   : > { %vm3444_vm1 = vcmp.lt.f32.partialorder %v7352_v4, 0.0 }
0x13d4   : > { %5745 = vrcp.f32 %v3463_v18  ;;  %v3459_v25 = vmul.f32 0.3275911, %v3454_v13  ;;  %v7359_v33 = vmul.f32 0.70710677, %v7356_v1  ;;  %v3534_v19 = vsub.f32 0.0, %v3454_v13 }
0x13d5   : > { %v3424_v26 = vpop.f32.mrb[128].mxu0 }
0x13d6   : > { %v3464_v27 = vadd.f32 1.0, %v3459_v25  ;;  %v7362_v40 = vadd.f32 %v6034_v52, %v3424_v26  ;;  %v5218_v24 = vpop.f32.mrb[129].mxu0  ;;  %v3455_v3 = vand.u32 2147483647, %v7359_v33  ;;  %vm3445_vm2 = vcmp.lt.f32.partialorder %v7359_v33, 0.0 }
0x13d7   : > { %v3539_v24 = vmul.f32 %v3534_v19, %v3454_v13 }
0x13d8   : > { %5747 = vrcp.f32 %v3464_v27  ;;  %v3460_v63 = vmul.f32 0.3275911, %v3455_v3  ;;  %v7366_v7 = vmul.f32 0.70710677, %v7362_v40 }
0x13d9   : > { %v3429_v5 = vpop.f32.mrb[130].mxu0 }
0x13da   : > { %v7369_v54 = vadd.f32 %v6034_v52, %v3429_v5  ;;  %v5221_v12 = vpop.f32.mrb[131].mxu0  ;;  %v3465_v11 = vadd.f32 1.0, %v3460_v63  ;;  %v3456_v32 = vand.u32 2147483647, %v7366_v7  ;;  %v3543_v63 = vmul.f32 1.442695, %v3538_v60 }
0x13db   : > { %v3535_v5 = vsub.f32 0.0, %v3455_v3  ;;  %vm3446_vm3 = vcmp.lt.f32.partialorder %v7366_v7, 0.0 }
0x13dc   : > { %v7373_v36 = vmul.f32 0.70710677, %v7369_v54  ;;  %5749 = vrcp.f32 %v3465_v11  ;;  %v3461_v45 = vmul.f32 0.3275911, %v3456_v32 }
0x13dd   : > { %v3540_v9 = vmul.f32 %v3535_v5, %v3455_v3 }
0x13de   : > { %v5746_v31 = vpop.eup %5745  ;;  %v3457_v37 = vand.u32 2147483647, %v7373_v36  ;;  %v3466_v20 = vadd.f32 1.0, %v3461_v45  ;;  %vm3447_vm4 = vcmp.lt.f32.partialorder %v7373_v36, 0.0 }
0x13df   : > { %v3473_v41 = vmul.f32 %v5746_v31, %v3463_v18 }
0x13e0   : > { %v3462_v29 = vmul.f32 0.3275911, %v3457_v37  ;;  %5751 = vrcp.f32 %v3466_v20 }
0x13e1   : > { %v3478_v44 = vsub.f32 2.0, %v3473_v41 }
0x13e2   : > { %v5748_v43 = vpop.eup %5747  ;;  %v3467_v8 = vadd.f32 1.0, %v3462_v29  ;;  %v3545_v29 = vmul.f32 1.442695, %v3539_v24  ;;  %v3537_v24 = vsub.f32 0.0, %v3457_v37 }
0x13e3   : > { %v3483_v14 = vmul.f32 %v5746_v31, %v3478_v44  ;;  %v3474_v0 = vmul.f32 %v5748_v43, %v3464_v27 }
0x13e4   : > { %5753 = vrcp.f32 %v3467_v8 }
0x13e5   : > { %v3488_v30 = vmul.f32 1.0614054, %v3483_v14  ;;  %v3479_v35 = vsub.f32 2.0, %v3474_v0  ;;  %5755 = vpow2.f32 %v3543_v63  ;;  %v3536_v0 = vsub.f32 0.0, %v3456_v32 }
0x13e6   : > { %v5750_v21 = vpop.eup %5749  ;;  %5757 = vpow2.f32 %v3545_v29 }
0x13e7   : > { %v3493_v25 = vadd.f32 -1.4531521, %v3488_v30  ;;  %v3484_v26 = vmul.f32 %v5748_v43, %v3479_v35  ;;  %v3475_v18 = vmul.f32 %v5750_v21, %v3465_v11 }
0x13e9   : > { %v3498_v12 = vmul.f32 %v3493_v25, %v3483_v14  ;;  %v3489_v45 = vmul.f32 1.0614054, %v3484_v26  ;;  %v3480_v41 = vsub.f32 2.0, %v3475_v18  ;;  %v3547_v25 = vmul.f32 1.442695, %v3540_v9 }
0x13ea   : > { %v5752_v28 = vpop.eup %5751 }
0x13eb   : > { %v3503_v23 = vadd.f32 1.4214138, %v3498_v12  ;;  %v3494_v31 = vadd.f32 -1.4531521, %v3489_v45  ;;  %v7376_v27 = vmul.f32 %v5750_v21, %v3480_v41  ;;  %v3476_v39 = vmul.f32 %v5752_v28, %v3466_v20 }
0x13ec   : > { %v3541_v12 = vmul.f32 %v3536_v0, %v3456_v32  ;;  %5759 = vpow2.f32 %v3547_v25 }
0x13ed   : > { %v3508_v44 = vmul.f32 %v3503_v23, %v3483_v14  ;;  %v3499_v30 = vmul.f32 %v3494_v31, %v3484_v26  ;;  %v3481_v13 = vsub.f32 2.0, %v3476_v39  ;;  %v3490_v11 = vmul.f32 1.0614054, %v7376_v27 }
0x13ee   : > { %v5754_v43 = vpop.eup %5753  ;;  %v3549_v39 = vmul.f32 1.442695, %v3541_v12 }
0x13ef   : > { %v3513_v19 = vadd.f32 -0.28449672, %v3508_v44  ;;  %v3477_v60 = vmul.f32 %v5754_v43, %v3467_v8  ;;  %v3504_v35 = vadd.f32 1.4214138, %v3499_v30  ;;  %v7379_v18 = vmul.f32 %v5752_v28, %v3481_v13  ;;  %v5756_v32 = vpop.eup %5755 }
0x13f0   : > { %v3495_v63 = vadd.f32 -1.4531521, %v3490_v11  ;;  %v3542_v8 = vmul.f32 %v3537_v24, %v3457_v37  ;;  %v5758_v25 = vpop.eup %5757  ;;  %5761 = vpow2.f32 %v3549_v39 }
0x13f1   : > { %v3518_v21 = vmul.f32 %v3513_v19, %v3483_v14  ;;  %v3482_v3 = vsub.f32 2.0, %v3477_v60  ;;  %v3509_v20 = vmul.f32 %v3504_v35, %v3484_v26  ;;  %v3491_v5 = vmul.f32 1.0614054, %v7379_v18 }
0x13f2   : > { %v3500_v23 = vmul.f32 %v3495_v63, %v7376_v27  ;;  %v3551_v60 = vmul.f32 1.442695, %v3542_v8  ;;  %v3433_v8 = vmul.f32 0.5, %v7342_v62 }
0x13f3   : > { %v3523_v45 = vadd.f32 0.2548296, %v3518_v21  ;;  %v7383_v41 = vmul.f32 %v5754_v43, %v3482_v3  ;;  %v3514_v31 = vadd.f32 -0.28449672, %v3509_v20  ;;  %v3496_v9 = vadd.f32 -1.4531521, %v3491_v5 }
0x13f4   : > { %v3505_v29 = vadd.f32 1.4214138, %v3500_v23  ;;  %v5846_v21 = vmov 1.0   ;;  %5763 = vpow2.f32 %v3551_v60 }
0x13f5   : > { %v3528_v28 = vmul.f32 %v3523_v45, %v3483_v14  ;;  %v3519_v44 = vmul.f32 %v3514_v31, %v3484_v26  ;;  %v3492_v30 = vmul.f32 1.0614054, %v7383_v41  ;;  %v3501_v13 = vmul.f32 %v3496_v9, %v7379_v18 }
0x13f6   : > { %v3510_v0 = vmul.f32 %v3505_v29, %v7376_v27  ;;  %v3448_v12 = vsel %vm3443_vm15, -1.0, %v5846_v21  ;;  %v3449_v39 = vsel %vm3444_vm1, -1.0, %v5846_v21 }
0x13f7   : > { %v3553_v11 = vmul.f32 %v5756_v32, %v3528_v28  ;;  %v3524_v43 = vadd.f32 0.2548296, %v3519_v44  ;;  %v3497_v19 = vadd.f32 -1.4531521, %v3492_v30  ;;  %v3506_v37 = vadd.f32 1.4214138, %v3501_v13  ;;  %v5760_v28 = vpop.eup %5759 }
0x13f8   : > { %v3515_v35 = vadd.f32 -0.28449672, %v3510_v0 }
0x13f9   : > { %v3558_v24 = vsub.f32 1.0, %v3553_v11  ;;  %v3529_v14 = vmul.f32 %v3524_v43, %v3484_v26  ;;  %v3502_v63 = vmul.f32 %v3497_v19, %v7383_v41  ;;  %v3511_v20 = vmul.f32 %v3506_v37, %v7379_v18 }
0x13fa   : > { %v3520_v3 = vmul.f32 %v3515_v35, %v7376_v27  ;;  %v3434_v43 = vmul.f32 0.5, %v7349_v15  ;;  %v5762_v35 = vpop.eup %5761  ;;  %v3450_v37 = vsel %vm3445_vm2, -1.0, %v5846_v21 }
0x13fb   : > { %v3563_v23 = vmul.f32 %v3558_v24, %v3448_v12  ;;  %v3554_v61 = vmul.f32 %v5758_v25, %v3529_v14  ;;  %v3507_v5 = vadd.f32 1.4214138, %v3502_v63  ;;  %v3516_v31 = vadd.f32 -0.28449672, %v3511_v20 }
0x13fc   : > { %v3525_v45 = vadd.f32 0.2548296, %v3520_v3  ;;  %v3435_v12 = vmul.f32 0.5, %v7356_v1 }
0x13fd   : > { %v3568_v29 = vadd.f32 1.0, %v3563_v23  ;;  %v3559_v26 = vsub.f32 1.0, %v3554_v61  ;;  %v3512_v9 = vmul.f32 %v3507_v5, %v7383_v41  ;;  %v3521_v30 = vmul.f32 %v3516_v31, %v7379_v18 }
0x13fe   : > { %v3530_v44 = vmul.f32 %v3525_v45, %v7376_v27  ;;  %v5764_v63 = vpop.eup %5763  ;;  %v3436_v45 = vmul.f32 0.5, %v7362_v40  ;;  %v3452_v31 = vsel %vm3447_vm4, -1.0, %v5846_v21 }
0x13ff   : > { %v3573_v32 = vmul.f32 %v3568_v29, %v3433_v8  ;;  %v3564_v0 = vmul.f32 %v3559_v26, %v3449_v39  ;;  %v3517_v4 = vadd.f32 -0.28449672, %v3512_v9  ;;  %v3526_v11 = vadd.f32 0.2548296, %v3521_v30 }
0x1400   : > { %v3555_v13 = vmul.f32 %v5760_v28, %v3530_v44  ;;  %v3437_v29 = vmul.f32 0.5, %v7369_v54 }
0x1401   : > { %5255 = vmatmul.mubr.f32.vlgmr.msra.gmra.mrb[118].mxu1 %v3573_v32  ;;  %v3569_v62 = vadd.f32 1.0, %v3564_v0  ;;  %v3522_v19 = vmul.f32 %v3517_v4, %v7383_v41  ;;  %v3531_v27 = vmul.f32 %v3526_v11, %v7379_v18  ;;  %v3451_v18 = vsel %vm3446_vm3, -1.0, %v5846_v21 }
0x1402   : > { %5257 = vmatprep.mubr.msk.f32.mxu1 %vm5844_vm9, %v5845_v38  ;;  %v3560_v60 = vsub.f32 1.0, %v3555_v13 }
0x1403   : > { %v3574_v25 = vmul.f32 %v3569_v62, %v3434_v43  ;;  %v3527_v24 = vadd.f32 0.2548296, %v3522_v19  ;;  %v3556_v14 = vmul.f32 %v5762_v35, %v3531_v27 }
0x1404   : > { %v3565_v33 = vmul.f32 %v3560_v60, %v3450_v37 }
0x1405   : > { %5258 = vmatmul.mubr.f32.gmra.mrb[120].mxu1 %v3574_v25  ;;  %v3532_v15 = vmul.f32 %v3527_v24, %v7383_v41  ;;  %v3561_v20 = vsub.f32 1.0, %v3556_v14  ;;  %v7542_v25 = vcvt.s32.f32 (%p233_p0), %v5998_v22  ;;  %v3814_v14 = vld [vmem:[%s7520_s16 + $0x38] sm:$0xff] (%p233_p0) }
0x1406   : > { %5260 = vmatprep.mubr.msk.f32.mxu1 %vm5844_vm9, %v5845_v38  ;;  %v3570_v3 = vadd.f32 1.0, %v3565_v33  ;;  %v3813_v33 = vld [vmem:[%s7520_s16 + $0x30] sm:$0xff] (%p233_p0) }
0x1407   : > { %v3557_v23 = vmul.f32 %v5764_v63, %v3532_v15  ;;  %v3566_v5 = vmul.f32 %v3561_v20, %v3451_v18  ;;  %v5574_v15 = vpack.c.bf16 (%p233_p0), %v3814_v14, %v3813_v33  ;;  %v4188_v18 = vld [vmem:[%s7518_s14] ss:$0 sm:$0xff] (%p233_p0)  ;;  %s5767_s14 = scalar_lea.vmem (%p233_p0), %s3904_s25, 32 }
0x1408   : > { %v3575_v61 = vmul.f32 %v3570_v3, %v3435_v12  ;;  %p5768_p1 = scmp.ne.s32.totalorder (%p233_p0), %s3904_s25, %s5767_s14  ;;  %p5773_p3 = scmp.lt.s32.totalorder (%p233_p0), %s5767_s14, %s5767_s14 }
0x1409   : > { %v3562_v7 = vsub.f32 1.0, %v3557_v23  ;;  %v3571_v41 = vadd.f32 1.0, %v3566_v5 }
0x140a   : > { %5261 = vmatmul.mubr.f32.gmra.mrb[122].mxu1 %v3575_v61  ;;  %v4189_v61 = vld [vmem:[%s7519_s15] ss:$0 sm:$0xff] (%p233_p0)  ;;  %p5774_p4 = por (%p233_p0), %p5773_p3, %p5772_p2 }
0x140b   : > { %5263 = vmatprep.mubr.msk.f32.mxu1 %vm5844_vm9, %v5845_v38  ;;  %v3567_v1 = vmul.f32 %v3562_v7, %v3452_v31  ;;  %v3576_v8 = vmul.f32 %v3571_v41, %v3436_v45 }
0x140c   :  { %p5775_p5 = pnand (%p233_p0), %p5774_p4, %p5768_p1 }
0x140d   : > { %v3572_v26 = vadd.f32 1.0, %v3567_v1 }
0x140e   : > { %5264 = vmatmul.mubr.f32.gmra.mrb[124].mxu1 %v3576_v8 }
0x140f   : > { %5266 = vmatprep.mubr.msk.f32.mxu1 %vm5844_vm9, %v5845_v38  ;;  %v3577_v36 = vmul.f32 %v3572_v26, %v3437_v29 }
0x1412   : > { %5267 = vmatmul.mubr.f32.gmra.mrb[126].mxu1 %v3577_v36 }
0x1413   :  { %5298 = vmatprep.mubr.msk.f32.mxu1 (%p233_p0), %vm5840_vm0, %v5841_v6 }
0x14d4   : > { %v3666_v9 = vpop.f32.mrb[118].mxu1 }
0x14d5   : > { %v3667_v40 = vadd.f32 %v6039_v53, %v3666_v9  ;;  %v5256_v21 = vpop.f32.mrb[119].mxu1 }
0x14d7   : > { %v3690_v28 = vadd.f32 %v3667_v40, %v7169_v42  }
0x14d8   : > { %v3671_v39 = vpop.f32.mrb[120].mxu1 }
0x14d9   : > { %v3672_v44 = vadd.f32 %v6039_v53, %v3671_v39  ;;  %v5259_v30 = vpop.f32.mrb[121].mxu1 }
0x14db   : > { %v3691_v32 = vadd.f32 %v3672_v44, %v7176_v46  }
0x14dd   : > { %v3676_v54 = vpop.f32.mrb[122].mxu1  ;;  %v5559_v46 = vpack.c.bf16 (%p233_p0), %v3691_v32, %v3690_v28 }
0x14de   : > { %v3677_v0 = vadd.f32 %v6039_v53, %v3676_v54  ;;  %v5262_v4 = vpop.f32.mrb[123].mxu1 }
0x14df   :  { %5560 = vmatpush3.bf16.msra.mxu0 (%p233_p0), %v5559_v46 }
0x14e0   : > { %v3692_v38 = vadd.f32 %v3677_v0, %v7183_v10   ;;  %v7539_v10 = vmov %v3691_v32  ;;  %v7540_v0 = vmov %v3690_v28  ;;  %5561 = vmatprep.subr.bf16.mxu0 (%p233_p0), %v5839_v2 }
0x14e1   : > { %v3681_v13 = vpop.f32.mrb[124].mxu1  ;;  %v3811_v10 = vld [vmem:[%s7520_s16 + $0x20] sm:$0xff] (%p233_p0) }
0x14e2   : > { %v3682_v11 = vadd.f32 %v6039_v53, %v3681_v13  ;;  %v5265_v43 = vpop.f32.mrb[125].mxu1 }
0x14e4   : > { %v3693_v62 = vadd.f32 %v3682_v11, %v7190_v16   ;;  %v7538_v16 = vmov %v3692_v38  ;;  %235 = sbr.rel (!%p233_p0) target bundleno = 245 (0xf5), region = 113 }
0x14e5   : > { %v3686_v19 = vpop.f32.mrb[126].mxu1  ;;  %v3812_v16 = vld [vmem:[%s7520_s16 + $0x28] sm:$0xff] (%p233_p0) }
0x14e6   : > { %v3687_v42 = vadd.f32 %v6039_v53, %v3686_v19  ;;  %v5268_v60 = vpop.f32.mrb[127].mxu1  ;;  %v7537_v3 = vmov %v3693_v62  ;;  %v5562_v37 = vpack.c.bf16 (%p233_p0), %v3693_v62, %v3692_v38  ;;  %v5571_v24 = vpack.c.bf16 (%p233_p0), %v3812_v16, %v3811_v10 }
0x14e8   : > { %v3694_v27 = vadd.f32 %v3687_v42, %v7197_v34   ;;  %v7541_v34 = vcvt.s32.f32 (%p233_p0), %v5992_v17  ;;  %5563 = vmatpush3.bf16.msra.mxu0 (%p233_p0), %v5562_v37 }
0x14e9   :  { %5277 = vmatprep.subr.mxu0 (%p233_p0), %v5841_v6 }
0x14ea   : > { %v7536_v12 = vmov %v3694_v27  ;;  %v3695_v35 = vmul.f32 (%p233_p0), 17.0, %v7541_v34 }
0x14ec   :  { %vm3696_vm5 = vcmp.eq.f32.partialorder %v7542_v25, %v3695_v35  ;;  %5278 = vmatpush3.msk.msra.mxu0 %vm861_vm12, %v3694_v27 }
0x14ed   :  { %v3697_v47 = vsel %vm3696_vm5, 1.0, %v5841_v6  ;;  %v3807_v6 = vld [vmem:[%s7520_s16] sm:$0xff] }
0x14ee   :  { %5280 = vmatmul.mubr.msk.f32.vlgmr.msra.gmra.mrb[0].mxu0 %vm774_vm13, %v3697_v47  ;;  %v5565_v56 = vpack.c.bf16 %v3808_v55, %v3807_v6 }
0x14f0   :  { %5566 = vmatpush3.bf16.msra.mxu1 %v5565_v56 }
0x14f1   :  { %5567 = vmatprep.subr.bf16.mxu1 %v5839_v2 }
0x14f4   :  { %5569 = vmatpush3.bf16.msra.mxu1 %v5568_v59 }
0x14f5   :  { %5570 = vmatprep.subr.bf16.mxu1 %v5839_v2 }
0x14f8   :  { %5572 = vmatpush3.bf16.msra.mxu1 %v5571_v24 }
0x14f9   :  { %5573 = vmatprep.subr.bf16.mxu1 %v5839_v2  ;;  %v4190_v2 = vld [vmem:[%s7521_s17] ss:$0 sm:$0xff] }
0x14fc   :  { %5575 = vmatpush3.bf16.msra.mxu1 %v5574_v15 }
0x15c1   :  { %v3772_v17 = vpop.f32.mrb[0].mxu0 }
0x15c2   :  { %v5281_v48 = vpop.f32.mrb[1].mxu0  ;;  %v3779_v49 = vsel %vm255_vm8, %v3772_v17, 0.0 }
0x15c3   :  { %3780 = vadd.xlane.f32.xlu0 %v3779_v49 }
0x1650   :  { %v3781_v50 = vpop.xlane.xlu0 %3780 }
0x1651   :  { %v3783_v51 = vmul.f32 0.015625, %v3781_v50 }
0x1653   :  { %v3784_v52 = vsub.f32 %v3772_v17, %v3783_v51 }
0x1655   :  { %v3785_v53 = vmul.f32 %v3784_v52, %v3784_v52 }
0x1657   :  { %v3786_v22 = vsel %vm255_vm8, %v3785_v53, 0.0 }
0x1658   :  { %3787 = vadd.xlane.f32.xlu0 %v3786_v22 }
0x16e5   :  { %v3788_v63 = vpop.xlane.xlu0 %3787 }
0x16e6   :  { %v3789_v12 = vmul.f32 0.015625, %v3788_v63 }
0x16e8   :  { %v3790_v3 = vadd.f32 1e-05, %v3789_v12 }
0x16ea   :  { %5765 = vrsqrt.f32 %v3790_v3 }
0x16f4   :  { %v5766_v20 = vpop.eup %5765 }
0x16f5   :  { %v3792_v23 = vmul.f32 %v5766_v20, %v3784_v52 }
0x16f7   :  { %v3799_v5 = vmul.f32 %v4188_v18, %v3792_v23 }
0x16f9   :  { %v3806_v7 = vadd.f32 %v4189_v61, %v3799_v5 }
0x16fb   :  { %5299 = vmatmul.mubr.msk.f32.vlgmr.msra.gmra.mrb[0].mxu1 %vm242_vm7, %v3806_v7 }
0x17ce   :  { %v3892_v45 = vpop.f32.mrb[0].mxu1 }
0x17cf   :  { %v3893_v31 = vadd.f32 %v4190_v2, %v3892_v45  ;;  %v5300_v41 = vpop.f32.mrb[1].mxu1 }
0x17d1   :  { %3896 = vst [vmem:[#allocation2] sm:$0x3] %v3893_v31 }
0x17d2   :  { %5778 = shalt.err (!%p5775_p5)
}
0x17d3   :  { %s5779_s27 = scalar_lea.hbm %s7522_s18, 32 }
0x17d4   :  { %p5780_p6 = scmp.ne.s32.totalorder %s7522_s18, %s5779_s27  ;;  %p5783_p7 = scmp.lt.u32.totalorder %s5779_s27, %s7522_s18 }
0x17d6   :  { %p5785_p8 = pnand %p5783_p7, %p5780_p6 }
0x17d8   :  { %5788 = shalt.err (!%p5785_p8)
}
0x17d9   :  { %3906 = dma.vmem_to_hbm [thread:$0]  %s3904_s25, 32, %s7522_s18, [#allocation3]  }
0x17da   :  { %5813 = dma.done.wait [#allocation3], 32  }
0x17db   :  { %5814 = vsyncadd [#allocation3], 4294967264 }
0x17dc   :  { %3910 = vsyncpa [#allocation3], 1 }

</bundles_post_ra>
